<compile_context>
chip_gen: v7x
topology: tpu7x:2x2x1
jax: 0.10.0
libtpu: 0.0.40
codegen_flags: <defaults>
</compile_context>

<pallas_src>
import functools

import jax
import jax.numpy as jnp
from jax import lax
from jax.experimental import pallas as pl
from jax.experimental.pallas import tpu as pltpu


# ----------------------------------------------------------------------------
# Fused Pallas kernel: 2 layers x 2 directions + final Linear
# ----------------------------------------------------------------------------
def _gru_block_kernel(x_ref,                                   # (T, Bc, F)
                      wx0_ref, wh0_ref, bx0_ref, bhn0_ref,     # layer 0
                      wx1a_ref, wx1b_ref, wh1_ref, bx1_ref, bhn1_ref,  # layer 1
                      wlf_ref, wlb_ref, bl_ref,                # final linear
                      out_ref,                                 # (T, Bc, H)
                      gx_ref, yf_ref, yb_ref,                  # VMEM scratch
                      *, T, Bc, unroll):
    f32 = jnp.float32
    bf16 = jnp.bfloat16
    H = out_ref.shape[-1]
    Fin = x_ref.shape[-1]
    N = T * Bc

    def sigmoid(v):                    # one EUP tanh instead of exp + reciprocal
        return 0.5 * (jnp.tanh(0.5 * v) + 1.0)

    # ---- layer-0 input projection: one (N,F)x(F,3H) matmul per direction ----
    xb = x_ref[...].reshape(N, Fin).astype(bf16)
    for d in range(2):
        gx_ref[d] = (jnp.dot(xb, wx0_ref[d], preferred_element_type=f32)
                     + bx0_ref[d])

    # ---- serial recurrence: both directions interleaved in one time loop ----
    def run_layer(wh_ref, bhn_ref):
        wh_f = wh_ref[0]                                       # (H, 3H) bf16
        wh_b = wh_ref[1]
        bhn_f = jnp.broadcast_to(bhn_ref[0], (Bc, H))          # hoisted broadcasts
        bhn_b = jnp.broadcast_to(bhn_ref[1], (Bc, H))

        def cell(h, gi, wh, bhn):
            # single fused (Bc,H)x(H,3H) recurrent matmul, bf16 operands f32 acc
            gh = jnp.dot(h.astype(bf16), wh, preferred_element_type=f32)
            rz = sigmoid(gi[:, :2 * H] + gh[:, :2 * H])        # r and z together
            r, z = rz[:, :H], rz[:, H:]
            n = jnp.tanh(gi[:, 2 * H:] + r * (gh[:, 2 * H:] + bhn))
            return n + z * (h - n)                             # == (1-z)*n + z*h

        def step(s, carry):
            h_f, h_b = carry
            if isinstance(s, int):                             # unrolled: static offsets
                rf, rb = s * Bc, (T - 1 - s) * Bc
            else:                                              # rolled: alignment hint
                rf = pl.multiple_of(s * Bc, Bc)
                rb = pl.multiple_of((T - 1 - s) * Bc, Bc)
            h_f = cell(h_f, gx_ref[0, pl.ds(rf, Bc), :], wh_f, bhn_f)
            h_b = cell(h_b, gx_ref[1, pl.ds(rb, Bc), :], wh_b, bhn_b)
            yf_ref[pl.ds(rf, Bc), :] = h_f
            yb_ref[pl.ds(rb, Bc), :] = h_b
            return h_f, h_b

        h0 = jnp.zeros((Bc, H), f32)
        if T <= 16:                                            # tiny static T: cheap full unroll
            carry = (h0, h0)
            for s in range(T):
                carry = step(s, carry)
        else:                                                  # bounded unroll: vreg pressure stays sane
            lax.fori_loop(0, T, step, (h0, h0), unroll=unroll)

    run_layer(wh0_ref, bhn0_ref)

    # ---- layer-1 input projection over the fwd/bwd halves (no concat) -------
    yfb = yf_ref[...].astype(bf16)
    ybb = yb_ref[...].astype(bf16)
    for d in range(2):
        gx_ref[d] = (jnp.dot(yfb, wx1a_ref[d], preferred_element_type=f32)
                     + jnp.dot(ybb, wx1b_ref[d], preferred_element_type=f32)
                     + bx1_ref[d])

    run_layer(wh1_ref, bhn1_ref)                               # overwrites yf/yb in place

    # ---- final Linear(2H -> H), split over the fwd/bwd halves ---------------
    y = (jnp.dot(yf_ref[...].astype(bf16), wlf_ref[...], preferred_element_type=f32)
         + jnp.dot(yb_ref[...].astype(bf16), wlb_ref[...], preferred_element_type=f32)
         + bl_ref[...])
    out_ref[...] = y.reshape(T, Bc, H).astype(out_ref.dtype)


def _vmem_spec():
    return pl.BlockSpec(memory_space=pltpu.MemorySpace.VMEM)


# ----------------------------------------------------------------------------
# GRUBlock forward (single fused pallas_call, batch-chunk grid)
# ----------------------------------------------------------------------------
@functools.partial(jax.jit, static_argnames=("batch_chunk",))
def gru_block_forward(x_btf, kernel_params, *, batch_chunk=8):
    """x_btf: (B, T, in_features) batch-first, like the PyTorch module.

    batch_chunk: per-program batch rows (multiple of 8).  Small values let the
    "parallel" grid axis spread chunks over v7x's two TensorCores; on single-TC
    chips (v5e/v6e) raise it so the whole batch stays in one or two programs.
    """
    (wx0, wh0, bx0, bhn0,
     wx1a, wx1b, wh1, bx1, bhn1,
     wlf, wlb, bl) = kernel_params
    B, T, F = x_btf.shape
    H = wlf.shape[-1]

    Bc = max(8, -(-min(batch_chunk, B) // 8) * 8)      # chunk rows, multiple of 8
    Bp = -(-B // Bc) * Bc                              # padded total batch
    n_chunks = Bp // Bc
    N = T * Bc
    unroll = next(u for u in (8, 4, 2, 1) if T % u == 0)

    # time-major, batch padded to the chunk size (see TODO at top of file)
    xp = jnp.pad(x_btf.astype(jnp.float32), ((0, Bp - B), (0, 0), (0, 0)))
    x_tbf = jnp.transpose(xp, (1, 0, 2))               # (T, Bp, F)

    # VMEM budget: per-program scratch + double-buffered x/out blocks + weights
    w_bytes = sum(int(w.size) * w.dtype.itemsize for w in kernel_params)
    scratch_bytes = 2 * N * 3 * H * 4 + 2 * N * H * 4          # gx + yf + yb
    block_bytes = 2 * (N * F * 4) + 2 * (N * H * 4)            # x + out, 2x buffered
    vmem_limit = int(1.25 * (w_bytes + scratch_bytes + block_bytes)) + (2 << 20)
    vmem_limit = min(max(vmem_limit, 32 * 1024 * 1024), 127 * 1024 * 1024)

    kernel = functools.partial(_gru_block_kernel, T=T, Bc=Bc, unroll=unroll)
    out_tbh = pl.pallas_call(
        kernel,
        grid=(n_chunks,),
        out_shape=jax.ShapeDtypeStruct((T, Bp, H), jnp.float32),
        in_specs=[pl.BlockSpec((T, Bc, F), lambda i: (0, i, 0))]
                 + [_vmem_spec()] * 12,
        out_specs=pl.BlockSpec((T, Bc, H), lambda i: (0, i, 0)),
        scratch_shapes=[
            pltpu.VMEM((2, N, 3 * H), jnp.float32),    # gx, lane-dense, reused by both layers
            pltpu.VMEM((N, H), jnp.float32),           # y forward  (reused layer 0/1)
            pltpu.VMEM((N, H), jnp.float32),           # y backward (reused layer 0/1)
        ],
        compiler_params=pltpu.CompilerParams(
            dimension_semantics=("parallel",),
            vmem_limit_bytes=vmem_limit),
    )(x_tbf, wx0, wh0, bx0, bhn0, wx1a, wx1b, wh1, bx1, bhn1, wlf, wlb, bl)

    out = jnp.transpose(out_tbh, (1, 0, 2))[:B]        # (B, T, H)
    return out


# ----------------------------------------------------------------------------
# One-time parameter repack: gate-fused, pre-transposed, bf16 MXU weights,
# biases pre-combined (b_ir+b_hr, b_iz+b_hz, b_in in gx; b_hn kept inside r*())
# ----------------------------------------------------------------------------
def prepare_kernel_params(params, hidden, compute_dtype=jnp.bfloat16):
    H = hidden
    assert len(params["gru"]) == 2, "kernel is specialized for gru_layers=2"

    def fuse_dir(w_ih, w_hh, b_ih, b_hh, split_input):
        wx = jnp.transpose(w_ih)                        # (Fin, 3H), columns [r|z|n]
        wh = jnp.transpose(w_hh).astype(compute_dtype)  # (H, 3H)
        bx = jnp.concatenate([b_ih[:H] + b_hh[:H],              # r: b_ir + b_hr
                              b_ih[H:2 * H] + b_hh[H:2 * H],    # z: b_iz + b_hz
                              b_ih[2 * H:]]).reshape(1, 3 * H)  # n: b_in only
        bhn = b_hh[2 * H:].reshape(1, H)                        # n: b_hn (inside r*())
        if split_input:                                 # (2H, 3H) -> fwd-half, bwd-half
            return (wx[:H].astype(compute_dtype), wx[H:].astype(compute_dtype),
                    wh, bx, bhn)
        return wx.astype(compute_dtype), wh, bx, bhn

    def pack_layer(layer_p, split_input):
        parts = [fuse_dir(*layer_p[d], split_input) for d in ("fwd", "bwd")]
        return [jnp.stack(p) for p in zip(*parts)]

    wx0, wh0, bx0, bhn0 = pack_layer(params["gru"][0], False)
    wx1a, wx1b, wh1, bx1, bhn1 = pack_layer(params["gru"][1], True)

    w_lin, b_lin = params["linear"]                     # (H, 2H), (H,)
    wlf = jnp.transpose(w_lin[:, :H]).astype(compute_dtype)   # applied to fwd half
    wlb = jnp.transpose(w_lin[:, H:]).astype(compute_dtype)   # applied to bwd half
    bl = b_lin.reshape(1, H)

    return (wx0, wh0, bx0, bhn0, wx1a, wx1b, wh1, bx1, bhn1, wlf, wlb, bl)


# ----------------------------------------------------------------------------
# Pure-JAX reference (PyTorch nn.GRU inference semantics).
# matmul_dtype=bf16 reproduces the kernel's MXU operand precision exactly
# (f32 accumulation, f32 gate math), for a tight structural check.
# ----------------------------------------------------------------------------
def _gru_dir_ref(x_tbf, w_ih, w_hh, b_ih, b_hh, matmul_dtype):
    H = w_hh.shape[1]

    def mm(a, b):
        return jnp.dot(a.astype(matmul_dtype), b.astype(matmul_dtype),
                       preferred_element_type=jnp.float32)

    h0 = jnp.zeros((x_tbf.shape[1], H), jnp.float32)

    def step(h, xt):
        gx = mm(xt, w_ih.T) + b_ih
        gh = mm(h, w_hh.T) + b_hh
        r = jax.nn.sigmoid(gx[:, :H] + gh[:, :H])
        z = jax.nn.sigmoid(gx[:, H:2 * H] + gh[:, H:2 * H])
        n = jnp.tanh(gx[:, 2 * H:] + r * gh[:, 2 * H:])
        h_new = (1.0 - z) * n + z * h
        return h_new, h_new

    _, ys = lax.scan(step, h0, x_tbf)
    return ys


def gru_block_ref(x_btf, params, num_layers, matmul_dtype=jnp.float32):
    x = jnp.transpose(x_btf, (1, 0, 2)).astype(jnp.float32)
    for layer in range(num_layers):
        out_f = _gru_dir_ref(x, *params["gru"][layer]["fwd"], matmul_dtype)
        out_b = _gru_dir_ref(x[::-1], *params["gru"][layer]["bwd"], matmul_dtype)[::-1]
        x = jnp.concatenate([out_f, out_b], axis=-1)
    w, b = params["linear"]
    y = jnp.dot(x.astype(matmul_dtype), w.T.astype(matmul_dtype),
                preferred_element_type=jnp.float32) + b
    return jnp.transpose(y, (1, 0, 2))


# ----------------------------------------------------------------------------
# Deterministic parameter init (PyTorch-style U(-1/sqrt(H), 1/sqrt(H)))
# ----------------------------------------------------------------------------
def init_params(key, in_features, hidden, num_layers):
    std = 1.0 / jnp.sqrt(hidden)
    params = {"gru": []}
    for layer in range(num_layers):
        f_in = in_features if layer == 0 else 2 * hidden
        layer_p = {}
        for direction in ("fwd", "bwd"):
            key, k1, k2, k3, k4 = jax.random.split(key, 5)
            layer_p[direction] = (
                jax.random.uniform(k1, (3 * hidden, f_in), jnp.float32, -std, std),
                jax.random.uniform(k2, (3 * hidden, hidden), jnp.float32, -std, std),
                jax.random.uniform(k3, (3 * hidden,), jnp.float32, -std, std),
                jax.random.uniform(k4, (3 * hidden,), jnp.float32, -std, std),
            )
        params["gru"].append(layer_p)
    key, k1, k2 = jax.random.split(key, 3)
    std_lin = 1.0 / jnp.sqrt(2 * hidden)
    params["linear"] = (
        jax.random.uniform(k1, (hidden, 2 * hidden), jnp.float32, -std_lin, std_lin),
        jax.random.uniform(k2, (hidden,), jnp.float32, -std_lin, std_lin),
    )
    return params


if __name__ == "__main__":
    # Small shapes consistent with the module: batch=2, seq=8, in_features=16,
    # hidden=32, gru_layers=2, bidirectional.
    B, T, F_IN, H, L = 2, 8, 16, 32, 2

    key = jax.random.PRNGKey(0)
    key, kx = jax.random.split(key)
    x = jax.random.normal(kx, (B, T, F_IN), jnp.float32)
    params = init_params(key, F_IN, H, L)
    kparams = prepare_kernel_params(params, H)   # one-time weight repack (bf16)

    out = gru_block_forward(x, kparams)
    out = jax.block_until_ready(out)
    assert out.shape == (B, T, H), out.shape

    # Tight structural check: reference using the same bf16-operand /
    # f32-accumulate matmuls the kernel feeds the MXU.
    ref_bf16 = gru_block_ref(x, params, L, matmul_dtype=jnp.bfloat16)
    err = float(jnp.max(jnp.abs(out - ref_bf16)))
    assert err < 2e-3, f"mismatch vs bf16-matmul reference: {err}"

    # Sanity bound vs pure-f32 PyTorch-semantics reference (bf16 MXU rounding).
    ref_f32 = gru_block_ref(x, params, L, matmul_dtype=jnp.float32)
    err_f32 = float(jnp.max(jnp.abs(out - ref_f32)))
    assert err_f32 < 0.25, f"bf16 deviation unexpectedly large: {err_f32}"

    print("KERNEL_OK")
</pallas_src>

<mosaic_0001>
module attributes {stable_mosaic.version = 11 : i64} {
  func.func @_gru_block_kernel(%arg0: i32, %arg1: memref<8x8x16xf32, #tpu.memory_space<vmem>>, %arg2: memref<2x16x96xbf16, #tpu.memory_space<vmem>>, %arg3: memref<2x32x96xbf16, #tpu.memory_space<vmem>>, %arg4: memref<2x1x96xf32, #tpu.memory_space<vmem>>, %arg5: memref<2x1x32xf32, #tpu.memory_space<vmem>>, %arg6: memref<2x32x96xbf16, #tpu.memory_space<vmem>>, %arg7: memref<2x32x96xbf16, #tpu.memory_space<vmem>>, %arg8: memref<2x32x96xbf16, #tpu.memory_space<vmem>>, %arg9: memref<2x1x96xf32, #tpu.memory_space<vmem>>, %arg10: memref<2x1x32xf32, #tpu.memory_space<vmem>>, %arg11: memref<32x32xbf16, #tpu.memory_space<vmem>>, %arg12: memref<32x32xbf16, #tpu.memory_space<vmem>>, %arg13: memref<1x32xf32, #tpu.memory_space<vmem>>, %arg14: memref<8x8x32xf32, #tpu.memory_space<vmem>>, %arg15: memref<2x64x96xf32, #tpu.memory_space<vmem>>, %arg16: memref<64x32xf32, #tpu.memory_space<vmem>>, %arg17: memref<64x32xf32, #tpu.memory_space<vmem>>) attributes {dimension_semantics = [#tpu.dimension_semantics<parallel>], iteration_bounds = array<i64: 1>, scalar_prefetch = 0 : i64, scratch_operands = 3 : i64, tpu.core_type = #tpu.core_type<tc>, window_params = [{transform_indices = @transform_0, window_bounds = array<i64: 8, 8, 16>}, {pipeline_mode = #tpu.pipeline_mode<synchronous>, transform_indices = @transform_1, window_bounds = array<i64: 2, 16, 96>}, {pipeline_mode = #tpu.pipeline_mode<synchronous>, transform_indices = @transform_2, window_bounds = array<i64: 2, 32, 96>}, {pipeline_mode = #tpu.pipeline_mode<synchronous>, transform_indices = @transform_3, window_bounds = array<i64: 2, 1, 96>}, {pipeline_mode = #tpu.pipeline_mode<synchronous>, transform_indices = @transform_4, window_bounds = array<i64: 2, 1, 32>}, {pipeline_mode = #tpu.pipeline_mode<synchronous>, transform_indices = @transform_5, window_bounds = array<i64: 2, 32, 96>}, {pipeline_mode = #tpu.pipeline_mode<synchronous>, transform_indices = @transform_6, window_bounds = array<i64: 2, 32, 96>}, {pipeline_mode = #tpu.pipeline_mode<synchronous>, transform_indices = @transform_7, window_bounds = array<i64: 2, 32, 96>}, {pipeline_mode = #tpu.pipeline_mode<synchronous>, transform_indices = @transform_8, window_bounds = array<i64: 2, 1, 96>}, {pipeline_mode = #tpu.pipeline_mode<synchronous>, transform_indices = @transform_9, window_bounds = array<i64: 2, 1, 32>}, {pipeline_mode = #tpu.pipeline_mode<synchronous>, transform_indices = @transform_10, window_bounds = array<i64: 32, 32>}, {pipeline_mode = #tpu.pipeline_mode<synchronous>, transform_indices = @transform_11, window_bounds = array<i64: 32, 32>}, {pipeline_mode = #tpu.pipeline_mode<synchronous>, transform_indices = @transform_12, window_bounds = array<i64: 1, 32>}, {transform_indices = @transform_13, window_bounds = array<i64: 8, 8, 32>}]} {
    %c0 = arith.constant 0 : index
    %c0_0 = arith.constant 0 : index
    %c0_1 = arith.constant 0 : index
    %0 = vector.load %arg1[%c0, %c0_0, %c0_1] : memref<8x8x16xf32, #tpu.memory_space<vmem>>, vector<8x8x16xf32>
    %1 = vector.shape_cast %0 : vector<8x8x16xf32> to vector<64x16xf32>
    %2 = arith.truncf %1 : vector<64x16xf32> to vector<64x16xbf16>
    %c0_2 = arith.constant 0 : index
    %c0_3 = arith.constant 0 : index
    %c0_4 = arith.constant 0 : index
    %3 = vector.load %arg2[%c0_2, %c0_3, %c0_4] : memref<2x16x96xbf16, #tpu.memory_space<vmem>>, vector<1x16x96xbf16>
    %4 = vector.shape_cast %3 : vector<1x16x96xbf16> to vector<16x96xbf16>
    %cst = arith.constant dense<0.000000e+00> : vector<64x96xf32>
    %5 = tpu.matmul %2, %4, %cst {dimension_numbers = #tpu.dot_dimension_numbers<[1], [0], [0], [1], [0, 0, 1, 1], [], []>} : vector<64x16xbf16>, vector<16x96xbf16>, vector<64x96xf32> -> vector<64x96xf32>
    %c0_5 = arith.constant 0 : index
    %c0_6 = arith.constant 0 : index
    %c0_7 = arith.constant 0 : index
    %6 = vector.load %arg4[%c0_5, %c0_6, %c0_7] : memref<2x1x96xf32, #tpu.memory_space<vmem>>, vector<1x1x96xf32>
    %7 = vector.shape_cast %6 : vector<1x1x96xf32> to vector<1x96xf32>
    %8 = vector.broadcast %7 : vector<1x96xf32> to vector<64x96xf32>
    %9 = arith.addf %5, %8 : vector<64x96xf32>
    %c0_8 = arith.constant 0 : index
    %c0_9 = arith.constant 0 : index
    %c0_10 = arith.constant 0 : index
    %10 = vector.load %arg15[%c0_8, %c0_9, %c0_10] : memref<2x64x96xf32, #tpu.memory_space<vmem>>, vector<1x64x96xf32>
    %11 = vector.shape_cast %10 : vector<1x64x96xf32> to vector<64x96xf32>
    %12 = vector.shape_cast %9 : vector<64x96xf32> to vector<1x64x96xf32>
    tpu.vector_store %arg15[%c0_8, %c0_9, %c0_10], %12 {strides = array<i32>} : memref<2x64x96xf32, #tpu.memory_space<vmem>>, vector<1x64x96xf32>,
    %c1 = arith.constant 1 : index
    %c0_11 = arith.constant 0 : index
    %c0_12 = arith.constant 0 : index
    %13 = vector.load %arg2[%c1, %c0_11, %c0_12] : memref<2x16x96xbf16, #tpu.memory_space<vmem>>, vector<1x16x96xbf16>
    %14 = vector.shape_cast %13 : vector<1x16x96xbf16> to vector<16x96xbf16>
    %cst_13 = arith.constant dense<0.000000e+00> : vector<64x96xf32>
    %15 = tpu.matmul %2, %14, %cst_13 {dimension_numbers = #tpu.dot_dimension_numbers<[1], [0], [0], [1], [0, 0, 1, 1], [], []>} : vector<64x16xbf16>, vector<16x96xbf16>, vector<64x96xf32> -> vector<64x96xf32>
    %c1_14 = arith.constant 1 : index
    %c0_15 = arith.constant 0 : index
    %c0_16 = arith.constant 0 : index
    %16 = vector.load %arg4[%c1_14, %c0_15, %c0_16] : memref<2x1x96xf32, #tpu.memory_space<vmem>>, vector<1x1x96xf32>
    %17 = vector.shape_cast %16 : vector<1x1x96xf32> to vector<1x96xf32>
    %18 = vector.broadcast %17 : vector<1x96xf32> to vector<64x96xf32>
    %19 = arith.addf %15, %18 : vector<64x96xf32>
    %c1_17 = arith.constant 1 : index
    %c0_18 = arith.constant 0 : index
    %c0_19 = arith.constant 0 : index
    %20 = vector.load %arg15[%c1_17, %c0_18, %c0_19] : memref<2x64x96xf32, #tpu.memory_space<vmem>>, vector<1x64x96xf32>
    %21 = vector.shape_cast %20 : vector<1x64x96xf32> to vector<64x96xf32>
    %22 = vector.shape_cast %19 : vector<64x96xf32> to vector<1x64x96xf32>
    tpu.vector_store %arg15[%c1_17, %c0_18, %c0_19], %22 {strides = array<i32>} : memref<2x64x96xf32, #tpu.memory_space<vmem>>, vector<1x64x96xf32>,
    %c0_20 = arith.constant 0 : index
    %c0_21 = arith.constant 0 : index
    %c0_22 = arith.constant 0 : index
    %23 = vector.load %arg3[%c0_20, %c0_21, %c0_22] : memref<2x32x96xbf16, #tpu.memory_space<vmem>>, vector<1x32x96xbf16>
    %24 = vector.shape_cast %23 : vector<1x32x96xbf16> to vector<32x96xbf16>
    %c1_23 = arith.constant 1 : index
    %c0_24 = arith.constant 0 : index
    %c0_25 = arith.constant 0 : index
    %25 = vector.load %arg3[%c1_23, %c0_24, %c0_25] : memref<2x32x96xbf16, #tpu.memory_space<vmem>>, vector<1x32x96xbf16>
    %26 = vector.shape_cast %25 : vector<1x32x96xbf16> to vector<32x96xbf16>
    %c0_26 = arith.constant 0 : index
    %c0_27 = arith.constant 0 : index
    %c0_28 = arith.constant 0 : index
    %27 = vector.load %arg5[%c0_26, %c0_27, %c0_28] : memref<2x1x32xf32, #tpu.memory_space<vmem>>, vector<1x1x32xf32>
    %28 = vector.shape_cast %27 : vector<1x1x32xf32> to vector<1x32xf32>
    %29 = vector.shape_cast %28 : vector<1x32xf32> to vector<1x32xf32>
    %30 = vector.broadcast %29 : vector<1x32xf32> to vector<8x32xf32>
    %c1_29 = arith.constant 1 : index
    %c0_30 = arith.constant 0 : index
    %c0_31 = arith.constant 0 : index
    %31 = vector.load %arg5[%c1_29, %c0_30, %c0_31] : memref<2x1x32xf32, #tpu.memory_space<vmem>>, vector<1x1x32xf32>
    %32 = vector.shape_cast %31 : vector<1x1x32xf32> to vector<1x32xf32>
    %33 = vector.shape_cast %32 : vector<1x32xf32> to vector<1x32xf32>
    %34 = vector.broadcast %33 : vector<1x32xf32> to vector<8x32xf32>
    %cst_32 = arith.constant 0.000000e+00 : f32
    %35 = vector.broadcast %cst_32 : f32 to vector<8x32xf32>
    %c0_33 = arith.constant 0 : index
    %c0_34 = arith.constant 0 : index
    %c0_35 = arith.constant 0 : index
    %36 = vector.load %arg15[%c0_33, %c0_34, %c0_35] : memref<2x64x96xf32, #tpu.memory_space<vmem>>, vector<1x8x96xf32>
    %37 = vector.shape_cast %36 : vector<1x8x96xf32> to vector<8x96xf32>
    %38 = arith.truncf %35 : vector<8x32xf32> to vector<8x32xbf16>
    %cst_36 = arith.constant dense<0.000000e+00> : vector<8x96xf32>
    %39 = tpu.matmul %38, %24, %cst_36 {dimension_numbers = #tpu.dot_dimension_numbers<[1], [0], [0], [1], [0, 0, 1, 1], [], []>} : vector<8x32xbf16>, vector<32x96xbf16>, vector<8x96xf32> -> vector<8x96xf32>
    %40 = vector.extract_strided_slice %37 {offsets = [0, 0], sizes = [8, 64], strides = [1, 1]} : vector<8x96xf32> to vector<8x64xf32>
    %41 = vector.extract_strided_slice %39 {offsets = [0, 0], sizes = [8, 64], strides = [1, 1]} : vector<8x96xf32> to vector<8x64xf32>
    %42 = arith.addf %40, %41 : vector<8x64xf32>
    %cst_37 = arith.constant 5.000000e-01 : f32
    %43 = vector.broadcast %cst_37 : f32 to vector<8x64xf32>
    %44 = arith.mulf %43, %42 : vector<8x64xf32>
    %45 = math.tanh %44 : vector<8x64xf32>
    %cst_38 = arith.constant 1.000000e+00 : f32
    %46 = vector.broadcast %cst_38 : f32 to vector<8x64xf32>
    %47 = arith.addf %45, %46 : vector<8x64xf32>
    %cst_39 = arith.constant 5.000000e-01 : f32
    %48 = vector.broadcast %cst_39 : f32 to vector<8x64xf32>
    %49 = arith.mulf %48, %47 : vector<8x64xf32>
    %50 = vector.extract_strided_slice %49 {offsets = [0, 0], sizes = [8, 32], strides = [1, 1]} : vector<8x64xf32> to vector<8x32xf32>
    %51 = vector.extract_strided_slice %49 {offsets = [0, 32], sizes = [8, 32], strides = [1, 1]} : vector<8x64xf32> to vector<8x32xf32>
    %52 = vector.extract_strided_slice %37 {offsets = [0, 64], sizes = [8, 32], strides = [1, 1]} : vector<8x96xf32> to vector<8x32xf32>
    %53 = vector.extract_strided_slice %39 {offsets = [0, 64], sizes = [8, 32], strides = [1, 1]} : vector<8x96xf32> to vector<8x32xf32>
    %54 = arith.addf %53, %30 : vector<8x32xf32>
    %55 = arith.mulf %50, %54 : vector<8x32xf32>
    %56 = arith.addf %52, %55 : vector<8x32xf32>
    %57 = math.tanh %56 : vector<8x32xf32>
    %58 = arith.subf %35, %57 : vector<8x32xf32>
    %59 = arith.mulf %51, %58 : vector<8x32xf32>
    %60 = arith.addf %57, %59 : vector<8x32xf32>
    %c1_40 = arith.constant 1 : index
    %c56 = arith.constant 56 : index
    %c0_41 = arith.constant 0 : index
    %61 = vector.load %arg15[%c1_40, %c56, %c0_41] : memref<2x64x96xf32, #tpu.memory_space<vmem>>, vector<1x8x96xf32>
    %62 = vector.shape_cast %61 : vector<1x8x96xf32> to vector<8x96xf32>
    %63 = arith.truncf %35 : vector<8x32xf32> to vector<8x32xbf16>
    %cst_42 = arith.constant dense<0.000000e+00> : vector<8x96xf32>
    %64 = tpu.matmul %63, %26, %cst_42 {dimension_numbers = #tpu.dot_dimension_numbers<[1], [0], [0], [1], [0, 0, 1, 1], [], []>} : vector<8x32xbf16>, vector<32x96xbf16>, vector<8x96xf32> -> vector<8x96xf32>
    %65 = vector.extract_strided_slice %62 {offsets = [0, 0], sizes = [8, 64], strides = [1, 1]} : vector<8x96xf32> to vector<8x64xf32>
    %66 = vector.extract_strided_slice %64 {offsets = [0, 0], sizes = [8, 64], strides = [1, 1]} : vector<8x96xf32> to vector<8x64xf32>
    %67 = arith.addf %65, %66 : vector<8x64xf32>
    %cst_43 = arith.constant 5.000000e-01 : f32
    %68 = vector.broadcast %cst_43 : f32 to vector<8x64xf32>
    %69 = arith.mulf %68, %67 : vector<8x64xf32>
    %70 = math.tanh %69 : vector<8x64xf32>
    %cst_44 = arith.constant 1.000000e+00 : f32
    %71 = vector.broadcast %cst_44 : f32 to vector<8x64xf32>
    %72 = arith.addf %70, %71 : vector<8x64xf32>
    %cst_45 = arith.constant 5.000000e-01 : f32
    %73 = vector.broadcast %cst_45 : f32 to vector<8x64xf32>
    %74 = arith.mulf %73, %72 : vector<8x64xf32>
    %75 = vector.extract_strided_slice %74 {offsets = [0, 0], sizes = [8, 32], strides = [1, 1]} : vector<8x64xf32> to vector<8x32xf32>
    %76 = vector.extract_strided_slice %74 {offsets = [0, 32], sizes = [8, 32], strides = [1, 1]} : vector<8x64xf32> to vector<8x32xf32>
    %77 = vector.extract_strided_slice %62 {offsets = [0, 64], sizes = [8, 32], strides = [1, 1]} : vector<8x96xf32> to vector<8x32xf32>
    %78 = vector.extract_strided_slice %64 {offsets = [0, 64], sizes = [8, 32], strides = [1, 1]} : vector<8x96xf32> to vector<8x32xf32>
    %79 = arith.addf %78, %34 : vector<8x32xf32>
    %80 = arith.mulf %75, %79 : vector<8x32xf32>
    %81 = arith.addf %77, %80 : vector<8x32xf32>
    %82 = math.tanh %81 : vector<8x32xf32>
    %83 = arith.subf %35, %82 : vector<8x32xf32>
    %84 = arith.mulf %76, %83 : vector<8x32xf32>
    %85 = arith.addf %82, %84 : vector<8x32xf32>
    %c0_46 = arith.constant 0 : index
    %c0_47 = arith.constant 0 : index
    %86 = vector.load %arg16[%c0_46, %c0_47] : memref<64x32xf32, #tpu.memory_space<vmem>>, vector<8x32xf32>
    tpu.vector_store %arg16[%c0_46, %c0_47], %60 {strides = array<i32>} : memref<64x32xf32, #tpu.memory_space<vmem>>, vector<8x32xf32>,
    %c56_48 = arith.constant 56 : index
    %c0_49 = arith.constant 0 : index
    %87 = vector.load %arg17[%c56_48, %c0_49] : memref<64x32xf32, #tpu.memory_space<vmem>>, vector<8x32xf32>
    tpu.vector_store %arg17[%c56_48, %c0_49], %85 {strides = array<i32>} : memref<64x32xf32, #tpu.memory_space<vmem>>, vector<8x32xf32>,
    %c0_50 = arith.constant 0 : index
    %c8 = arith.constant 8 : index
    %c0_51 = arith.constant 0 : index
    %88 = vector.load %arg15[%c0_50, %c8, %c0_51] : memref<2x64x96xf32, #tpu.memory_space<vmem>>, vector<1x8x96xf32>
    %89 = vector.shape_cast %88 : vector<1x8x96xf32> to vector<8x96xf32>
    %90 = arith.truncf %60 : vector<8x32xf32> to vector<8x32xbf16>
    %cst_52 = arith.constant dense<0.000000e+00> : vector<8x96xf32>
    %91 = tpu.matmul %90, %24, %cst_52 {dimension_numbers = #tpu.dot_dimension_numbers<[1], [0], [0], [1], [0, 0, 1, 1], [], []>} : vector<8x32xbf16>, vector<32x96xbf16>, vector<8x96xf32> -> vector<8x96xf32>
    %92 = vector.extract_strided_slice %89 {offsets = [0, 0], sizes = [8, 64], strides = [1, 1]} : vector<8x96xf32> to vector<8x64xf32>
    %93 = vector.extract_strided_slice %91 {offsets = [0, 0], sizes = [8, 64], strides = [1, 1]} : vector<8x96xf32> to vector<8x64xf32>
    %94 = arith.addf %92, %93 : vector<8x64xf32>
    %cst_53 = arith.constant 5.000000e-01 : f32
    %95 = vector.broadcast %cst_53 : f32 to vector<8x64xf32>
    %96 = arith.mulf %95, %94 : vector<8x64xf32>
    %97 = math.tanh %96 : vector<8x64xf32>
    %cst_54 = arith.constant 1.000000e+00 : f32
    %98 = vector.broadcast %cst_54 : f32 to vector<8x64xf32>
    %99 = arith.addf %97, %98 : vector<8x64xf32>
    %cst_55 = arith.constant 5.000000e-01 : f32
    %100 = vector.broadcast %cst_55 : f32 to vector<8x64xf32>
    %101 = arith.mulf %100, %99 : vector<8x64xf32>
    %102 = vector.extract_strided_slice %101 {offsets = [0, 0], sizes = [8, 32], strides = [1, 1]} : vector<8x64xf32> to vector<8x32xf32>
    %103 = vector.extract_strided_slice %101 {offsets = [0, 32], sizes = [8, 32], strides = [1, 1]} : vector<8x64xf32> to vector<8x32xf32>
    %104 = vector.extract_strided_slice %89 {offsets = [0, 64], sizes = [8, 32], strides = [1, 1]} : vector<8x96xf32> to vector<8x32xf32>
    %105 = vector.extract_strided_slice %91 {offsets = [0, 64], sizes = [8, 32], strides = [1, 1]} : vector<8x96xf32> to vector<8x32xf32>
    %106 = arith.addf %105, %30 : vector<8x32xf32>
    %107 = arith.mulf %102, %106 : vector<8x32xf32>
    %108 = arith.addf %104, %107 : vector<8x32xf32>
    %109 = math.tanh %108 : vector<8x32xf32>
    %110 = arith.subf %60, %109 : vector<8x32xf32>
    %111 = arith.mulf %103, %110 : vector<8x32xf32>
    %112 = arith.addf %109, %111 : vector<8x32xf32>
    %c1_56 = arith.constant 1 : index
    %c48 = arith.constant 48 : index
    %c0_57 = arith.constant 0 : index
    %113 = vector.load %arg15[%c1_56, %c48, %c0_57] : memref<2x64x96xf32, #tpu.memory_space<vmem>>, vector<1x8x96xf32>
    %114 = vector.shape_cast %113 : vector<1x8x96xf32> to vector<8x96xf32>
    %115 = arith.truncf %85 : vector<8x32xf32> to vector<8x32xbf16>
    %cst_58 = arith.constant dense<0.000000e+00> : vector<8x96xf32>
    %116 = tpu.matmul %115, %26, %cst_58 {dimension_numbers = #tpu.dot_dimension_numbers<[1], [0], [0], [1], [0, 0, 1, 1], [], []>} : vector<8x32xbf16>, vector<32x96xbf16>, vector<8x96xf32> -> vector<8x96xf32>
    %117 = vector.extract_strided_slice %114 {offsets = [0, 0], sizes = [8, 64], strides = [1, 1]} : vector<8x96xf32> to vector<8x64xf32>
    %118 = vector.extract_strided_slice %116 {offsets = [0, 0], sizes = [8, 64], strides = [1, 1]} : vector<8x96xf32> to vector<8x64xf32>
    %119 = arith.addf %117, %118 : vector<8x64xf32>
    %cst_59 = arith.constant 5.000000e-01 : f32
    %120 = vector.broadcast %cst_59 : f32 to vector<8x64xf32>
    %121 = arith.mulf %120, %119 : vector<8x64xf32>
    %122 = math.tanh %121 : vector<8x64xf32>
    %cst_60 = arith.constant 1.000000e+00 : f32
    %123 = vector.broadcast %cst_60 : f32 to vector<8x64xf32>
    %124 = arith.addf %122, %123 : vector<8x64xf32>
    %cst_61 = arith.constant 5.000000e-01 : f32
    %125 = vector.broadcast %cst_61 : f32 to vector<8x64xf32>
    %126 = arith.mulf %125, %124 : vector<8x64xf32>
    %127 = vector.extract_strided_slice %126 {offsets = [0, 0], sizes = [8, 32], strides = [1, 1]} : vector<8x64xf32> to vector<8x32xf32>
    %128 = vector.extract_strided_slice %126 {offsets = [0, 32], sizes = [8, 32], strides = [1, 1]} : vector<8x64xf32> to vector<8x32xf32>
    %129 = vector.extract_strided_slice %114 {offsets = [0, 64], sizes = [8, 32], strides = [1, 1]} : vector<8x96xf32> to vector<8x32xf32>
    %130 = vector.extract_strided_slice %116 {offsets = [0, 64], sizes = [8, 32], strides = [1, 1]} : vector<8x96xf32> to vector<8x32xf32>
    %131 = arith.addf %130, %34 : vector<8x32xf32>
    %132 = arith.mulf %127, %131 : vector<8x32xf32>
    %133 = arith.addf %129, %132 : vector<8x32xf32>
    %134 = math.tanh %133 : vector<8x32xf32>
    %135 = arith.subf %85, %134 : vector<8x32xf32>
    %136 = arith.mulf %128, %135 : vector<8x32xf32>
    %137 = arith.addf %134, %136 : vector<8x32xf32>
    %c8_62 = arith.constant 8 : index
    %c0_63 = arith.constant 0 : index
    %138 = vector.load %arg16[%c8_62, %c0_63] : memref<64x32xf32, #tpu.memory_space<vmem>>, vector<8x32xf32>
    tpu.vector_store %arg16[%c8_62, %c0_63], %112 {strides = array<i32>} : memref<64x32xf32, #tpu.memory_space<vmem>>, vector<8x32xf32>,
    %c48_64 = arith.constant 48 : index
    %c0_65 = arith.constant 0 : index
    %139 = vector.load %arg17[%c48_64, %c0_65] : memref<64x32xf32, #tpu.memory_space<vmem>>, vector<8x32xf32>
    tpu.vector_store %arg17[%c48_64, %c0_65], %137 {strides = array<i32>} : memref<64x32xf32, #tpu.memory_space<vmem>>, vector<8x32xf32>,
    %c0_66 = arith.constant 0 : index
    %c16 = arith.constant 16 : index
    %c0_67 = arith.constant 0 : index
    %140 = vector.load %arg15[%c0_66, %c16, %c0_67] : memref<2x64x96xf32, #tpu.memory_space<vmem>>, vector<1x8x96xf32>
    %141 = vector.shape_cast %140 : vector<1x8x96xf32> to vector<8x96xf32>
    %142 = arith.truncf %112 : vector<8x32xf32> to vector<8x32xbf16>
    %cst_68 = arith.constant dense<0.000000e+00> : vector<8x96xf32>
    %143 = tpu.matmul %142, %24, %cst_68 {dimension_numbers = #tpu.dot_dimension_numbers<[1], [0], [0], [1], [0, 0, 1, 1], [], []>} : vector<8x32xbf16>, vector<32x96xbf16>, vector<8x96xf32> -> vector<8x96xf32>
    %144 = vector.extract_strided_slice %141 {offsets = [0, 0], sizes = [8, 64], strides = [1, 1]} : vector<8x96xf32> to vector<8x64xf32>
    %145 = vector.extract_strided_slice %143 {offsets = [0, 0], sizes = [8, 64], strides = [1, 1]} : vector<8x96xf32> to vector<8x64xf32>
    %146 = arith.addf %144, %145 : vector<8x64xf32>
    %cst_69 = arith.constant 5.000000e-01 : f32
    %147 = vector.broadcast %cst_69 : f32 to vector<8x64xf32>
    %148 = arith.mulf %147, %146 : vector<8x64xf32>
    %149 = math.tanh %148 : vector<8x64xf32>
    %cst_70 = arith.constant 1.000000e+00 : f32
    %150 = vector.broadcast %cst_70 : f32 to vector<8x64xf32>
    %151 = arith.addf %149, %150 : vector<8x64xf32>
    %cst_71 = arith.constant 5.000000e-01 : f32
    %152 = vector.broadcast %cst_71 : f32 to vector<8x64xf32>
    %153 = arith.mulf %152, %151 : vector<8x64xf32>
    %154 = vector.extract_strided_slice %153 {offsets = [0, 0], sizes = [8, 32], strides = [1, 1]} : vector<8x64xf32> to vector<8x32xf32>
    %155 = vector.extract_strided_slice %153 {offsets = [0, 32], sizes = [8, 32], strides = [1, 1]} : vector<8x64xf32> to vector<8x32xf32>
    %156 = vector.extract_strided_slice %141 {offsets = [0, 64], sizes = [8, 32], strides = [1, 1]} : vector<8x96xf32> to vector<8x32xf32>
    %157 = vector.extract_strided_slice %143 {offsets = [0, 64], sizes = [8, 32], strides = [1, 1]} : vector<8x96xf32> to vector<8x32xf32>
    %158 = arith.addf %157, %30 : vector<8x32xf32>
    %159 = arith.mulf %154, %158 : vector<8x32xf32>
    %160 = arith.addf %156, %159 : vector<8x32xf32>
    %161 = math.tanh %160 : vector<8x32xf32>
    %162 = arith.subf %112, %161 : vector<8x32xf32>
    %163 = arith.mulf %155, %162 : vector<8x32xf32>
    %164 = arith.addf %161, %163 : vector<8x32xf32>
    %c1_72 = arith.constant 1 : index
    %c40 = arith.constant 40 : index
    %c0_73 = arith.constant 0 : index
    %165 = vector.load %arg15[%c1_72, %c40, %c0_73] : memref<2x64x96xf32, #tpu.memory_space<vmem>>, vector<1x8x96xf32>
    %166 = vector.shape_cast %165 : vector<1x8x96xf32> to vector<8x96xf32>
    %167 = arith.truncf %137 : vector<8x32xf32> to vector<8x32xbf16>
    %cst_74 = arith.constant dense<0.000000e+00> : vector<8x96xf32>
    %168 = tpu.matmul %167, %26, %cst_74 {dimension_numbers = #tpu.dot_dimension_numbers<[1], [0], [0], [1], [0, 0, 1, 1], [], []>} : vector<8x32xbf16>, vector<32x96xbf16>, vector<8x96xf32> -> vector<8x96xf32>
    %169 = vector.extract_strided_slice %166 {offsets = [0, 0], sizes = [8, 64], strides = [1, 1]} : vector<8x96xf32> to vector<8x64xf32>
    %170 = vector.extract_strided_slice %168 {offsets = [0, 0], sizes = [8, 64], strides = [1, 1]} : vector<8x96xf32> to vector<8x64xf32>
    %171 = arith.addf %169, %170 : vector<8x64xf32>
    %cst_75 = arith.constant 5.000000e-01 : f32
    %172 = vector.broadcast %cst_75 : f32 to vector<8x64xf32>
    %173 = arith.mulf %172, %171 : vector<8x64xf32>
    %174 = math.tanh %173 : vector<8x64xf32>
    %cst_76 = arith.constant 1.000000e+00 : f32
    %175 = vector.broadcast %cst_76 : f32 to vector<8x64xf32>
    %176 = arith.addf %174, %175 : vector<8x64xf32>
    %cst_77 = arith.constant 5.000000e-01 : f32
    %177 = vector.broadcast %cst_77 : f32 to vector<8x64xf32>
    %178 = arith.mulf %177, %176 : vector<8x64xf32>
    %179 = vector.extract_strided_slice %178 {offsets = [0, 0], sizes = [8, 32], strides = [1, 1]} : vector<8x64xf32> to vector<8x32xf32>
    %180 = vector.extract_strided_slice %178 {offsets = [0, 32], sizes = [8, 32], strides = [1, 1]} : vector<8x64xf32> to vector<8x32xf32>
    %181 = vector.extract_strided_slice %166 {offsets = [0, 64], sizes = [8, 32], strides = [1, 1]} : vector<8x96xf32> to vector<8x32xf32>
    %182 = vector.extract_strided_slice %168 {offsets = [0, 64], sizes = [8, 32], strides = [1, 1]} : vector<8x96xf32> to vector<8x32xf32>
    %183 = arith.addf %182, %34 : vector<8x32xf32>
    %184 = arith.mulf %179, %183 : vector<8x32xf32>
    %185 = arith.addf %181, %184 : vector<8x32xf32>
    %186 = math.tanh %185 : vector<8x32xf32>
    %187 = arith.subf %137, %186 : vector<8x32xf32>
    %188 = arith.mulf %180, %187 : vector<8x32xf32>
    %189 = arith.addf %186, %188 : vector<8x32xf32>
    %c16_78 = arith.constant 16 : index
    %c0_79 = arith.constant 0 : index
    %190 = vector.load %arg16[%c16_78, %c0_79] : memref<64x32xf32, #tpu.memory_space<vmem>>, vector<8x32xf32>
    tpu.vector_store %arg16[%c16_78, %c0_79], %164 {strides = array<i32>} : memref<64x32xf32, #tpu.memory_space<vmem>>, vector<8x32xf32>,
    %c40_80 = arith.constant 40 : index
    %c0_81 = arith.constant 0 : index
    %191 = vector.load %arg17[%c40_80, %c0_81] : memref<64x32xf32, #tpu.memory_space<vmem>>, vector<8x32xf32>
    tpu.vector_store %arg17[%c40_80, %c0_81], %189 {strides = array<i32>} : memref<64x32xf32, #tpu.memory_space<vmem>>, vector<8x32xf32>,
    %c0_82 = arith.constant 0 : index
    %c24 = arith.constant 24 : index
    %c0_83 = arith.constant 0 : index
    %192 = vector.load %arg15[%c0_82, %c24, %c0_83] : memref<2x64x96xf32, #tpu.memory_space<vmem>>, vector<1x8x96xf32>
    %193 = vector.shape_cast %192 : vector<1x8x96xf32> to vector<8x96xf32>
    %194 = arith.truncf %164 : vector<8x32xf32> to vector<8x32xbf16>
    %cst_84 = arith.constant dense<0.000000e+00> : vector<8x96xf32>
    %195 = tpu.matmul %194, %24, %cst_84 {dimension_numbers = #tpu.dot_dimension_numbers<[1], [0], [0], [1], [0, 0, 1, 1], [], []>} : vector<8x32xbf16>, vector<32x96xbf16>, vector<8x96xf32> -> vector<8x96xf32>
    %196 = vector.extract_strided_slice %193 {offsets = [0, 0], sizes = [8, 64], strides = [1, 1]} : vector<8x96xf32> to vector<8x64xf32>
    %197 = vector.extract_strided_slice %195 {offsets = [0, 0], sizes = [8, 64], strides = [1, 1]} : vector<8x96xf32> to vector<8x64xf32>
    %198 = arith.addf %196, %197 : vector<8x64xf32>
    %cst_85 = arith.constant 5.000000e-01 : f32
    %199 = vector.broadcast %cst_85 : f32 to vector<8x64xf32>
    %200 = arith.mulf %199, %198 : vector<8x64xf32>
    %201 = math.tanh %200 : vector<8x64xf32>
    %cst_86 = arith.constant 1.000000e+00 : f32
    %202 = vector.broadcast %cst_86 : f32 to vector<8x64xf32>
    %203 = arith.addf %201, %202 : vector<8x64xf32>
    %cst_87 = arith.constant 5.000000e-01 : f32
    %204 = vector.broadcast %cst_87 : f32 to vector<8x64xf32>
    %205 = arith.mulf %204, %203 : vector<8x64xf32>
    %206 = vector.extract_strided_slice %205 {offsets = [0, 0], sizes = [8, 32], strides = [1, 1]} : vector<8x64xf32> to vector<8x32xf32>
    %207 = vector.extract_strided_slice %205 {offsets = [0, 32], sizes = [8, 32], strides = [1, 1]} : vector<8x64xf32> to vector<8x32xf32>
    %208 = vector.extract_strided_slice %193 {offsets = [0, 64], sizes = [8, 32], strides = [1, 1]} : vector<8x96xf32> to vector<8x32xf32>
    %209 = vector.extract_strided_slice %195 {offsets = [0, 64], sizes = [8, 32], strides = [1, 1]} : vector<8x96xf32> to vector<8x32xf32>
    %210 = arith.addf %209, %30 : vector<8x32xf32>
    %211 = arith.mulf %206, %210 : vector<8x32xf32>
    %212 = arith.addf %208, %211 : vector<8x32xf32>
    %213 = math.tanh %212 : vector<8x32xf32>
    %214 = arith.subf %164, %213 : vector<8x32xf32>
    %215 = arith.mulf %207, %214 : vector<8x32xf32>
    %216 = arith.addf %213, %215 : vector<8x32xf32>
    %c1_88 = arith.constant 1 : index
    %c32 = arith.constant 32 : index
    %c0_89 = arith.constant 0 : index
    %217 = vector.load %arg15[%c1_88, %c32, %c0_89] : memref<2x64x96xf32, #tpu.memory_space<vmem>>, vector<1x8x96xf32>
    %218 = vector.shape_cast %217 : vector<1x8x96xf32> to vector<8x96xf32>
    %219 = arith.truncf %189 : vector<8x32xf32> to vector<8x32xbf16>
    %cst_90 = arith.constant dense<0.000000e+00> : vector<8x96xf32>
    %220 = tpu.matmul %219, %26, %cst_90 {dimension_numbers = #tpu.dot_dimension_numbers<[1], [0], [0], [1], [0, 0, 1, 1], [], []>} : vector<8x32xbf16>, vector<32x96xbf16>, vector<8x96xf32> -> vector<8x96xf32>
    %221 = vector.extract_strided_slice %218 {offsets = [0, 0], sizes = [8, 64], strides = [1, 1]} : vector<8x96xf32> to vector<8x64xf32>
    %222 = vector.extract_strided_slice %220 {offsets = [0, 0], sizes = [8, 64], strides = [1, 1]} : vector<8x96xf32> to vector<8x64xf32>
    %223 = arith.addf %221, %222 : vector<8x64xf32>
    %cst_91 = arith.constant 5.000000e-01 : f32
    %224 = vector.broadcast %cst_91 : f32 to vector<8x64xf32>
    %225 = arith.mulf %224, %223 : vector<8x64xf32>
    %226 = math.tanh %225 : vector<8x64xf32>
    %cst_92 = arith.constant 1.000000e+00 : f32
    %227 = vector.broadcast %cst_92 : f32 to vector<8x64xf32>
    %228 = arith.addf %226, %227 : vector<8x64xf32>
    %cst_93 = arith.constant 5.000000e-01 : f32
    %229 = vector.broadcast %cst_93 : f32 to vector<8x64xf32>
    %230 = arith.mulf %229, %228 : vector<8x64xf32>
    %231 = vector.extract_strided_slice %230 {offsets = [0, 0], sizes = [8, 32], strides = [1, 1]} : vector<8x64xf32> to vector<8x32xf32>
    %232 = vector.extract_strided_slice %230 {offsets = [0, 32], sizes = [8, 32], strides = [1, 1]} : vector<8x64xf32> to vector<8x32xf32>
    %233 = vector.extract_strided_slice %218 {offsets = [0, 64], sizes = [8, 32], strides = [1, 1]} : vector<8x96xf32> to vector<8x32xf32>
    %234 = vector.extract_strided_slice %220 {offsets = [0, 64], sizes = [8, 32], strides = [1, 1]} : vector<8x96xf32> to vector<8x32xf32>
    %235 = arith.addf %234, %34 : vector<8x32xf32>
    %236 = arith.mulf %231, %235 : vector<8x32xf32>
    %237 = arith.addf %233, %236 : vector<8x32xf32>
    %238 = math.tanh %237 : vector<8x32xf32>
    %239 = arith.subf %189, %238 : vector<8x32xf32>
    %240 = arith.mulf %232, %239 : vector<8x32xf32>
    %241 = arith.addf %238, %240 : vector<8x32xf32>
    %c24_94 = arith.constant 24 : index
    %c0_95 = arith.constant 0 : index
    %242 = vector.load %arg16[%c24_94, %c0_95] : memref<64x32xf32, #tpu.memory_space<vmem>>, vector<8x32xf32>
    tpu.vector_store %arg16[%c24_94, %c0_95], %216 {strides = array<i32>} : memref<64x32xf32, #tpu.memory_space<vmem>>, vector<8x32xf32>,
    %c32_96 = arith.constant 32 : index
    %c0_97 = arith.constant 0 : index
    %243 = vector.load %arg17[%c32_96, %c0_97] : memref<64x32xf32, #tpu.memory_space<vmem>>, vector<8x32xf32>
    tpu.vector_store %arg17[%c32_96, %c0_97], %241 {strides = array<i32>} : memref<64x32xf32, #tpu.memory_space<vmem>>, vector<8x32xf32>,
    %c0_98 = arith.constant 0 : index
    %c32_99 = arith.constant 32 : index
    %c0_100 = arith.constant 0 : index
    %244 = vector.load %arg15[%c0_98, %c32_99, %c0_100] : memref<2x64x96xf32, #tpu.memory_space<vmem>>, vector<1x8x96xf32>
    %245 = vector.shape_cast %244 : vector<1x8x96xf32> to vector<8x96xf32>
    %246 = arith.truncf %216 : vector<8x32xf32> to vector<8x32xbf16>
    %cst_101 = arith.constant dense<0.000000e+00> : vector<8x96xf32>
    %247 = tpu.matmul %246, %24, %cst_101 {dimension_numbers = #tpu.dot_dimension_numbers<[1], [0], [0], [1], [0, 0, 1, 1], [], []>} : vector<8x32xbf16>, vector<32x96xbf16>, vector<8x96xf32> -> vector<8x96xf32>
    %248 = vector.extract_strided_slice %245 {offsets = [0, 0], sizes = [8, 64], strides = [1, 1]} : vector<8x96xf32> to vector<8x64xf32>
    %249 = vector.extract_strided_slice %247 {offsets = [0, 0], sizes = [8, 64], strides = [1, 1]} : vector<8x96xf32> to vector<8x64xf32>
    %250 = arith.addf %248, %249 : vector<8x64xf32>
    %cst_102 = arith.constant 5.000000e-01 : f32
    %251 = vector.broadcast %cst_102 : f32 to vector<8x64xf32>
    %252 = arith.mulf %251, %250 : vector<8x64xf32>
    %253 = math.tanh %252 : vector<8x64xf32>
    %cst_103 = arith.constant 1.000000e+00 : f32
    %254 = vector.broadcast %cst_103 : f32 to vector<8x64xf32>
    %255 = arith.addf %253, %254 : vector<8x64xf32>
    %cst_104 = arith.constant 5.000000e-01 : f32
    %256 = vector.broadcast %cst_104 : f32 to vector<8x64xf32>
    %257 = arith.mulf %256, %255 : vector<8x64xf32>
    %258 = vector.extract_strided_slice %257 {offsets = [0, 0], sizes = [8, 32], strides = [1, 1]} : vector<8x64xf32> to vector<8x32xf32>
    %259 = vector.extract_strided_slice %257 {offsets = [0, 32], sizes = [8, 32], strides = [1, 1]} : vector<8x64xf32> to vector<8x32xf32>
    %260 = vector.extract_strided_slice %245 {offsets = [0, 64], sizes = [8, 32], strides = [1, 1]} : vector<8x96xf32> to vector<8x32xf32>
    %261 = vector.extract_strided_slice %247 {offsets = [0, 64], sizes = [8, 32], strides = [1, 1]} : vector<8x96xf32> to vector<8x32xf32>
    %262 = arith.addf %261, %30 : vector<8x32xf32>
    %263 = arith.mulf %258, %262 : vector<8x32xf32>
    %264 = arith.addf %260, %263 : vector<8x32xf32>
    %265 = math.tanh %264 : vector<8x32xf32>
    %266 = arith.subf %216, %265 : vector<8x32xf32>
    %267 = arith.mulf %259, %266 : vector<8x32xf32>
    %268 = arith.addf %265, %267 : vector<8x32xf32>
    %c1_105 = arith.constant 1 : index
    %c24_106 = arith.constant 24 : index
    %c0_107 = arith.constant 0 : index
    %269 = vector.load %arg15[%c1_105, %c24_106, %c0_107] : memref<2x64x96xf32, #tpu.memory_space<vmem>>, vector<1x8x96xf32>
    %270 = vector.shape_cast %269 : vector<1x8x96xf32> to vector<8x96xf32>
    %271 = arith.truncf %241 : vector<8x32xf32> to vector<8x32xbf16>
    %cst_108 = arith.constant dense<0.000000e+00> : vector<8x96xf32>
    %272 = tpu.matmul %271, %26, %cst_108 {dimension_numbers = #tpu.dot_dimension_numbers<[1], [0], [0], [1], [0, 0, 1, 1], [], []>} : vector<8x32xbf16>, vector<32x96xbf16>, vector<8x96xf32> -> vector<8x96xf32>
    %273 = vector.extract_strided_slice %270 {offsets = [0, 0], sizes = [8, 64], strides = [1, 1]} : vector<8x96xf32> to vector<8x64xf32>
    %274 = vector.extract_strided_slice %272 {offsets = [0, 0], sizes = [8, 64], strides = [1, 1]} : vector<8x96xf32> to vector<8x64xf32>
    %275 = arith.addf %273, %274 : vector<8x64xf32>
    %cst_109 = arith.constant 5.000000e-01 : f32
    %276 = vector.broadcast %cst_109 : f32 to vector<8x64xf32>
    %277 = arith.mulf %276, %275 : vector<8x64xf32>
    %278 = math.tanh %277 : vector<8x64xf32>
    %cst_110 = arith.constant 1.000000e+00 : f32
    %279 = vector.broadcast %cst_110 : f32 to vector<8x64xf32>
    %280 = arith.addf %278, %279 : vector<8x64xf32>
    %cst_111 = arith.constant 5.000000e-01 : f32
    %281 = vector.broadcast %cst_111 : f32 to vector<8x64xf32>
    %282 = arith.mulf %281, %280 : vector<8x64xf32>
    %283 = vector.extract_strided_slice %282 {offsets = [0, 0], sizes = [8, 32], strides = [1, 1]} : vector<8x64xf32> to vector<8x32xf32>
    %284 = vector.extract_strided_slice %282 {offsets = [0, 32], sizes = [8, 32], strides = [1, 1]} : vector<8x64xf32> to vector<8x32xf32>
    %285 = vector.extract_strided_slice %270 {offsets = [0, 64], sizes = [8, 32], strides = [1, 1]} : vector<8x96xf32> to vector<8x32xf32>
    %286 = vector.extract_strided_slice %272 {offsets = [0, 64], sizes = [8, 32], strides = [1, 1]} : vector<8x96xf32> to vector<8x32xf32>
    %287 = arith.addf %286, %34 : vector<8x32xf32>
    %288 = arith.mulf %283, %287 : vector<8x32xf32>
    %289 = arith.addf %285, %288 : vector<8x32xf32>
    %290 = math.tanh %289 : vector<8x32xf32>
    %291 = arith.subf %241, %290 : vector<8x32xf32>
    %292 = arith.mulf %284, %291 : vector<8x32xf32>
    %293 = arith.addf %290, %292 : vector<8x32xf32>
    %c32_112 = arith.constant 32 : index
    %c0_113 = arith.constant 0 : index
    %294 = vector.load %arg16[%c32_112, %c0_113] : memref<64x32xf32, #tpu.memory_space<vmem>>, vector<8x32xf32>
    tpu.vector_store %arg16[%c32_112, %c0_113], %268 {strides = array<i32>} : memref<64x32xf32, #tpu.memory_space<vmem>>, vector<8x32xf32>,
    %c24_114 = arith.constant 24 : index
    %c0_115 = arith.constant 0 : index
    %295 = vector.load %arg17[%c24_114, %c0_115] : memref<64x32xf32, #tpu.memory_space<vmem>>, vector<8x32xf32>
    tpu.vector_store %arg17[%c24_114, %c0_115], %293 {strides = array<i32>} : memref<64x32xf32, #tpu.memory_space<vmem>>, vector<8x32xf32>,
    %c0_116 = arith.constant 0 : index
    %c40_117 = arith.constant 40 : index
    %c0_118 = arith.constant 0 : index
    %296 = vector.load %arg15[%c0_116, %c40_117, %c0_118] : memref<2x64x96xf32, #tpu.memory_space<vmem>>, vector<1x8x96xf32>
    %297 = vector.shape_cast %296 : vector<1x8x96xf32> to vector<8x96xf32>
    %298 = arith.truncf %268 : vector<8x32xf32> to vector<8x32xbf16>
    %cst_119 = arith.constant dense<0.000000e+00> : vector<8x96xf32>
    %299 = tpu.matmul %298, %24, %cst_119 {dimension_numbers = #tpu.dot_dimension_numbers<[1], [0], [0], [1], [0, 0, 1, 1], [], []>} : vector<8x32xbf16>, vector<32x96xbf16>, vector<8x96xf32> -> vector<8x96xf32>
    %300 = vector.extract_strided_slice %297 {offsets = [0, 0], sizes = [8, 64], strides = [1, 1]} : vector<8x96xf32> to vector<8x64xf32>
    %301 = vector.extract_strided_slice %299 {offsets = [0, 0], sizes = [8, 64], strides = [1, 1]} : vector<8x96xf32> to vector<8x64xf32>
    %302 = arith.addf %300, %301 : vector<8x64xf32>
    %cst_120 = arith.constant 5.000000e-01 : f32
    %303 = vector.broadcast %cst_120 : f32 to vector<8x64xf32>
    %304 = arith.mulf %303, %302 : vector<8x64xf32>
    %305 = math.tanh %304 : vector<8x64xf32>
    %cst_121 = arith.constant 1.000000e+00 : f32
    %306 = vector.broadcast %cst_121 : f32 to vector<8x64xf32>
    %307 = arith.addf %305, %306 : vector<8x64xf32>
    %cst_122 = arith.constant 5.000000e-01 : f32
    %308 = vector.broadcast %cst_122 : f32 to vector<8x64xf32>
    %309 = arith.mulf %308, %307 : vector<8x64xf32>
    %310 = vector.extract_strided_slice %309 {offsets = [0, 0], sizes = [8, 32], strides = [1, 1]} : vector<8x64xf32> to vector<8x32xf32>
    %311 = vector.extract_strided_slice %309 {offsets = [0, 32], sizes = [8, 32], strides = [1, 1]} : vector<8x64xf32> to vector<8x32xf32>
    %312 = vector.extract_strided_slice %297 {offsets = [0, 64], sizes = [8, 32], strides = [1, 1]} : vector<8x96xf32> to vector<8x32xf32>
    %313 = vector.extract_strided_slice %299 {offsets = [0, 64], sizes = [8, 32], strides = [1, 1]} : vector<8x96xf32> to vector<8x32xf32>
    %314 = arith.addf %313, %30 : vector<8x32xf32>
    %315 = arith.mulf %310, %314 : vector<8x32xf32>
    %316 = arith.addf %312, %315 : vector<8x32xf32>
    %317 = math.tanh %316 : vector<8x32xf32>
    %318 = arith.subf %268, %317 : vector<8x32xf32>
    %319 = arith.mulf %311, %318 : vector<8x32xf32>
    %320 = arith.addf %317, %319 : vector<8x32xf32>
    %c1_123 = arith.constant 1 : index
    %c16_124 = arith.constant 16 : index
    %c0_125 = arith.constant 0 : index
    %321 = vector.load %arg15[%c1_123, %c16_124, %c0_125] : memref<2x64x96xf32, #tpu.memory_space<vmem>>, vector<1x8x96xf32>
    %322 = vector.shape_cast %321 : vector<1x8x96xf32> to vector<8x96xf32>
    %323 = arith.truncf %293 : vector<8x32xf32> to vector<8x32xbf16>
    %cst_126 = arith.constant dense<0.000000e+00> : vector<8x96xf32>
    %324 = tpu.matmul %323, %26, %cst_126 {dimension_numbers = #tpu.dot_dimension_numbers<[1], [0], [0], [1], [0, 0, 1, 1], [], []>} : vector<8x32xbf16>, vector<32x96xbf16>, vector<8x96xf32> -> vector<8x96xf32>
    %325 = vector.extract_strided_slice %322 {offsets = [0, 0], sizes = [8, 64], strides = [1, 1]} : vector<8x96xf32> to vector<8x64xf32>
    %326 = vector.extract_strided_slice %324 {offsets = [0, 0], sizes = [8, 64], strides = [1, 1]} : vector<8x96xf32> to vector<8x64xf32>
    %327 = arith.addf %325, %326 : vector<8x64xf32>
    %cst_127 = arith.constant 5.000000e-01 : f32
    %328 = vector.broadcast %cst_127 : f32 to vector<8x64xf32>
    %329 = arith.mulf %328, %327 : vector<8x64xf32>
    %330 = math.tanh %329 : vector<8x64xf32>
    %cst_128 = arith.constant 1.000000e+00 : f32
    %331 = vector.broadcast %cst_128 : f32 to vector<8x64xf32>
    %332 = arith.addf %330, %331 : vector<8x64xf32>
    %cst_129 = arith.constant 5.000000e-01 : f32
    %333 = vector.broadcast %cst_129 : f32 to vector<8x64xf32>
    %334 = arith.mulf %333, %332 : vector<8x64xf32>
    %335 = vector.extract_strided_slice %334 {offsets = [0, 0], sizes = [8, 32], strides = [1, 1]} : vector<8x64xf32> to vector<8x32xf32>
    %336 = vector.extract_strided_slice %334 {offsets = [0, 32], sizes = [8, 32], strides = [1, 1]} : vector<8x64xf32> to vector<8x32xf32>
    %337 = vector.extract_strided_slice %322 {offsets = [0, 64], sizes = [8, 32], strides = [1, 1]} : vector<8x96xf32> to vector<8x32xf32>
    %338 = vector.extract_strided_slice %324 {offsets = [0, 64], sizes = [8, 32], strides = [1, 1]} : vector<8x96xf32> to vector<8x32xf32>
    %339 = arith.addf %338, %34 : vector<8x32xf32>
    %340 = arith.mulf %335, %339 : vector<8x32xf32>
    %341 = arith.addf %337, %340 : vector<8x32xf32>
    %342 = math.tanh %341 : vector<8x32xf32>
    %343 = arith.subf %293, %342 : vector<8x32xf32>
    %344 = arith.mulf %336, %343 : vector<8x32xf32>
    %345 = arith.addf %342, %344 : vector<8x32xf32>
    %c40_130 = arith.constant 40 : index
    %c0_131 = arith.constant 0 : index
    %346 = vector.load %arg16[%c40_130, %c0_131] : memref<64x32xf32, #tpu.memory_space<vmem>>, vector<8x32xf32>
    tpu.vector_store %arg16[%c40_130, %c0_131], %320 {strides = array<i32>} : memref<64x32xf32, #tpu.memory_space<vmem>>, vector<8x32xf32>,
    %c16_132 = arith.constant 16 : index
    %c0_133 = arith.constant 0 : index
    %347 = vector.load %arg17[%c16_132, %c0_133] : memref<64x32xf32, #tpu.memory_space<vmem>>, vector<8x32xf32>
    tpu.vector_store %arg17[%c16_132, %c0_133], %345 {strides = array<i32>} : memref<64x32xf32, #tpu.memory_space<vmem>>, vector<8x32xf32>,
    %c0_134 = arith.constant 0 : index
    %c48_135 = arith.constant 48 : index
    %c0_136 = arith.constant 0 : index
    %348 = vector.load %arg15[%c0_134, %c48_135, %c0_136] : memref<2x64x96xf32, #tpu.memory_space<vmem>>, vector<1x8x96xf32>
    %349 = vector.shape_cast %348 : vector<1x8x96xf32> to vector<8x96xf32>
    %350 = arith.truncf %320 : vector<8x32xf32> to vector<8x32xbf16>
    %cst_137 = arith.constant dense<0.000000e+00> : vector<8x96xf32>
    %351 = tpu.matmul %350, %24, %cst_137 {dimension_numbers = #tpu.dot_dimension_numbers<[1], [0], [0], [1], [0, 0, 1, 1], [], []>} : vector<8x32xbf16>, vector<32x96xbf16>, vector<8x96xf32> -> vector<8x96xf32>
    %352 = vector.extract_strided_slice %349 {offsets = [0, 0], sizes = [8, 64], strides = [1, 1]} : vector<8x96xf32> to vector<8x64xf32>
    %353 = vector.extract_strided_slice %351 {offsets = [0, 0], sizes = [8, 64], strides = [1, 1]} : vector<8x96xf32> to vector<8x64xf32>
    %354 = arith.addf %352, %353 : vector<8x64xf32>
    %cst_138 = arith.constant 5.000000e-01 : f32
    %355 = vector.broadcast %cst_138 : f32 to vector<8x64xf32>
    %356 = arith.mulf %355, %354 : vector<8x64xf32>
    %357 = math.tanh %356 : vector<8x64xf32>
    %cst_139 = arith.constant 1.000000e+00 : f32
    %358 = vector.broadcast %cst_139 : f32 to vector<8x64xf32>
    %359 = arith.addf %357, %358 : vector<8x64xf32>
    %cst_140 = arith.constant 5.000000e-01 : f32
    %360 = vector.broadcast %cst_140 : f32 to vector<8x64xf32>
    %361 = arith.mulf %360, %359 : vector<8x64xf32>
    %362 = vector.extract_strided_slice %361 {offsets = [0, 0], sizes = [8, 32], strides = [1, 1]} : vector<8x64xf32> to vector<8x32xf32>
    %363 = vector.extract_strided_slice %361 {offsets = [0, 32], sizes = [8, 32], strides = [1, 1]} : vector<8x64xf32> to vector<8x32xf32>
    %364 = vector.extract_strided_slice %349 {offsets = [0, 64], sizes = [8, 32], strides = [1, 1]} : vector<8x96xf32> to vector<8x32xf32>
    %365 = vector.extract_strided_slice %351 {offsets = [0, 64], sizes = [8, 32], strides = [1, 1]} : vector<8x96xf32> to vector<8x32xf32>
    %366 = arith.addf %365, %30 : vector<8x32xf32>
    %367 = arith.mulf %362, %366 : vector<8x32xf32>
    %368 = arith.addf %364, %367 : vector<8x32xf32>
    %369 = math.tanh %368 : vector<8x32xf32>
    %370 = arith.subf %320, %369 : vector<8x32xf32>
    %371 = arith.mulf %363, %370 : vector<8x32xf32>
    %372 = arith.addf %369, %371 : vector<8x32xf32>
    %c1_141 = arith.constant 1 : index
    %c8_142 = arith.constant 8 : index
    %c0_143 = arith.constant 0 : index
    %373 = vector.load %arg15[%c1_141, %c8_142, %c0_143] : memref<2x64x96xf32, #tpu.memory_space<vmem>>, vector<1x8x96xf32>
    %374 = vector.shape_cast %373 : vector<1x8x96xf32> to vector<8x96xf32>
    %375 = arith.truncf %345 : vector<8x32xf32> to vector<8x32xbf16>
    %cst_144 = arith.constant dense<0.000000e+00> : vector<8x96xf32>
    %376 = tpu.matmul %375, %26, %cst_144 {dimension_numbers = #tpu.dot_dimension_numbers<[1], [0], [0], [1], [0, 0, 1, 1], [], []>} : vector<8x32xbf16>, vector<32x96xbf16>, vector<8x96xf32> -> vector<8x96xf32>
    %377 = vector.extract_strided_slice %374 {offsets = [0, 0], sizes = [8, 64], strides = [1, 1]} : vector<8x96xf32> to vector<8x64xf32>
    %378 = vector.extract_strided_slice %376 {offsets = [0, 0], sizes = [8, 64], strides = [1, 1]} : vector<8x96xf32> to vector<8x64xf32>
    %379 = arith.addf %377, %378 : vector<8x64xf32>
    %cst_145 = arith.constant 5.000000e-01 : f32
    %380 = vector.broadcast %cst_145 : f32 to vector<8x64xf32>
    %381 = arith.mulf %380, %379 : vector<8x64xf32>
    %382 = math.tanh %381 : vector<8x64xf32>
    %cst_146 = arith.constant 1.000000e+00 : f32
    %383 = vector.broadcast %cst_146 : f32 to vector<8x64xf32>
    %384 = arith.addf %382, %383 : vector<8x64xf32>
    %cst_147 = arith.constant 5.000000e-01 : f32
    %385 = vector.broadcast %cst_147 : f32 to vector<8x64xf32>
    %386 = arith.mulf %385, %384 : vector<8x64xf32>
    %387 = vector.extract_strided_slice %386 {offsets = [0, 0], sizes = [8, 32], strides = [1, 1]} : vector<8x64xf32> to vector<8x32xf32>
    %388 = vector.extract_strided_slice %386 {offsets = [0, 32], sizes = [8, 32], strides = [1, 1]} : vector<8x64xf32> to vector<8x32xf32>
    %389 = vector.extract_strided_slice %374 {offsets = [0, 64], sizes = [8, 32], strides = [1, 1]} : vector<8x96xf32> to vector<8x32xf32>
    %390 = vector.extract_strided_slice %376 {offsets = [0, 64], sizes = [8, 32], strides = [1, 1]} : vector<8x96xf32> to vector<8x32xf32>
    %391 = arith.addf %390, %34 : vector<8x32xf32>
    %392 = arith.mulf %387, %391 : vector<8x32xf32>
    %393 = arith.addf %389, %392 : vector<8x32xf32>
    %394 = math.tanh %393 : vector<8x32xf32>
    %395 = arith.subf %345, %394 : vector<8x32xf32>
    %396 = arith.mulf %388, %395 : vector<8x32xf32>
    %397 = arith.addf %394, %396 : vector<8x32xf32>
    %c48_148 = arith.constant 48 : index
    %c0_149 = arith.constant 0 : index
    %398 = vector.load %arg16[%c48_148, %c0_149] : memref<64x32xf32, #tpu.memory_space<vmem>>, vector<8x32xf32>
    tpu.vector_store %arg16[%c48_148, %c0_149], %372 {strides = array<i32>} : memref<64x32xf32, #tpu.memory_space<vmem>>, vector<8x32xf32>,
    %c8_150 = arith.constant 8 : index
    %c0_151 = arith.constant 0 : index
    %399 = vector.load %arg17[%c8_150, %c0_151] : memref<64x32xf32, #tpu.memory_space<vmem>>, vector<8x32xf32>
    tpu.vector_store %arg17[%c8_150, %c0_151], %397 {strides = array<i32>} : memref<64x32xf32, #tpu.memory_space<vmem>>, vector<8x32xf32>,
    %c0_152 = arith.constant 0 : index
    %c56_153 = arith.constant 56 : index
    %c0_154 = arith.constant 0 : index
    %400 = vector.load %arg15[%c0_152, %c56_153, %c0_154] : memref<2x64x96xf32, #tpu.memory_space<vmem>>, vector<1x8x96xf32>
    %401 = vector.shape_cast %400 : vector<1x8x96xf32> to vector<8x96xf32>
    %402 = arith.truncf %372 : vector<8x32xf32> to vector<8x32xbf16>
    %cst_155 = arith.constant dense<0.000000e+00> : vector<8x96xf32>
    %403 = tpu.matmul %402, %24, %cst_155 {dimension_numbers = #tpu.dot_dimension_numbers<[1], [0], [0], [1], [0, 0, 1, 1], [], []>} : vector<8x32xbf16>, vector<32x96xbf16>, vector<8x96xf32> -> vector<8x96xf32>
    %404 = vector.extract_strided_slice %401 {offsets = [0, 0], sizes = [8, 64], strides = [1, 1]} : vector<8x96xf32> to vector<8x64xf32>
    %405 = vector.extract_strided_slice %403 {offsets = [0, 0], sizes = [8, 64], strides = [1, 1]} : vector<8x96xf32> to vector<8x64xf32>
    %406 = arith.addf %404, %405 : vector<8x64xf32>
    %cst_156 = arith.constant 5.000000e-01 : f32
    %407 = vector.broadcast %cst_156 : f32 to vector<8x64xf32>
    %408 = arith.mulf %407, %406 : vector<8x64xf32>
    %409 = math.tanh %408 : vector<8x64xf32>
    %cst_157 = arith.constant 1.000000e+00 : f32
    %410 = vector.broadcast %cst_157 : f32 to vector<8x64xf32>
    %411 = arith.addf %409, %410 : vector<8x64xf32>
    %cst_158 = arith.constant 5.000000e-01 : f32
    %412 = vector.broadcast %cst_158 : f32 to vector<8x64xf32>
    %413 = arith.mulf %412, %411 : vector<8x64xf32>
    %414 = vector.extract_strided_slice %413 {offsets = [0, 0], sizes = [8, 32], strides = [1, 1]} : vector<8x64xf32> to vector<8x32xf32>
    %415 = vector.extract_strided_slice %413 {offsets = [0, 32], sizes = [8, 32], strides = [1, 1]} : vector<8x64xf32> to vector<8x32xf32>
    %416 = vector.extract_strided_slice %401 {offsets = [0, 64], sizes = [8, 32], strides = [1, 1]} : vector<8x96xf32> to vector<8x32xf32>
    %417 = vector.extract_strided_slice %403 {offsets = [0, 64], sizes = [8, 32], strides = [1, 1]} : vector<8x96xf32> to vector<8x32xf32>
    %418 = arith.addf %417, %30 : vector<8x32xf32>
    %419 = arith.mulf %414, %418 : vector<8x32xf32>
    %420 = arith.addf %416, %419 : vector<8x32xf32>
    %421 = math.tanh %420 : vector<8x32xf32>
    %422 = arith.subf %372, %421 : vector<8x32xf32>
    %423 = arith.mulf %415, %422 : vector<8x32xf32>
    %424 = arith.addf %421, %423 : vector<8x32xf32>
    %c1_159 = arith.constant 1 : index
    %c0_160 = arith.constant 0 : index
    %c0_161 = arith.constant 0 : index
    %425 = vector.load %arg15[%c1_159, %c0_160, %c0_161] : memref<2x64x96xf32, #tpu.memory_space<vmem>>, vector<1x8x96xf32>
    %426 = vector.shape_cast %425 : vector<1x8x96xf32> to vector<8x96xf32>
    %427 = arith.truncf %397 : vector<8x32xf32> to vector<8x32xbf16>
    %cst_162 = arith.constant dense<0.000000e+00> : vector<8x96xf32>
    %428 = tpu.matmul %427, %26, %cst_162 {dimension_numbers = #tpu.dot_dimension_numbers<[1], [0], [0], [1], [0, 0, 1, 1], [], []>} : vector<8x32xbf16>, vector<32x96xbf16>, vector<8x96xf32> -> vector<8x96xf32>
    %429 = vector.extract_strided_slice %426 {offsets = [0, 0], sizes = [8, 64], strides = [1, 1]} : vector<8x96xf32> to vector<8x64xf32>
    %430 = vector.extract_strided_slice %428 {offsets = [0, 0], sizes = [8, 64], strides = [1, 1]} : vector<8x96xf32> to vector<8x64xf32>
    %431 = arith.addf %429, %430 : vector<8x64xf32>
    %cst_163 = arith.constant 5.000000e-01 : f32
    %432 = vector.broadcast %cst_163 : f32 to vector<8x64xf32>
    %433 = arith.mulf %432, %431 : vector<8x64xf32>
    %434 = math.tanh %433 : vector<8x64xf32>
    %cst_164 = arith.constant 1.000000e+00 : f32
    %435 = vector.broadcast %cst_164 : f32 to vector<8x64xf32>
    %436 = arith.addf %434, %435 : vector<8x64xf32>
    %cst_165 = arith.constant 5.000000e-01 : f32
    %437 = vector.broadcast %cst_165 : f32 to vector<8x64xf32>
    %438 = arith.mulf %437, %436 : vector<8x64xf32>
    %439 = vector.extract_strided_slice %438 {offsets = [0, 0], sizes = [8, 32], strides = [1, 1]} : vector<8x64xf32> to vector<8x32xf32>
    %440 = vector.extract_strided_slice %438 {offsets = [0, 32], sizes = [8, 32], strides = [1, 1]} : vector<8x64xf32> to vector<8x32xf32>
    %441 = vector.extract_strided_slice %426 {offsets = [0, 64], sizes = [8, 32], strides = [1, 1]} : vector<8x96xf32> to vector<8x32xf32>
    %442 = vector.extract_strided_slice %428 {offsets = [0, 64], sizes = [8, 32], strides = [1, 1]} : vector<8x96xf32> to vector<8x32xf32>
    %443 = arith.addf %442, %34 : vector<8x32xf32>
    %444 = arith.mulf %439, %443 : vector<8x32xf32>
    %445 = arith.addf %441, %444 : vector<8x32xf32>
    %446 = math.tanh %445 : vector<8x32xf32>
    %447 = arith.subf %397, %446 : vector<8x32xf32>
    %448 = arith.mulf %440, %447 : vector<8x32xf32>
    %449 = arith.addf %446, %448 : vector<8x32xf32>
    %c56_166 = arith.constant 56 : index
    %c0_167 = arith.constant 0 : index
    %450 = vector.load %arg16[%c56_166, %c0_167] : memref<64x32xf32, #tpu.memory_space<vmem>>, vector<8x32xf32>
    tpu.vector_store %arg16[%c56_166, %c0_167], %424 {strides = array<i32>} : memref<64x32xf32, #tpu.memory_space<vmem>>, vector<8x32xf32>,
    %c0_168 = arith.constant 0 : index
    %c0_169 = arith.constant 0 : index
    %451 = vector.load %arg17[%c0_168, %c0_169] : memref<64x32xf32, #tpu.memory_space<vmem>>, vector<8x32xf32>
    tpu.vector_store %arg17[%c0_168, %c0_169], %449 {strides = array<i32>} : memref<64x32xf32, #tpu.memory_space<vmem>>, vector<8x32xf32>,
    %c0_170 = arith.constant 0 : index
    %c0_171 = arith.constant 0 : index
    %452 = vector.load %arg16[%c0_170, %c0_171] : memref<64x32xf32, #tpu.memory_space<vmem>>, vector<64x32xf32>
    %453 = arith.truncf %452 : vector<64x32xf32> to vector<64x32xbf16>
    %c0_172 = arith.constant 0 : index
    %c0_173 = arith.constant 0 : index
    %454 = vector.load %arg17[%c0_172, %c0_173] : memref<64x32xf32, #tpu.memory_space<vmem>>, vector<64x32xf32>
    %455 = arith.truncf %454 : vector<64x32xf32> to vector<64x32xbf16>
    %c0_174 = arith.constant 0 : index
    %c0_175 = arith.constant 0 : index
    %c0_176 = arith.constant 0 : index
    %456 = vector.load %arg6[%c0_174, %c0_175, %c0_176] : memref<2x32x96xbf16, #tpu.memory_space<vmem>>, vector<1x32x96xbf16>
    %457 = vector.shape_cast %456 : vector<1x32x96xbf16> to vector<32x96xbf16>
    %cst_177 = arith.constant dense<0.000000e+00> : vector<64x96xf32>
    %458 = tpu.matmul %453, %457, %cst_177 {dimension_numbers = #tpu.dot_dimension_numbers<[1], [0], [0], [1], [0, 0, 1, 1], [], []>} : vector<64x32xbf16>, vector<32x96xbf16>, vector<64x96xf32> -> vector<64x96xf32>
    %c0_178 = arith.constant 0 : index
    %c0_179 = arith.constant 0 : index
    %c0_180 = arith.constant 0 : index
    %459 = vector.load %arg7[%c0_178, %c0_179, %c0_180] : memref<2x32x96xbf16, #tpu.memory_space<vmem>>, vector<1x32x96xbf16>
    %460 = vector.shape_cast %459 : vector<1x32x96xbf16> to vector<32x96xbf16>
    %cst_181 = arith.constant dense<0.000000e+00> : vector<64x96xf32>
    %461 = tpu.matmul %455, %460, %cst_181 {dimension_numbers = #tpu.dot_dimension_numbers<[1], [0], [0], [1], [0, 0, 1, 1], [], []>} : vector<64x32xbf16>, vector<32x96xbf16>, vector<64x96xf32> -> vector<64x96xf32>
    %462 = arith.addf %458, %461 : vector<64x96xf32>
    %c0_182 = arith.constant 0 : index
    %c0_183 = arith.constant 0 : index
    %c0_184 = arith.constant 0 : index
    %463 = vector.load %arg9[%c0_182, %c0_183, %c0_184] : memref<2x1x96xf32, #tpu.memory_space<vmem>>, vector<1x1x96xf32>
    %464 = vector.shape_cast %463 : vector<1x1x96xf32> to vector<1x96xf32>
    %465 = vector.broadcast %464 : vector<1x96xf32> to vector<64x96xf32>
    %466 = arith.addf %462, %465 : vector<64x96xf32>
    %c0_185 = arith.constant 0 : index
    %c0_186 = arith.constant 0 : index
    %c0_187 = arith.constant 0 : index
    %467 = vector.load %arg15[%c0_185, %c0_186, %c0_187] : memref<2x64x96xf32, #tpu.memory_space<vmem>>, vector<1x64x96xf32>
    %468 = vector.shape_cast %467 : vector<1x64x96xf32> to vector<64x96xf32>
    %469 = vector.shape_cast %466 : vector<64x96xf32> to vector<1x64x96xf32>
    tpu.vector_store %arg15[%c0_185, %c0_186, %c0_187], %469 {strides = array<i32>} : memref<2x64x96xf32, #tpu.memory_space<vmem>>, vector<1x64x96xf32>,
    %c1_188 = arith.constant 1 : index
    %c0_189 = arith.constant 0 : index
    %c0_190 = arith.constant 0 : index
    %470 = vector.load %arg6[%c1_188, %c0_189, %c0_190] : memref<2x32x96xbf16, #tpu.memory_space<vmem>>, vector<1x32x96xbf16>
    %471 = vector.shape_cast %470 : vector<1x32x96xbf16> to vector<32x96xbf16>
    %cst_191 = arith.constant dense<0.000000e+00> : vector<64x96xf32>
    %472 = tpu.matmul %453, %471, %cst_191 {dimension_numbers = #tpu.dot_dimension_numbers<[1], [0], [0], [1], [0, 0, 1, 1], [], []>} : vector<64x32xbf16>, vector<32x96xbf16>, vector<64x96xf32> -> vector<64x96xf32>
    %c1_192 = arith.constant 1 : index
    %c0_193 = arith.constant 0 : index
    %c0_194 = arith.constant 0 : index
    %473 = vector.load %arg7[%c1_192, %c0_193, %c0_194] : memref<2x32x96xbf16, #tpu.memory_space<vmem>>, vector<1x32x96xbf16>
    %474 = vector.shape_cast %473 : vector<1x32x96xbf16> to vector<32x96xbf16>
    %cst_195 = arith.constant dense<0.000000e+00> : vector<64x96xf32>
    %475 = tpu.matmul %455, %474, %cst_195 {dimension_numbers = #tpu.dot_dimension_numbers<[1], [0], [0], [1], [0, 0, 1, 1], [], []>} : vector<64x32xbf16>, vector<32x96xbf16>, vector<64x96xf32> -> vector<64x96xf32>
    %476 = arith.addf %472, %475 : vector<64x96xf32>
    %c1_196 = arith.constant 1 : index
    %c0_197 = arith.constant 0 : index
    %c0_198 = arith.constant 0 : index
    %477 = vector.load %arg9[%c1_196, %c0_197, %c0_198] : memref<2x1x96xf32, #tpu.memory_space<vmem>>, vector<1x1x96xf32>
    %478 = vector.shape_cast %477 : vector<1x1x96xf32> to vector<1x96xf32>
    %479 = vector.broadcast %478 : vector<1x96xf32> to vector<64x96xf32>
    %480 = arith.addf %476, %479 : vector<64x96xf32>
    %c1_199 = arith.constant 1 : index
    %c0_200 = arith.constant 0 : index
    %c0_201 = arith.constant 0 : index
    %481 = vector.load %arg15[%c1_199, %c0_200, %c0_201] : memref<2x64x96xf32, #tpu.memory_space<vmem>>, vector<1x64x96xf32>
    %482 = vector.shape_cast %481 : vector<1x64x96xf32> to vector<64x96xf32>
    %483 = vector.shape_cast %480 : vector<64x96xf32> to vector<1x64x96xf32>
    tpu.vector_store %arg15[%c1_199, %c0_200, %c0_201], %483 {strides = array<i32>} : memref<2x64x96xf32, #tpu.memory_space<vmem>>, vector<1x64x96xf32>,
    %c0_202 = arith.constant 0 : index
    %c0_203 = arith.constant 0 : index
    %c0_204 = arith.constant 0 : index
    %484 = vector.load %arg8[%c0_202, %c0_203, %c0_204] : memref<2x32x96xbf16, #tpu.memory_space<vmem>>, vector<1x32x96xbf16>
    %485 = vector.shape_cast %484 : vector<1x32x96xbf16> to vector<32x96xbf16>
    %c1_205 = arith.constant 1 : index
    %c0_206 = arith.constant 0 : index
    %c0_207 = arith.constant 0 : index
    %486 = vector.load %arg8[%c1_205, %c0_206, %c0_207] : memref<2x32x96xbf16, #tpu.memory_space<vmem>>, vector<1x32x96xbf16>
    %487 = vector.shape_cast %486 : vector<1x32x96xbf16> to vector<32x96xbf16>
    %c0_208 = arith.constant 0 : index
    %c0_209 = arith.constant 0 : index
    %c0_210 = arith.constant 0 : index
    %488 = vector.load %arg10[%c0_208, %c0_209, %c0_210] : memref<2x1x32xf32, #tpu.memory_space<vmem>>, vector<1x1x32xf32>
    %489 = vector.shape_cast %488 : vector<1x1x32xf32> to vector<1x32xf32>
    %490 = vector.shape_cast %489 : vector<1x32xf32> to vector<1x32xf32>
    %491 = vector.broadcast %490 : vector<1x32xf32> to vector<8x32xf32>
    %c1_211 = arith.constant 1 : index
    %c0_212 = arith.constant 0 : index
    %c0_213 = arith.constant 0 : index
    %492 = vector.load %arg10[%c1_211, %c0_212, %c0_213] : memref<2x1x32xf32, #tpu.memory_space<vmem>>, vector<1x1x32xf32>
    %493 = vector.shape_cast %492 : vector<1x1x32xf32> to vector<1x32xf32>
    %494 = vector.shape_cast %493 : vector<1x32xf32> to vector<1x32xf32>
    %495 = vector.broadcast %494 : vector<1x32xf32> to vector<8x32xf32>
    %cst_214 = arith.constant 0.000000e+00 : f32
    %496 = vector.broadcast %cst_214 : f32 to vector<8x32xf32>
    %c0_215 = arith.constant 0 : index
    %c0_216 = arith.constant 0 : index
    %c0_217 = arith.constant 0 : index
    %497 = vector.load %arg15[%c0_215, %c0_216, %c0_217] : memref<2x64x96xf32, #tpu.memory_space<vmem>>, vector<1x8x96xf32>
    %498 = vector.shape_cast %497 : vector<1x8x96xf32> to vector<8x96xf32>
    %499 = arith.truncf %496 : vector<8x32xf32> to vector<8x32xbf16>
    %cst_218 = arith.constant dense<0.000000e+00> : vector<8x96xf32>
    %500 = tpu.matmul %499, %485, %cst_218 {dimension_numbers = #tpu.dot_dimension_numbers<[1], [0], [0], [1], [0, 0, 1, 1], [], []>} : vector<8x32xbf16>, vector<32x96xbf16>, vector<8x96xf32> -> vector<8x96xf32>
    %501 = vector.extract_strided_slice %498 {offsets = [0, 0], sizes = [8, 64], strides = [1, 1]} : vector<8x96xf32> to vector<8x64xf32>
    %502 = vector.extract_strided_slice %500 {offsets = [0, 0], sizes = [8, 64], strides = [1, 1]} : vector<8x96xf32> to vector<8x64xf32>
    %503 = arith.addf %501, %502 : vector<8x64xf32>
    %cst_219 = arith.constant 5.000000e-01 : f32
    %504 = vector.broadcast %cst_219 : f32 to vector<8x64xf32>
    %505 = arith.mulf %504, %503 : vector<8x64xf32>
    %506 = math.tanh %505 : vector<8x64xf32>
    %cst_220 = arith.constant 1.000000e+00 : f32
    %507 = vector.broadcast %cst_220 : f32 to vector<8x64xf32>
    %508 = arith.addf %506, %507 : vector<8x64xf32>
    %cst_221 = arith.constant 5.000000e-01 : f32
    %509 = vector.broadcast %cst_221 : f32 to vector<8x64xf32>
    %510 = arith.mulf %509, %508 : vector<8x64xf32>
    %511 = vector.extract_strided_slice %510 {offsets = [0, 0], sizes = [8, 32], strides = [1, 1]} : vector<8x64xf32> to vector<8x32xf32>
    %512 = vector.extract_strided_slice %510 {offsets = [0, 32], sizes = [8, 32], strides = [1, 1]} : vector<8x64xf32> to vector<8x32xf32>
    %513 = vector.extract_strided_slice %498 {offsets = [0, 64], sizes = [8, 32], strides = [1, 1]} : vector<8x96xf32> to vector<8x32xf32>
    %514 = vector.extract_strided_slice %500 {offsets = [0, 64], sizes = [8, 32], strides = [1, 1]} : vector<8x96xf32> to vector<8x32xf32>
    %515 = arith.addf %514, %491 : vector<8x32xf32>
    %516 = arith.mulf %511, %515 : vector<8x32xf32>
    %517 = arith.addf %513, %516 : vector<8x32xf32>
    %518 = math.tanh %517 : vector<8x32xf32>
    %519 = arith.subf %496, %518 : vector<8x32xf32>
    %520 = arith.mulf %512, %519 : vector<8x32xf32>
    %521 = arith.addf %518, %520 : vector<8x32xf32>
    %c1_222 = arith.constant 1 : index
    %c56_223 = arith.constant 56 : index
    %c0_224 = arith.constant 0 : index
    %522 = vector.load %arg15[%c1_222, %c56_223, %c0_224] : memref<2x64x96xf32, #tpu.memory_space<vmem>>, vector<1x8x96xf32>
    %523 = vector.shape_cast %522 : vector<1x8x96xf32> to vector<8x96xf32>
    %524 = arith.truncf %496 : vector<8x32xf32> to vector<8x32xbf16>
    %cst_225 = arith.constant dense<0.000000e+00> : vector<8x96xf32>
    %525 = tpu.matmul %524, %487, %cst_225 {dimension_numbers = #tpu.dot_dimension_numbers<[1], [0], [0], [1], [0, 0, 1, 1], [], []>} : vector<8x32xbf16>, vector<32x96xbf16>, vector<8x96xf32> -> vector<8x96xf32>
    %526 = vector.extract_strided_slice %523 {offsets = [0, 0], sizes = [8, 64], strides = [1, 1]} : vector<8x96xf32> to vector<8x64xf32>
    %527 = vector.extract_strided_slice %525 {offsets = [0, 0], sizes = [8, 64], strides = [1, 1]} : vector<8x96xf32> to vector<8x64xf32>
    %528 = arith.addf %526, %527 : vector<8x64xf32>
    %cst_226 = arith.constant 5.000000e-01 : f32
    %529 = vector.broadcast %cst_226 : f32 to vector<8x64xf32>
    %530 = arith.mulf %529, %528 : vector<8x64xf32>
    %531 = math.tanh %530 : vector<8x64xf32>
    %cst_227 = arith.constant 1.000000e+00 : f32
    %532 = vector.broadcast %cst_227 : f32 to vector<8x64xf32>
    %533 = arith.addf %531, %532 : vector<8x64xf32>
    %cst_228 = arith.constant 5.000000e-01 : f32
    %534 = vector.broadcast %cst_228 : f32 to vector<8x64xf32>
    %535 = arith.mulf %534, %533 : vector<8x64xf32>
    %536 = vector.extract_strided_slice %535 {offsets = [0, 0], sizes = [8, 32], strides = [1, 1]} : vector<8x64xf32> to vector<8x32xf32>
    %537 = vector.extract_strided_slice %535 {offsets = [0, 32], sizes = [8, 32], strides = [1, 1]} : vector<8x64xf32> to vector<8x32xf32>
    %538 = vector.extract_strided_slice %523 {offsets = [0, 64], sizes = [8, 32], strides = [1, 1]} : vector<8x96xf32> to vector<8x32xf32>
    %539 = vector.extract_strided_slice %525 {offsets = [0, 64], sizes = [8, 32], strides = [1, 1]} : vector<8x96xf32> to vector<8x32xf32>
    %540 = arith.addf %539, %495 : vector<8x32xf32>
    %541 = arith.mulf %536, %540 : vector<8x32xf32>
    %542 = arith.addf %538, %541 : vector<8x32xf32>
    %543 = math.tanh %542 : vector<8x32xf32>
    %544 = arith.subf %496, %543 : vector<8x32xf32>
    %545 = arith.mulf %537, %544 : vector<8x32xf32>
    %546 = arith.addf %543, %545 : vector<8x32xf32>
    %c0_229 = arith.constant 0 : index
    %c0_230 = arith.constant 0 : index
    %547 = vector.load %arg16[%c0_229, %c0_230] : memref<64x32xf32, #tpu.memory_space<vmem>>, vector<8x32xf32>
    tpu.vector_store %arg16[%c0_229, %c0_230], %521 {strides = array<i32>} : memref<64x32xf32, #tpu.memory_space<vmem>>, vector<8x32xf32>,
    %c56_231 = arith.constant 56 : index
    %c0_232 = arith.constant 0 : index
    %548 = vector.load %arg17[%c56_231, %c0_232] : memref<64x32xf32, #tpu.memory_space<vmem>>, vector<8x32xf32>
    tpu.vector_store %arg17[%c56_231, %c0_232], %546 {strides = array<i32>} : memref<64x32xf32, #tpu.memory_space<vmem>>, vector<8x32xf32>,
    %c0_233 = arith.constant 0 : index
    %c8_234 = arith.constant 8 : index
    %c0_235 = arith.constant 0 : index
    %549 = vector.load %arg15[%c0_233, %c8_234, %c0_235] : memref<2x64x96xf32, #tpu.memory_space<vmem>>, vector<1x8x96xf32>
    %550 = vector.shape_cast %549 : vector<1x8x96xf32> to vector<8x96xf32>
    %551 = arith.truncf %521 : vector<8x32xf32> to vector<8x32xbf16>
    %cst_236 = arith.constant dense<0.000000e+00> : vector<8x96xf32>
    %552 = tpu.matmul %551, %485, %cst_236 {dimension_numbers = #tpu.dot_dimension_numbers<[1], [0], [0], [1], [0, 0, 1, 1], [], []>} : vector<8x32xbf16>, vector<32x96xbf16>, vector<8x96xf32> -> vector<8x96xf32>
    %553 = vector.extract_strided_slice %550 {offsets = [0, 0], sizes = [8, 64], strides = [1, 1]} : vector<8x96xf32> to vector<8x64xf32>
    %554 = vector.extract_strided_slice %552 {offsets = [0, 0], sizes = [8, 64], strides = [1, 1]} : vector<8x96xf32> to vector<8x64xf32>
    %555 = arith.addf %553, %554 : vector<8x64xf32>
    %cst_237 = arith.constant 5.000000e-01 : f32
    %556 = vector.broadcast %cst_237 : f32 to vector<8x64xf32>
    %557 = arith.mulf %556, %555 : vector<8x64xf32>
    %558 = math.tanh %557 : vector<8x64xf32>
    %cst_238 = arith.constant 1.000000e+00 : f32
    %559 = vector.broadcast %cst_238 : f32 to vector<8x64xf32>
    %560 = arith.addf %558, %559 : vector<8x64xf32>
    %cst_239 = arith.constant 5.000000e-01 : f32
    %561 = vector.broadcast %cst_239 : f32 to vector<8x64xf32>
    %562 = arith.mulf %561, %560 : vector<8x64xf32>
    %563 = vector.extract_strided_slice %562 {offsets = [0, 0], sizes = [8, 32], strides = [1, 1]} : vector<8x64xf32> to vector<8x32xf32>
    %564 = vector.extract_strided_slice %562 {offsets = [0, 32], sizes = [8, 32], strides = [1, 1]} : vector<8x64xf32> to vector<8x32xf32>
    %565 = vector.extract_strided_slice %550 {offsets = [0, 64], sizes = [8, 32], strides = [1, 1]} : vector<8x96xf32> to vector<8x32xf32>
    %566 = vector.extract_strided_slice %552 {offsets = [0, 64], sizes = [8, 32], strides = [1, 1]} : vector<8x96xf32> to vector<8x32xf32>
    %567 = arith.addf %566, %491 : vector<8x32xf32>
    %568 = arith.mulf %563, %567 : vector<8x32xf32>
    %569 = arith.addf %565, %568 : vector<8x32xf32>
    %570 = math.tanh %569 : vector<8x32xf32>
    %571 = arith.subf %521, %570 : vector<8x32xf32>
    %572 = arith.mulf %564, %571 : vector<8x32xf32>
    %573 = arith.addf %570, %572 : vector<8x32xf32>
    %c1_240 = arith.constant 1 : index
    %c48_241 = arith.constant 48 : index
    %c0_242 = arith.constant 0 : index
    %574 = vector.load %arg15[%c1_240, %c48_241, %c0_242] : memref<2x64x96xf32, #tpu.memory_space<vmem>>, vector<1x8x96xf32>
    %575 = vector.shape_cast %574 : vector<1x8x96xf32> to vector<8x96xf32>
    %576 = arith.truncf %546 : vector<8x32xf32> to vector<8x32xbf16>
    %cst_243 = arith.constant dense<0.000000e+00> : vector<8x96xf32>
    %577 = tpu.matmul %576, %487, %cst_243 {dimension_numbers = #tpu.dot_dimension_numbers<[1], [0], [0], [1], [0, 0, 1, 1], [], []>} : vector<8x32xbf16>, vector<32x96xbf16>, vector<8x96xf32> -> vector<8x96xf32>
    %578 = vector.extract_strided_slice %575 {offsets = [0, 0], sizes = [8, 64], strides = [1, 1]} : vector<8x96xf32> to vector<8x64xf32>
    %579 = vector.extract_strided_slice %577 {offsets = [0, 0], sizes = [8, 64], strides = [1, 1]} : vector<8x96xf32> to vector<8x64xf32>
    %580 = arith.addf %578, %579 : vector<8x64xf32>
    %cst_244 = arith.constant 5.000000e-01 : f32
    %581 = vector.broadcast %cst_244 : f32 to vector<8x64xf32>
    %582 = arith.mulf %581, %580 : vector<8x64xf32>
    %583 = math.tanh %582 : vector<8x64xf32>
    %cst_245 = arith.constant 1.000000e+00 : f32
    %584 = vector.broadcast %cst_245 : f32 to vector<8x64xf32>
    %585 = arith.addf %583, %584 : vector<8x64xf32>
    %cst_246 = arith.constant 5.000000e-01 : f32
    %586 = vector.broadcast %cst_246 : f32 to vector<8x64xf32>
    %587 = arith.mulf %586, %585 : vector<8x64xf32>
    %588 = vector.extract_strided_slice %587 {offsets = [0, 0], sizes = [8, 32], strides = [1, 1]} : vector<8x64xf32> to vector<8x32xf32>
    %589 = vector.extract_strided_slice %587 {offsets = [0, 32], sizes = [8, 32], strides = [1, 1]} : vector<8x64xf32> to vector<8x32xf32>
    %590 = vector.extract_strided_slice %575 {offsets = [0, 64], sizes = [8, 32], strides = [1, 1]} : vector<8x96xf32> to vector<8x32xf32>
    %591 = vector.extract_strided_slice %577 {offsets = [0, 64], sizes = [8, 32], strides = [1, 1]} : vector<8x96xf32> to vector<8x32xf32>
    %592 = arith.addf %591, %495 : vector<8x32xf32>
    %593 = arith.mulf %588, %592 : vector<8x32xf32>
    %594 = arith.addf %590, %593 : vector<8x32xf32>
    %595 = math.tanh %594 : vector<8x32xf32>
    %596 = arith.subf %546, %595 : vector<8x32xf32>
    %597 = arith.mulf %589, %596 : vector<8x32xf32>
    %598 = arith.addf %595, %597 : vector<8x32xf32>
    %c8_247 = arith.constant 8 : index
    %c0_248 = arith.constant 0 : index
    %599 = vector.load %arg16[%c8_247, %c0_248] : memref<64x32xf32, #tpu.memory_space<vmem>>, vector<8x32xf32>
    tpu.vector_store %arg16[%c8_247, %c0_248], %573 {strides = array<i32>} : memref<64x32xf32, #tpu.memory_space<vmem>>, vector<8x32xf32>,
    %c48_249 = arith.constant 48 : index
    %c0_250 = arith.constant 0 : index
    %600 = vector.load %arg17[%c48_249, %c0_250] : memref<64x32xf32, #tpu.memory_space<vmem>>, vector<8x32xf32>
    tpu.vector_store %arg17[%c48_249, %c0_250], %598 {strides = array<i32>} : memref<64x32xf32, #tpu.memory_space<vmem>>, vector<8x32xf32>,
    %c0_251 = arith.constant 0 : index
    %c16_252 = arith.constant 16 : index
    %c0_253 = arith.constant 0 : index
    %601 = vector.load %arg15[%c0_251, %c16_252, %c0_253] : memref<2x64x96xf32, #tpu.memory_space<vmem>>, vector<1x8x96xf32>
    %602 = vector.shape_cast %601 : vector<1x8x96xf32> to vector<8x96xf32>
    %603 = arith.truncf %573 : vector<8x32xf32> to vector<8x32xbf16>
    %cst_254 = arith.constant dense<0.000000e+00> : vector<8x96xf32>
    %604 = tpu.matmul %603, %485, %cst_254 {dimension_numbers = #tpu.dot_dimension_numbers<[1], [0], [0], [1], [0, 0, 1, 1], [], []>} : vector<8x32xbf16>, vector<32x96xbf16>, vector<8x96xf32> -> vector<8x96xf32>
    %605 = vector.extract_strided_slice %602 {offsets = [0, 0], sizes = [8, 64], strides = [1, 1]} : vector<8x96xf32> to vector<8x64xf32>
    %606 = vector.extract_strided_slice %604 {offsets = [0, 0], sizes = [8, 64], strides = [1, 1]} : vector<8x96xf32> to vector<8x64xf32>
    %607 = arith.addf %605, %606 : vector<8x64xf32>
    %cst_255 = arith.constant 5.000000e-01 : f32
    %608 = vector.broadcast %cst_255 : f32 to vector<8x64xf32>
    %609 = arith.mulf %608, %607 : vector<8x64xf32>
    %610 = math.tanh %609 : vector<8x64xf32>
    %cst_256 = arith.constant 1.000000e+00 : f32
    %611 = vector.broadcast %cst_256 : f32 to vector<8x64xf32>
    %612 = arith.addf %610, %611 : vector<8x64xf32>
    %cst_257 = arith.constant 5.000000e-01 : f32
    %613 = vector.broadcast %cst_257 : f32 to vector<8x64xf32>
    %614 = arith.mulf %613, %612 : vector<8x64xf32>
    %615 = vector.extract_strided_slice %614 {offsets = [0, 0], sizes = [8, 32], strides = [1, 1]} : vector<8x64xf32> to vector<8x32xf32>
    %616 = vector.extract_strided_slice %614 {offsets = [0, 32], sizes = [8, 32], strides = [1, 1]} : vector<8x64xf32> to vector<8x32xf32>
    %617 = vector.extract_strided_slice %602 {offsets = [0, 64], sizes = [8, 32], strides = [1, 1]} : vector<8x96xf32> to vector<8x32xf32>
    %618 = vector.extract_strided_slice %604 {offsets = [0, 64], sizes = [8, 32], strides = [1, 1]} : vector<8x96xf32> to vector<8x32xf32>
    %619 = arith.addf %618, %491 : vector<8x32xf32>
    %620 = arith.mulf %615, %619 : vector<8x32xf32>
    %621 = arith.addf %617, %620 : vector<8x32xf32>
    %622 = math.tanh %621 : vector<8x32xf32>
    %623 = arith.subf %573, %622 : vector<8x32xf32>
    %624 = arith.mulf %616, %623 : vector<8x32xf32>
    %625 = arith.addf %622, %624 : vector<8x32xf32>
    %c1_258 = arith.constant 1 : index
    %c40_259 = arith.constant 40 : index
    %c0_260 = arith.constant 0 : index
    %626 = vector.load %arg15[%c1_258, %c40_259, %c0_260] : memref<2x64x96xf32, #tpu.memory_space<vmem>>, vector<1x8x96xf32>
    %627 = vector.shape_cast %626 : vector<1x8x96xf32> to vector<8x96xf32>
    %628 = arith.truncf %598 : vector<8x32xf32> to vector<8x32xbf16>
    %cst_261 = arith.constant dense<0.000000e+00> : vector<8x96xf32>
    %629 = tpu.matmul %628, %487, %cst_261 {dimension_numbers = #tpu.dot_dimension_numbers<[1], [0], [0], [1], [0, 0, 1, 1], [], []>} : vector<8x32xbf16>, vector<32x96xbf16>, vector<8x96xf32> -> vector<8x96xf32>
    %630 = vector.extract_strided_slice %627 {offsets = [0, 0], sizes = [8, 64], strides = [1, 1]} : vector<8x96xf32> to vector<8x64xf32>
    %631 = vector.extract_strided_slice %629 {offsets = [0, 0], sizes = [8, 64], strides = [1, 1]} : vector<8x96xf32> to vector<8x64xf32>
    %632 = arith.addf %630, %631 : vector<8x64xf32>
    %cst_262 = arith.constant 5.000000e-01 : f32
    %633 = vector.broadcast %cst_262 : f32 to vector<8x64xf32>
    %634 = arith.mulf %633, %632 : vector<8x64xf32>
    %635 = math.tanh %634 : vector<8x64xf32>
    %cst_263 = arith.constant 1.000000e+00 : f32
    %636 = vector.broadcast %cst_263 : f32 to vector<8x64xf32>
    %637 = arith.addf %635, %636 : vector<8x64xf32>
    %cst_264 = arith.constant 5.000000e-01 : f32
    %638 = vector.broadcast %cst_264 : f32 to vector<8x64xf32>
    %639 = arith.mulf %638, %637 : vector<8x64xf32>
    %640 = vector.extract_strided_slice %639 {offsets = [0, 0], sizes = [8, 32], strides = [1, 1]} : vector<8x64xf32> to vector<8x32xf32>
    %641 = vector.extract_strided_slice %639 {offsets = [0, 32], sizes = [8, 32], strides = [1, 1]} : vector<8x64xf32> to vector<8x32xf32>
    %642 = vector.extract_strided_slice %627 {offsets = [0, 64], sizes = [8, 32], strides = [1, 1]} : vector<8x96xf32> to vector<8x32xf32>
    %643 = vector.extract_strided_slice %629 {offsets = [0, 64], sizes = [8, 32], strides = [1, 1]} : vector<8x96xf32> to vector<8x32xf32>
    %644 = arith.addf %643, %495 : vector<8x32xf32>
    %645 = arith.mulf %640, %644 : vector<8x32xf32>
    %646 = arith.addf %642, %645 : vector<8x32xf32>
    %647 = math.tanh %646 : vector<8x32xf32>
    %648 = arith.subf %598, %647 : vector<8x32xf32>
    %649 = arith.mulf %641, %648 : vector<8x32xf32>
    %650 = arith.addf %647, %649 : vector<8x32xf32>
    %c16_265 = arith.constant 16 : index
    %c0_266 = arith.constant 0 : index
    %651 = vector.load %arg16[%c16_265, %c0_266] : memref<64x32xf32, #tpu.memory_space<vmem>>, vector<8x32xf32>
    tpu.vector_store %arg16[%c16_265, %c0_266], %625 {strides = array<i32>} : memref<64x32xf32, #tpu.memory_space<vmem>>, vector<8x32xf32>,
    %c40_267 = arith.constant 40 : index
    %c0_268 = arith.constant 0 : index
    %652 = vector.load %arg17[%c40_267, %c0_268] : memref<64x32xf32, #tpu.memory_space<vmem>>, vector<8x32xf32>
    tpu.vector_store %arg17[%c40_267, %c0_268], %650 {strides = array<i32>} : memref<64x32xf32, #tpu.memory_space<vmem>>, vector<8x32xf32>,
    %c0_269 = arith.constant 0 : index
    %c24_270 = arith.constant 24 : index
    %c0_271 = arith.constant 0 : index
    %653 = vector.load %arg15[%c0_269, %c24_270, %c0_271] : memref<2x64x96xf32, #tpu.memory_space<vmem>>, vector<1x8x96xf32>
    %654 = vector.shape_cast %653 : vector<1x8x96xf32> to vector<8x96xf32>
    %655 = arith.truncf %625 : vector<8x32xf32> to vector<8x32xbf16>
    %cst_272 = arith.constant dense<0.000000e+00> : vector<8x96xf32>
    %656 = tpu.matmul %655, %485, %cst_272 {dimension_numbers = #tpu.dot_dimension_numbers<[1], [0], [0], [1], [0, 0, 1, 1], [], []>} : vector<8x32xbf16>, vector<32x96xbf16>, vector<8x96xf32> -> vector<8x96xf32>
    %657 = vector.extract_strided_slice %654 {offsets = [0, 0], sizes = [8, 64], strides = [1, 1]} : vector<8x96xf32> to vector<8x64xf32>
    %658 = vector.extract_strided_slice %656 {offsets = [0, 0], sizes = [8, 64], strides = [1, 1]} : vector<8x96xf32> to vector<8x64xf32>
    %659 = arith.addf %657, %658 : vector<8x64xf32>
    %cst_273 = arith.constant 5.000000e-01 : f32
    %660 = vector.broadcast %cst_273 : f32 to vector<8x64xf32>
    %661 = arith.mulf %660, %659 : vector<8x64xf32>
    %662 = math.tanh %661 : vector<8x64xf32>
    %cst_274 = arith.constant 1.000000e+00 : f32
    %663 = vector.broadcast %cst_274 : f32 to vector<8x64xf32>
    %664 = arith.addf %662, %663 : vector<8x64xf32>
    %cst_275 = arith.constant 5.000000e-01 : f32
    %665 = vector.broadcast %cst_275 : f32 to vector<8x64xf32>
    %666 = arith.mulf %665, %664 : vector<8x64xf32>
    %667 = vector.extract_strided_slice %666 {offsets = [0, 0], sizes = [8, 32], strides = [1, 1]} : vector<8x64xf32> to vector<8x32xf32>
    %668 = vector.extract_strided_slice %666 {offsets = [0, 32], sizes = [8, 32], strides = [1, 1]} : vector<8x64xf32> to vector<8x32xf32>
    %669 = vector.extract_strided_slice %654 {offsets = [0, 64], sizes = [8, 32], strides = [1, 1]} : vector<8x96xf32> to vector<8x32xf32>
    %670 = vector.extract_strided_slice %656 {offsets = [0, 64], sizes = [8, 32], strides = [1, 1]} : vector<8x96xf32> to vector<8x32xf32>
    %671 = arith.addf %670, %491 : vector<8x32xf32>
    %672 = arith.mulf %667, %671 : vector<8x32xf32>
    %673 = arith.addf %669, %672 : vector<8x32xf32>
    %674 = math.tanh %673 : vector<8x32xf32>
    %675 = arith.subf %625, %674 : vector<8x32xf32>
    %676 = arith.mulf %668, %675 : vector<8x32xf32>
    %677 = arith.addf %674, %676 : vector<8x32xf32>
    %c1_276 = arith.constant 1 : index
    %c32_277 = arith.constant 32 : index
    %c0_278 = arith.constant 0 : index
    %678 = vector.load %arg15[%c1_276, %c32_277, %c0_278] : memref<2x64x96xf32, #tpu.memory_space<vmem>>, vector<1x8x96xf32>
    %679 = vector.shape_cast %678 : vector<1x8x96xf32> to vector<8x96xf32>
    %680 = arith.truncf %650 : vector<8x32xf32> to vector<8x32xbf16>
    %cst_279 = arith.constant dense<0.000000e+00> : vector<8x96xf32>
    %681 = tpu.matmul %680, %487, %cst_279 {dimension_numbers = #tpu.dot_dimension_numbers<[1], [0], [0], [1], [0, 0, 1, 1], [], []>} : vector<8x32xbf16>, vector<32x96xbf16>, vector<8x96xf32> -> vector<8x96xf32>
    %682 = vector.extract_strided_slice %679 {offsets = [0, 0], sizes = [8, 64], strides = [1, 1]} : vector<8x96xf32> to vector<8x64xf32>
    %683 = vector.extract_strided_slice %681 {offsets = [0, 0], sizes = [8, 64], strides = [1, 1]} : vector<8x96xf32> to vector<8x64xf32>
    %684 = arith.addf %682, %683 : vector<8x64xf32>
    %cst_280 = arith.constant 5.000000e-01 : f32
    %685 = vector.broadcast %cst_280 : f32 to vector<8x64xf32>
    %686 = arith.mulf %685, %684 : vector<8x64xf32>
    %687 = math.tanh %686 : vector<8x64xf32>
    %cst_281 = arith.constant 1.000000e+00 : f32
    %688 = vector.broadcast %cst_281 : f32 to vector<8x64xf32>
    %689 = arith.addf %687, %688 : vector<8x64xf32>
    %cst_282 = arith.constant 5.000000e-01 : f32
    %690 = vector.broadcast %cst_282 : f32 to vector<8x64xf32>
    %691 = arith.mulf %690, %689 : vector<8x64xf32>
    %692 = vector.extract_strided_slice %691 {offsets = [0, 0], sizes = [8, 32], strides = [1, 1]} : vector<8x64xf32> to vector<8x32xf32>
    %693 = vector.extract_strided_slice %691 {offsets = [0, 32], sizes = [8, 32], strides = [1, 1]} : vector<8x64xf32> to vector<8x32xf32>
    %694 = vector.extract_strided_slice %679 {offsets = [0, 64], sizes = [8, 32], strides = [1, 1]} : vector<8x96xf32> to vector<8x32xf32>
    %695 = vector.extract_strided_slice %681 {offsets = [0, 64], sizes = [8, 32], strides = [1, 1]} : vector<8x96xf32> to vector<8x32xf32>
    %696 = arith.addf %695, %495 : vector<8x32xf32>
    %697 = arith.mulf %692, %696 : vector<8x32xf32>
    %698 = arith.addf %694, %697 : vector<8x32xf32>
    %699 = math.tanh %698 : vector<8x32xf32>
    %700 = arith.subf %650, %699 : vector<8x32xf32>
    %701 = arith.mulf %693, %700 : vector<8x32xf32>
    %702 = arith.addf %699, %701 : vector<8x32xf32>
    %c24_283 = arith.constant 24 : index
    %c0_284 = arith.constant 0 : index
    %703 = vector.load %arg16[%c24_283, %c0_284] : memref<64x32xf32, #tpu.memory_space<vmem>>, vector<8x32xf32>
    tpu.vector_store %arg16[%c24_283, %c0_284], %677 {strides = array<i32>} : memref<64x32xf32, #tpu.memory_space<vmem>>, vector<8x32xf32>,
    %c32_285 = arith.constant 32 : index
    %c0_286 = arith.constant 0 : index
    %704 = vector.load %arg17[%c32_285, %c0_286] : memref<64x32xf32, #tpu.memory_space<vmem>>, vector<8x32xf32>
    tpu.vector_store %arg17[%c32_285, %c0_286], %702 {strides = array<i32>} : memref<64x32xf32, #tpu.memory_space<vmem>>, vector<8x32xf32>,
    %c0_287 = arith.constant 0 : index
    %c32_288 = arith.constant 32 : index
    %c0_289 = arith.constant 0 : index
    %705 = vector.load %arg15[%c0_287, %c32_288, %c0_289] : memref<2x64x96xf32, #tpu.memory_space<vmem>>, vector<1x8x96xf32>
    %706 = vector.shape_cast %705 : vector<1x8x96xf32> to vector<8x96xf32>
    %707 = arith.truncf %677 : vector<8x32xf32> to vector<8x32xbf16>
    %cst_290 = arith.constant dense<0.000000e+00> : vector<8x96xf32>
    %708 = tpu.matmul %707, %485, %cst_290 {dimension_numbers = #tpu.dot_dimension_numbers<[1], [0], [0], [1], [0, 0, 1, 1], [], []>} : vector<8x32xbf16>, vector<32x96xbf16>, vector<8x96xf32> -> vector<8x96xf32>
    %709 = vector.extract_strided_slice %706 {offsets = [0, 0], sizes = [8, 64], strides = [1, 1]} : vector<8x96xf32> to vector<8x64xf32>
    %710 = vector.extract_strided_slice %708 {offsets = [0, 0], sizes = [8, 64], strides = [1, 1]} : vector<8x96xf32> to vector<8x64xf32>
    %711 = arith.addf %709, %710 : vector<8x64xf32>
    %cst_291 = arith.constant 5.000000e-01 : f32
    %712 = vector.broadcast %cst_291 : f32 to vector<8x64xf32>
    %713 = arith.mulf %712, %711 : vector<8x64xf32>
    %714 = math.tanh %713 : vector<8x64xf32>
    %cst_292 = arith.constant 1.000000e+00 : f32
    %715 = vector.broadcast %cst_292 : f32 to vector<8x64xf32>
    %716 = arith.addf %714, %715 : vector<8x64xf32>
    %cst_293 = arith.constant 5.000000e-01 : f32
    %717 = vector.broadcast %cst_293 : f32 to vector<8x64xf32>
    %718 = arith.mulf %717, %716 : vector<8x64xf32>
    %719 = vector.extract_strided_slice %718 {offsets = [0, 0], sizes = [8, 32], strides = [1, 1]} : vector<8x64xf32> to vector<8x32xf32>
    %720 = vector.extract_strided_slice %718 {offsets = [0, 32], sizes = [8, 32], strides = [1, 1]} : vector<8x64xf32> to vector<8x32xf32>
    %721 = vector.extract_strided_slice %706 {offsets = [0, 64], sizes = [8, 32], strides = [1, 1]} : vector<8x96xf32> to vector<8x32xf32>
    %722 = vector.extract_strided_slice %708 {offsets = [0, 64], sizes = [8, 32], strides = [1, 1]} : vector<8x96xf32> to vector<8x32xf32>
    %723 = arith.addf %722, %491 : vector<8x32xf32>
    %724 = arith.mulf %719, %723 : vector<8x32xf32>
    %725 = arith.addf %721, %724 : vector<8x32xf32>
    %726 = math.tanh %725 : vector<8x32xf32>
    %727 = arith.subf %677, %726 : vector<8x32xf32>
    %728 = arith.mulf %720, %727 : vector<8x32xf32>
    %729 = arith.addf %726, %728 : vector<8x32xf32>
    %c1_294 = arith.constant 1 : index
    %c24_295 = arith.constant 24 : index
    %c0_296 = arith.constant 0 : index
    %730 = vector.load %arg15[%c1_294, %c24_295, %c0_296] : memref<2x64x96xf32, #tpu.memory_space<vmem>>, vector<1x8x96xf32>
    %731 = vector.shape_cast %730 : vector<1x8x96xf32> to vector<8x96xf32>
    %732 = arith.truncf %702 : vector<8x32xf32> to vector<8x32xbf16>
    %cst_297 = arith.constant dense<0.000000e+00> : vector<8x96xf32>
    %733 = tpu.matmul %732, %487, %cst_297 {dimension_numbers = #tpu.dot_dimension_numbers<[1], [0], [0], [1], [0, 0, 1, 1], [], []>} : vector<8x32xbf16>, vector<32x96xbf16>, vector<8x96xf32> -> vector<8x96xf32>
    %734 = vector.extract_strided_slice %731 {offsets = [0, 0], sizes = [8, 64], strides = [1, 1]} : vector<8x96xf32> to vector<8x64xf32>
    %735 = vector.extract_strided_slice %733 {offsets = [0, 0], sizes = [8, 64], strides = [1, 1]} : vector<8x96xf32> to vector<8x64xf32>
    %736 = arith.addf %734, %735 : vector<8x64xf32>
    %cst_298 = arith.constant 5.000000e-01 : f32
    %737 = vector.broadcast %cst_298 : f32 to vector<8x64xf32>
    %738 = arith.mulf %737, %736 : vector<8x64xf32>
    %739 = math.tanh %738 : vector<8x64xf32>
    %cst_299 = arith.constant 1.000000e+00 : f32
    %740 = vector.broadcast %cst_299 : f32 to vector<8x64xf32>
    %741 = arith.addf %739, %740 : vector<8x64xf32>
    %cst_300 = arith.constant 5.000000e-01 : f32
    %742 = vector.broadcast %cst_300 : f32 to vector<8x64xf32>
    %743 = arith.mulf %742, %741 : vector<8x64xf32>
    %744 = vector.extract_strided_slice %743 {offsets = [0, 0], sizes = [8, 32], strides = [1, 1]} : vector<8x64xf32> to vector<8x32xf32>
    %745 = vector.extract_strided_slice %743 {offsets = [0, 32], sizes = [8, 32], strides = [1, 1]} : vector<8x64xf32> to vector<8x32xf32>
    %746 = vector.extract_strided_slice %731 {offsets = [0, 64], sizes = [8, 32], strides = [1, 1]} : vector<8x96xf32> to vector<8x32xf32>
    %747 = vector.extract_strided_slice %733 {offsets = [0, 64], sizes = [8, 32], strides = [1, 1]} : vector<8x96xf32> to vector<8x32xf32>
    %748 = arith.addf %747, %495 : vector<8x32xf32>
    %749 = arith.mulf %744, %748 : vector<8x32xf32>
    %750 = arith.addf %746, %749 : vector<8x32xf32>
    %751 = math.tanh %750 : vector<8x32xf32>
    %752 = arith.subf %702, %751 : vector<8x32xf32>
    %753 = arith.mulf %745, %752 : vector<8x32xf32>
    %754 = arith.addf %751, %753 : vector<8x32xf32>
    %c32_301 = arith.constant 32 : index
    %c0_302 = arith.constant 0 : index
    %755 = vector.load %arg16[%c32_301, %c0_302] : memref<64x32xf32, #tpu.memory_space<vmem>>, vector<8x32xf32>
    tpu.vector_store %arg16[%c32_301, %c0_302], %729 {strides = array<i32>} : memref<64x32xf32, #tpu.memory_space<vmem>>, vector<8x32xf32>,
    %c24_303 = arith.constant 24 : index
    %c0_304 = arith.constant 0 : index
    %756 = vector.load %arg17[%c24_303, %c0_304] : memref<64x32xf32, #tpu.memory_space<vmem>>, vector<8x32xf32>
    tpu.vector_store %arg17[%c24_303, %c0_304], %754 {strides = array<i32>} : memref<64x32xf32, #tpu.memory_space<vmem>>, vector<8x32xf32>,
    %c0_305 = arith.constant 0 : index
    %c40_306 = arith.constant 40 : index
    %c0_307 = arith.constant 0 : index
    %757 = vector.load %arg15[%c0_305, %c40_306, %c0_307] : memref<2x64x96xf32, #tpu.memory_space<vmem>>, vector<1x8x96xf32>
    %758 = vector.shape_cast %757 : vector<1x8x96xf32> to vector<8x96xf32>
    %759 = arith.truncf %729 : vector<8x32xf32> to vector<8x32xbf16>
    %cst_308 = arith.constant dense<0.000000e+00> : vector<8x96xf32>
    %760 = tpu.matmul %759, %485, %cst_308 {dimension_numbers = #tpu.dot_dimension_numbers<[1], [0], [0], [1], [0, 0, 1, 1], [], []>} : vector<8x32xbf16>, vector<32x96xbf16>, vector<8x96xf32> -> vector<8x96xf32>
    %761 = vector.extract_strided_slice %758 {offsets = [0, 0], sizes = [8, 64], strides = [1, 1]} : vector<8x96xf32> to vector<8x64xf32>
    %762 = vector.extract_strided_slice %760 {offsets = [0, 0], sizes = [8, 64], strides = [1, 1]} : vector<8x96xf32> to vector<8x64xf32>
    %763 = arith.addf %761, %762 : vector<8x64xf32>
    %cst_309 = arith.constant 5.000000e-01 : f32
    %764 = vector.broadcast %cst_309 : f32 to vector<8x64xf32>
    %765 = arith.mulf %764, %763 : vector<8x64xf32>
    %766 = math.tanh %765 : vector<8x64xf32>
    %cst_310 = arith.constant 1.000000e+00 : f32
    %767 = vector.broadcast %cst_310 : f32 to vector<8x64xf32>
    %768 = arith.addf %766, %767 : vector<8x64xf32>
    %cst_311 = arith.constant 5.000000e-01 : f32
    %769 = vector.broadcast %cst_311 : f32 to vector<8x64xf32>
    %770 = arith.mulf %769, %768 : vector<8x64xf32>
    %771 = vector.extract_strided_slice %770 {offsets = [0, 0], sizes = [8, 32], strides = [1, 1]} : vector<8x64xf32> to vector<8x32xf32>
    %772 = vector.extract_strided_slice %770 {offsets = [0, 32], sizes = [8, 32], strides = [1, 1]} : vector<8x64xf32> to vector<8x32xf32>
    %773 = vector.extract_strided_slice %758 {offsets = [0, 64], sizes = [8, 32], strides = [1, 1]} : vector<8x96xf32> to vector<8x32xf32>
    %774 = vector.extract_strided_slice %760 {offsets = [0, 64], sizes = [8, 32], strides = [1, 1]} : vector<8x96xf32> to vector<8x32xf32>
    %775 = arith.addf %774, %491 : vector<8x32xf32>
    %776 = arith.mulf %771, %775 : vector<8x32xf32>
    %777 = arith.addf %773, %776 : vector<8x32xf32>
    %778 = math.tanh %777 : vector<8x32xf32>
    %779 = arith.subf %729, %778 : vector<8x32xf32>
    %780 = arith.mulf %772, %779 : vector<8x32xf32>
    %781 = arith.addf %778, %780 : vector<8x32xf32>
    %c1_312 = arith.constant 1 : index
    %c16_313 = arith.constant 16 : index
    %c0_314 = arith.constant 0 : index
    %782 = vector.load %arg15[%c1_312, %c16_313, %c0_314] : memref<2x64x96xf32, #tpu.memory_space<vmem>>, vector<1x8x96xf32>
    %783 = vector.shape_cast %782 : vector<1x8x96xf32> to vector<8x96xf32>
    %784 = arith.truncf %754 : vector<8x32xf32> to vector<8x32xbf16>
    %cst_315 = arith.constant dense<0.000000e+00> : vector<8x96xf32>
    %785 = tpu.matmul %784, %487, %cst_315 {dimension_numbers = #tpu.dot_dimension_numbers<[1], [0], [0], [1], [0, 0, 1, 1], [], []>} : vector<8x32xbf16>, vector<32x96xbf16>, vector<8x96xf32> -> vector<8x96xf32>
    %786 = vector.extract_strided_slice %783 {offsets = [0, 0], sizes = [8, 64], strides = [1, 1]} : vector<8x96xf32> to vector<8x64xf32>
    %787 = vector.extract_strided_slice %785 {offsets = [0, 0], sizes = [8, 64], strides = [1, 1]} : vector<8x96xf32> to vector<8x64xf32>
    %788 = arith.addf %786, %787 : vector<8x64xf32>
    %cst_316 = arith.constant 5.000000e-01 : f32
    %789 = vector.broadcast %cst_316 : f32 to vector<8x64xf32>
    %790 = arith.mulf %789, %788 : vector<8x64xf32>
    %791 = math.tanh %790 : vector<8x64xf32>
    %cst_317 = arith.constant 1.000000e+00 : f32
    %792 = vector.broadcast %cst_317 : f32 to vector<8x64xf32>
    %793 = arith.addf %791, %792 : vector<8x64xf32>
    %cst_318 = arith.constant 5.000000e-01 : f32
    %794 = vector.broadcast %cst_318 : f32 to vector<8x64xf32>
    %795 = arith.mulf %794, %793 : vector<8x64xf32>
    %796 = vector.extract_strided_slice %795 {offsets = [0, 0], sizes = [8, 32], strides = [1, 1]} : vector<8x64xf32> to vector<8x32xf32>
    %797 = vector.extract_strided_slice %795 {offsets = [0, 32], sizes = [8, 32], strides = [1, 1]} : vector<8x64xf32> to vector<8x32xf32>
    %798 = vector.extract_strided_slice %783 {offsets = [0, 64], sizes = [8, 32], strides = [1, 1]} : vector<8x96xf32> to vector<8x32xf32>
    %799 = vector.extract_strided_slice %785 {offsets = [0, 64], sizes = [8, 32], strides = [1, 1]} : vector<8x96xf32> to vector<8x32xf32>
    %800 = arith.addf %799, %495 : vector<8x32xf32>
    %801 = arith.mulf %796, %800 : vector<8x32xf32>
    %802 = arith.addf %798, %801 : vector<8x32xf32>
    %803 = math.tanh %802 : vector<8x32xf32>
    %804 = arith.subf %754, %803 : vector<8x32xf32>
    %805 = arith.mulf %797, %804 : vector<8x32xf32>
    %806 = arith.addf %803, %805 : vector<8x32xf32>
    %c40_319 = arith.constant 40 : index
    %c0_320 = arith.constant 0 : index
    %807 = vector.load %arg16[%c40_319, %c0_320] : memref<64x32xf32, #tpu.memory_space<vmem>>, vector<8x32xf32>
    tpu.vector_store %arg16[%c40_319, %c0_320], %781 {strides = array<i32>} : memref<64x32xf32, #tpu.memory_space<vmem>>, vector<8x32xf32>,
    %c16_321 = arith.constant 16 : index
    %c0_322 = arith.constant 0 : index
    %808 = vector.load %arg17[%c16_321, %c0_322] : memref<64x32xf32, #tpu.memory_space<vmem>>, vector<8x32xf32>
    tpu.vector_store %arg17[%c16_321, %c0_322], %806 {strides = array<i32>} : memref<64x32xf32, #tpu.memory_space<vmem>>, vector<8x32xf32>,
    %c0_323 = arith.constant 0 : index
    %c48_324 = arith.constant 48 : index
    %c0_325 = arith.constant 0 : index
    %809 = vector.load %arg15[%c0_323, %c48_324, %c0_325] : memref<2x64x96xf32, #tpu.memory_space<vmem>>, vector<1x8x96xf32>
    %810 = vector.shape_cast %809 : vector<1x8x96xf32> to vector<8x96xf32>
    %811 = arith.truncf %781 : vector<8x32xf32> to vector<8x32xbf16>
    %cst_326 = arith.constant dense<0.000000e+00> : vector<8x96xf32>
    %812 = tpu.matmul %811, %485, %cst_326 {dimension_numbers = #tpu.dot_dimension_numbers<[1], [0], [0], [1], [0, 0, 1, 1], [], []>} : vector<8x32xbf16>, vector<32x96xbf16>, vector<8x96xf32> -> vector<8x96xf32>
    %813 = vector.extract_strided_slice %810 {offsets = [0, 0], sizes = [8, 64], strides = [1, 1]} : vector<8x96xf32> to vector<8x64xf32>
    %814 = vector.extract_strided_slice %812 {offsets = [0, 0], sizes = [8, 64], strides = [1, 1]} : vector<8x96xf32> to vector<8x64xf32>
    %815 = arith.addf %813, %814 : vector<8x64xf32>
    %cst_327 = arith.constant 5.000000e-01 : f32
    %816 = vector.broadcast %cst_327 : f32 to vector<8x64xf32>
    %817 = arith.mulf %816, %815 : vector<8x64xf32>
    %818 = math.tanh %817 : vector<8x64xf32>
    %cst_328 = arith.constant 1.000000e+00 : f32
    %819 = vector.broadcast %cst_328 : f32 to vector<8x64xf32>
    %820 = arith.addf %818, %819 : vector<8x64xf32>
    %cst_329 = arith.constant 5.000000e-01 : f32
    %821 = vector.broadcast %cst_329 : f32 to vector<8x64xf32>
    %822 = arith.mulf %821, %820 : vector<8x64xf32>
    %823 = vector.extract_strided_slice %822 {offsets = [0, 0], sizes = [8, 32], strides = [1, 1]} : vector<8x64xf32> to vector<8x32xf32>
    %824 = vector.extract_strided_slice %822 {offsets = [0, 32], sizes = [8, 32], strides = [1, 1]} : vector<8x64xf32> to vector<8x32xf32>
    %825 = vector.extract_strided_slice %810 {offsets = [0, 64], sizes = [8, 32], strides = [1, 1]} : vector<8x96xf32> to vector<8x32xf32>
    %826 = vector.extract_strided_slice %812 {offsets = [0, 64], sizes = [8, 32], strides = [1, 1]} : vector<8x96xf32> to vector<8x32xf32>
    %827 = arith.addf %826, %491 : vector<8x32xf32>
    %828 = arith.mulf %823, %827 : vector<8x32xf32>
    %829 = arith.addf %825, %828 : vector<8x32xf32>
    %830 = math.tanh %829 : vector<8x32xf32>
    %831 = arith.subf %781, %830 : vector<8x32xf32>
    %832 = arith.mulf %824, %831 : vector<8x32xf32>
    %833 = arith.addf %830, %832 : vector<8x32xf32>
    %c1_330 = arith.constant 1 : index
    %c8_331 = arith.constant 8 : index
    %c0_332 = arith.constant 0 : index
    %834 = vector.load %arg15[%c1_330, %c8_331, %c0_332] : memref<2x64x96xf32, #tpu.memory_space<vmem>>, vector<1x8x96xf32>
    %835 = vector.shape_cast %834 : vector<1x8x96xf32> to vector<8x96xf32>
    %836 = arith.truncf %806 : vector<8x32xf32> to vector<8x32xbf16>
    %cst_333 = arith.constant dense<0.000000e+00> : vector<8x96xf32>
    %837 = tpu.matmul %836, %487, %cst_333 {dimension_numbers = #tpu.dot_dimension_numbers<[1], [0], [0], [1], [0, 0, 1, 1], [], []>} : vector<8x32xbf16>, vector<32x96xbf16>, vector<8x96xf32> -> vector<8x96xf32>
    %838 = vector.extract_strided_slice %835 {offsets = [0, 0], sizes = [8, 64], strides = [1, 1]} : vector<8x96xf32> to vector<8x64xf32>
    %839 = vector.extract_strided_slice %837 {offsets = [0, 0], sizes = [8, 64], strides = [1, 1]} : vector<8x96xf32> to vector<8x64xf32>
    %840 = arith.addf %838, %839 : vector<8x64xf32>
    %cst_334 = arith.constant 5.000000e-01 : f32
    %841 = vector.broadcast %cst_334 : f32 to vector<8x64xf32>
    %842 = arith.mulf %841, %840 : vector<8x64xf32>
    %843 = math.tanh %842 : vector<8x64xf32>
    %cst_335 = arith.constant 1.000000e+00 : f32
    %844 = vector.broadcast %cst_335 : f32 to vector<8x64xf32>
    %845 = arith.addf %843, %844 : vector<8x64xf32>
    %cst_336 = arith.constant 5.000000e-01 : f32
    %846 = vector.broadcast %cst_336 : f32 to vector<8x64xf32>
    %847 = arith.mulf %846, %845 : vector<8x64xf32>
    %848 = vector.extract_strided_slice %847 {offsets = [0, 0], sizes = [8, 32], strides = [1, 1]} : vector<8x64xf32> to vector<8x32xf32>
    %849 = vector.extract_strided_slice %847 {offsets = [0, 32], sizes = [8, 32], strides = [1, 1]} : vector<8x64xf32> to vector<8x32xf32>
    %850 = vector.extract_strided_slice %835 {offsets = [0, 64], sizes = [8, 32], strides = [1, 1]} : vector<8x96xf32> to vector<8x32xf32>
    %851 = vector.extract_strided_slice %837 {offsets = [0, 64], sizes = [8, 32], strides = [1, 1]} : vector<8x96xf32> to vector<8x32xf32>
    %852 = arith.addf %851, %495 : vector<8x32xf32>
    %853 = arith.mulf %848, %852 : vector<8x32xf32>
    %854 = arith.addf %850, %853 : vector<8x32xf32>
    %855 = math.tanh %854 : vector<8x32xf32>
    %856 = arith.subf %806, %855 : vector<8x32xf32>
    %857 = arith.mulf %849, %856 : vector<8x32xf32>
    %858 = arith.addf %855, %857 : vector<8x32xf32>
    %c48_337 = arith.constant 48 : index
    %c0_338 = arith.constant 0 : index
    %859 = vector.load %arg16[%c48_337, %c0_338] : memref<64x32xf32, #tpu.memory_space<vmem>>, vector<8x32xf32>
    tpu.vector_store %arg16[%c48_337, %c0_338], %833 {strides = array<i32>} : memref<64x32xf32, #tpu.memory_space<vmem>>, vector<8x32xf32>,
    %c8_339 = arith.constant 8 : index
    %c0_340 = arith.constant 0 : index
    %860 = vector.load %arg17[%c8_339, %c0_340] : memref<64x32xf32, #tpu.memory_space<vmem>>, vector<8x32xf32>
    tpu.vector_store %arg17[%c8_339, %c0_340], %858 {strides = array<i32>} : memref<64x32xf32, #tpu.memory_space<vmem>>, vector<8x32xf32>,
    %c0_341 = arith.constant 0 : index
    %c56_342 = arith.constant 56 : index
    %c0_343 = arith.constant 0 : index
    %861 = vector.load %arg15[%c0_341, %c56_342, %c0_343] : memref<2x64x96xf32, #tpu.memory_space<vmem>>, vector<1x8x96xf32>
    %862 = vector.shape_cast %861 : vector<1x8x96xf32> to vector<8x96xf32>
    %863 = arith.truncf %833 : vector<8x32xf32> to vector<8x32xbf16>
    %cst_344 = arith.constant dense<0.000000e+00> : vector<8x96xf32>
    %864 = tpu.matmul %863, %485, %cst_344 {dimension_numbers = #tpu.dot_dimension_numbers<[1], [0], [0], [1], [0, 0, 1, 1], [], []>} : vector<8x32xbf16>, vector<32x96xbf16>, vector<8x96xf32> -> vector<8x96xf32>
    %865 = vector.extract_strided_slice %862 {offsets = [0, 0], sizes = [8, 64], strides = [1, 1]} : vector<8x96xf32> to vector<8x64xf32>
    %866 = vector.extract_strided_slice %864 {offsets = [0, 0], sizes = [8, 64], strides = [1, 1]} : vector<8x96xf32> to vector<8x64xf32>
    %867 = arith.addf %865, %866 : vector<8x64xf32>
    %cst_345 = arith.constant 5.000000e-01 : f32
    %868 = vector.broadcast %cst_345 : f32 to vector<8x64xf32>
    %869 = arith.mulf %868, %867 : vector<8x64xf32>
    %870 = math.tanh %869 : vector<8x64xf32>
    %cst_346 = arith.constant 1.000000e+00 : f32
    %871 = vector.broadcast %cst_346 : f32 to vector<8x64xf32>
    %872 = arith.addf %870, %871 : vector<8x64xf32>
    %cst_347 = arith.constant 5.000000e-01 : f32
    %873 = vector.broadcast %cst_347 : f32 to vector<8x64xf32>
    %874 = arith.mulf %873, %872 : vector<8x64xf32>
    %875 = vector.extract_strided_slice %874 {offsets = [0, 0], sizes = [8, 32], strides = [1, 1]} : vector<8x64xf32> to vector<8x32xf32>
    %876 = vector.extract_strided_slice %874 {offsets = [0, 32], sizes = [8, 32], strides = [1, 1]} : vector<8x64xf32> to vector<8x32xf32>
    %877 = vector.extract_strided_slice %862 {offsets = [0, 64], sizes = [8, 32], strides = [1, 1]} : vector<8x96xf32> to vector<8x32xf32>
    %878 = vector.extract_strided_slice %864 {offsets = [0, 64], sizes = [8, 32], strides = [1, 1]} : vector<8x96xf32> to vector<8x32xf32>
    %879 = arith.addf %878, %491 : vector<8x32xf32>
    %880 = arith.mulf %875, %879 : vector<8x32xf32>
    %881 = arith.addf %877, %880 : vector<8x32xf32>
    %882 = math.tanh %881 : vector<8x32xf32>
    %883 = arith.subf %833, %882 : vector<8x32xf32>
    %884 = arith.mulf %876, %883 : vector<8x32xf32>
    %885 = arith.addf %882, %884 : vector<8x32xf32>
    %c1_348 = arith.constant 1 : index
    %c0_349 = arith.constant 0 : index
    %c0_350 = arith.constant 0 : index
    %886 = vector.load %arg15[%c1_348, %c0_349, %c0_350] : memref<2x64x96xf32, #tpu.memory_space<vmem>>, vector<1x8x96xf32>
    %887 = vector.shape_cast %886 : vector<1x8x96xf32> to vector<8x96xf32>
    %888 = arith.truncf %858 : vector<8x32xf32> to vector<8x32xbf16>
    %cst_351 = arith.constant dense<0.000000e+00> : vector<8x96xf32>
    %889 = tpu.matmul %888, %487, %cst_351 {dimension_numbers = #tpu.dot_dimension_numbers<[1], [0], [0], [1], [0, 0, 1, 1], [], []>} : vector<8x32xbf16>, vector<32x96xbf16>, vector<8x96xf32> -> vector<8x96xf32>
    %890 = vector.extract_strided_slice %887 {offsets = [0, 0], sizes = [8, 64], strides = [1, 1]} : vector<8x96xf32> to vector<8x64xf32>
    %891 = vector.extract_strided_slice %889 {offsets = [0, 0], sizes = [8, 64], strides = [1, 1]} : vector<8x96xf32> to vector<8x64xf32>
    %892 = arith.addf %890, %891 : vector<8x64xf32>
    %cst_352 = arith.constant 5.000000e-01 : f32
    %893 = vector.broadcast %cst_352 : f32 to vector<8x64xf32>
    %894 = arith.mulf %893, %892 : vector<8x64xf32>
    %895 = math.tanh %894 : vector<8x64xf32>
    %cst_353 = arith.constant 1.000000e+00 : f32
    %896 = vector.broadcast %cst_353 : f32 to vector<8x64xf32>
    %897 = arith.addf %895, %896 : vector<8x64xf32>
    %cst_354 = arith.constant 5.000000e-01 : f32
    %898 = vector.broadcast %cst_354 : f32 to vector<8x64xf32>
    %899 = arith.mulf %898, %897 : vector<8x64xf32>
    %900 = vector.extract_strided_slice %899 {offsets = [0, 0], sizes = [8, 32], strides = [1, 1]} : vector<8x64xf32> to vector<8x32xf32>
    %901 = vector.extract_strided_slice %899 {offsets = [0, 32], sizes = [8, 32], strides = [1, 1]} : vector<8x64xf32> to vector<8x32xf32>
    %902 = vector.extract_strided_slice %887 {offsets = [0, 64], sizes = [8, 32], strides = [1, 1]} : vector<8x96xf32> to vector<8x32xf32>
    %903 = vector.extract_strided_slice %889 {offsets = [0, 64], sizes = [8, 32], strides = [1, 1]} : vector<8x96xf32> to vector<8x32xf32>
    %904 = arith.addf %903, %495 : vector<8x32xf32>
    %905 = arith.mulf %900, %904 : vector<8x32xf32>
    %906 = arith.addf %902, %905 : vector<8x32xf32>
    %907 = math.tanh %906 : vector<8x32xf32>
    %908 = arith.subf %858, %907 : vector<8x32xf32>
    %909 = arith.mulf %901, %908 : vector<8x32xf32>
    %910 = arith.addf %907, %909 : vector<8x32xf32>
    %c56_355 = arith.constant 56 : index
    %c0_356 = arith.constant 0 : index
    %911 = vector.load %arg16[%c56_355, %c0_356] : memref<64x32xf32, #tpu.memory_space<vmem>>, vector<8x32xf32>
    tpu.vector_store %arg16[%c56_355, %c0_356], %885 {strides = array<i32>} : memref<64x32xf32, #tpu.memory_space<vmem>>, vector<8x32xf32>,
    %c0_357 = arith.constant 0 : index
    %c0_358 = arith.constant 0 : index
    %912 = vector.load %arg17[%c0_357, %c0_358] : memref<64x32xf32, #tpu.memory_space<vmem>>, vector<8x32xf32>
    tpu.vector_store %arg17[%c0_357, %c0_358], %910 {strides = array<i32>} : memref<64x32xf32, #tpu.memory_space<vmem>>, vector<8x32xf32>,
    %c0_359 = arith.constant 0 : index
    %c0_360 = arith.constant 0 : index
    %913 = vector.load %arg16[%c0_359, %c0_360] : memref<64x32xf32, #tpu.memory_space<vmem>>, vector<64x32xf32>
    %914 = arith.truncf %913 : vector<64x32xf32> to vector<64x32xbf16>
    %c0_361 = arith.constant 0 : index
    %c0_362 = arith.constant 0 : index
    %915 = vector.load %arg11[%c0_361, %c0_362] : memref<32x32xbf16, #tpu.memory_space<vmem>>, vector<32x32xbf16>
    %cst_363 = arith.constant dense<0.000000e+00> : vector<64x32xf32>
    %916 = tpu.matmul %914, %915, %cst_363 {dimension_numbers = #tpu.dot_dimension_numbers<[1], [0], [0], [1], [0, 0, 1, 1], [], []>} : vector<64x32xbf16>, vector<32x32xbf16>, vector<64x32xf32> -> vector<64x32xf32>
    %c0_364 = arith.constant 0 : index
    %c0_365 = arith.constant 0 : index
    %917 = vector.load %arg17[%c0_364, %c0_365] : memref<64x32xf32, #tpu.memory_space<vmem>>, vector<64x32xf32>
    %918 = arith.truncf %917 : vector<64x32xf32> to vector<64x32xbf16>
    %c0_366 = arith.constant 0 : index
    %c0_367 = arith.constant 0 : index
    %919 = vector.load %arg12[%c0_366, %c0_367] : memref<32x32xbf16, #tpu.memory_space<vmem>>, vector<32x32xbf16>
    %cst_368 = arith.constant dense<0.000000e+00> : vector<64x32xf32>
    %920 = tpu.matmul %918, %919, %cst_368 {dimension_numbers = #tpu.dot_dimension_numbers<[1], [0], [0], [1], [0, 0, 1, 1], [], []>} : vector<64x32xbf16>, vector<32x32xbf16>, vector<64x32xf32> -> vector<64x32xf32>
    %921 = arith.addf %916, %920 : vector<64x32xf32>
    %c0_369 = arith.constant 0 : index
    %c0_370 = arith.constant 0 : index
    %922 = vector.load %arg13[%c0_369, %c0_370] : memref<1x32xf32, #tpu.memory_space<vmem>>, vector<1x32xf32>
    %923 = vector.broadcast %922 : vector<1x32xf32> to vector<64x32xf32>
    %924 = arith.addf %921, %923 : vector<64x32xf32>
    %925 = vector.shape_cast %924 : vector<64x32xf32> to vector<8x8x32xf32>
    %c0_371 = arith.constant 0 : index
    %c0_372 = arith.constant 0 : index
    %c0_373 = arith.constant 0 : index
    %926 = vector.load %arg14[%c0_371, %c0_372, %c0_373] : memref<8x8x32xf32, #tpu.memory_space<vmem>>, vector<8x8x32xf32>
    tpu.vector_store %arg14[%c0_371, %c0_372, %c0_373], %925 {strides = array<i32>} : memref<8x8x32xf32, #tpu.memory_space<vmem>>, vector<8x8x32xf32>,
    return
  }
  func.func @transform_0(%arg0: i32) -> (i32, i32, i32) {
    %c0_i32 = arith.constant 0 : i32
    %c0_i32_0 = arith.constant 0 : i32
    %c0_i32_1 = arith.constant 0 : i32
    return %c0_i32, %arg0, %c0_i32_0 : i32, i32, i32
  }
  func.func @transform_1(%arg0: i32) -> (i32, i32, i32) {
    %c0_i32 = arith.constant 0 : i32
    %c0_i32_0 = arith.constant 0 : i32
    %c0_i32_1 = arith.constant 0 : i32
    %c0_i32_2 = arith.constant 0 : i32
    return %c0_i32, %c0_i32_0, %c0_i32_1 : i32, i32, i32
  }
  func.func @transform_2(%arg0: i32) -> (i32, i32, i32) {
    %c0_i32 = arith.constant 0 : i32
    %c0_i32_0 = arith.constant 0 : i32
    %c0_i32_1 = arith.constant 0 : i32
    %c0_i32_2 = arith.constant 0 : i32
    return %c0_i32, %c0_i32_0, %c0_i32_1 : i32, i32, i32
  }
  func.func @transform_3(%arg0: i32) -> (i32, i32, i32) {
    %c0_i32 = arith.constant 0 : i32
    %c0_i32_0 = arith.constant 0 : i32
    %c0_i32_1 = arith.constant 0 : i32
    %c0_i32_2 = arith.constant 0 : i32
    return %c0_i32, %c0_i32_0, %c0_i32_1 : i32, i32, i32
  }
  func.func @transform_4(%arg0: i32) -> (i32, i32, i32) {
    %c0_i32 = arith.constant 0 : i32
    %c0_i32_0 = arith.constant 0 : i32
    %c0_i32_1 = arith.constant 0 : i32
    %c0_i32_2 = arith.constant 0 : i32
    return %c0_i32, %c0_i32_0, %c0_i32_1 : i32, i32, i32
  }
  func.func @transform_5(%arg0: i32) -> (i32, i32, i32) {
    %c0_i32 = arith.constant 0 : i32
    %c0_i32_0 = arith.constant 0 : i32
    %c0_i32_1 = arith.constant 0 : i32
    %c0_i32_2 = arith.constant 0 : i32
    return %c0_i32, %c0_i32_0, %c0_i32_1 : i32, i32, i32
  }
  func.func @transform_6(%arg0: i32) -> (i32, i32, i32) {
    %c0_i32 = arith.constant 0 : i32
    %c0_i32_0 = arith.constant 0 : i32
    %c0_i32_1 = arith.constant 0 : i32
    %c0_i32_2 = arith.constant 0 : i32
    return %c0_i32, %c0_i32_0, %c0_i32_1 : i32, i32, i32
  }
  func.func @transform_7(%arg0: i32) -> (i32, i32, i32) {
    %c0_i32 = arith.constant 0 : i32
    %c0_i32_0 = arith.constant 0 : i32
    %c0_i32_1 = arith.constant 0 : i32
    %c0_i32_2 = arith.constant 0 : i32
    return %c0_i32, %c0_i32_0, %c0_i32_1 : i32, i32, i32
  }
  func.func @transform_8(%arg0: i32) -> (i32, i32, i32) {
    %c0_i32 = arith.constant 0 : i32
    %c0_i32_0 = arith.constant 0 : i32
    %c0_i32_1 = arith.constant 0 : i32
    %c0_i32_2 = arith.constant 0 : i32
    return %c0_i32, %c0_i32_0, %c0_i32_1 : i32, i32, i32
  }
  func.func @transform_9(%arg0: i32) -> (i32, i32, i32) {
    %c0_i32 = arith.constant 0 : i32
    %c0_i32_0 = arith.constant 0 : i32
    %c0_i32_1 = arith.constant 0 : i32
    %c0_i32_2 = arith.constant 0 : i32
    return %c0_i32, %c0_i32_0, %c0_i32_1 : i32, i32, i32
  }
  func.func @transform_10(%arg0: i32) -> (i32, i32) {
    %c0_i32 = arith.constant 0 : i32
    %c0_i32_0 = arith.constant 0 : i32
    %c0_i32_1 = arith.constant 0 : i32
    return %c0_i32, %c0_i32_0 : i32, i32
  }
  func.func @transform_11(%arg0: i32) -> (i32, i32) {
    %c0_i32 = arith.constant 0 : i32
    %c0_i32_0 = arith.constant 0 : i32
    %c0_i32_1 = arith.constant 0 : i32
    return %c0_i32, %c0_i32_0 : i32, i32
  }
  func.func @transform_12(%arg0: i32) -> (i32, i32) {
    %c0_i32 = arith.constant 0 : i32
    %c0_i32_0 = arith.constant 0 : i32
    %c0_i32_1 = arith.constant 0 : i32
    return %c0_i32, %c0_i32_0 : i32, i32
  }
  func.func @transform_13(%arg0: i32) -> (i32, i32, i32) {
    %c0_i32 = arith.constant 0 : i32
    %c0_i32_0 = arith.constant 0 : i32
    %c0_i32_1 = arith.constant 0 : i32
    return %c0_i32, %arg0, %c0_i32_0 : i32, i32, i32
  }
}

</mosaic_0001>

<bundles_post_ra>
// kernel: gru_block_forward.1
= control target key start
LH: loop header
LB: loop body
LE: loop exit
PB: predicated region body
PF: predicated region fallthrough
CT: control target
= control target key end

     0   :  { %18 = vsyncpa [#allocation6], 0  ;;  %s5579_s0 = inlined_call_operand.vmem [shape: f32[8,8,16], index: 0, kind: input, shape index: {}]   ;;  %s5580_s1 = inlined_call_operand.hbm [shape: bf16[2,16,96], index: 1, kind: input, shape index: {}]   ;;  %s5581_s2 = inlined_call_operand.vmem [shape: bf16[2,32,96], index: 2, kind: input, shape index: {}]   ;;  %s5582_s3 = inlined_call_operand.vmem [shape: f32[2,1,96], index: 3, kind: input, shape index: {}]   ;;  %s5583_s4 = inlined_call_operand.hbm [shape: f32[2,1,32], index: 4, kind: input, shape index: {}]   ;;  %s5584_s5 = inlined_call_operand.vmem [shape: bf16[2,32,96], index: 5, kind: input, shape index: {}]   ;;  %s5585_s6 = inlined_call_operand.vmem [shape: bf16[2,32,96], index: 6, kind: input, shape index: {}]   ;;  %s5586_s7 = inlined_call_operand.vmem [shape: bf16[2,32,96], index: 7, kind: input, shape index: {}]   ;;  %s5587_s8 = inlined_call_operand.hbm [shape: f32[2,1,96], index: 8, kind: input, shape index: {}]   ;;  %s5588_s9 = inlined_call_operand.hbm [shape: f32[2,1,32], index: 9, kind: input, shape index: {}]   ;;  %s5589_s10 = inlined_call_operand.vmem [shape: bf16[32,32], index: 10, kind: input, shape index: {}]   ;;  %s5590_s11 = inlined_call_operand.hbm [shape: bf16[32,32], index: 11, kind: input, shape index: {}]   ;;  %s5591_s12 = inlined_call_operand.vmem [shape: f32[1,32], index: 12, kind: input, shape index: {}]   ;;  %s5592_s13 = inlined_call_operand.vmem [shape: f32[8,8,32], index: 13, kind: output, shape index: {}]  }
   0x1   :  { %19 = vsyncpa [#allocation8], 0 }
   0x2   :  { %20 = vsyncpa [#allocation11], 0  ;;  %s4561_s25 = smov [#allocation7]   ;;  %s4445_s29 = scalar_lea.hbm %s5583_s4, 32 }
   0x3   :  { %s44_s26 = sshll.u32 %s4561_s25, 4  ;;  %p4446_p0 = scmp.ne.s32.totalorder %s5583_s4, %s4445_s29  ;;  %s45_s26 = int_to_ptr.vmem [resolvable:$true] %s44_s26 }
   0x4   :  { %p4449_p1 = scmp.lt.u32.totalorder %s4445_s29, %s5583_s4 }
   0x6   :  { %p4451_p2 = pnand %p4449_p1, %p4446_p0 }
   0x8   :  { %4454 = shalt.err (!%p4451_p2)
}
   0x9   :  { %s4455_s17 = scalar_lea.vmem %s45_s26, 32  ;;  %p4460_p4 = scmp.lt.s32.totalorder %s45_s26, %s45_s26 }
   0xa   :  { %p4456_p3 = scmp.ne.s32.totalorder %s45_s26, %s4455_s17  ;;  %p4461_p5 = scmp.lt.s32.totalorder %s4455_s17, %s4455_s17 }
   0xc   :  { %p4462_p6 = por %p4461_p5, %p4460_p4 }
   0xe   :  { %p4463_p7 = pnand %p4462_p6, %p4456_p3 }
  0x10   :  { %4466 = shalt.err (!%p4463_p7)
}
  0x11   :  { %s4562_s18 = smov 16   ;;  %s4563_s19 = smov 1  }
  0x12   :  { %50 = dma.hbm_to_vmem [thread:$0]  %s5583_s4, 32, %s45_s26, [#allocation8], %s4562_s18, %s4562_s18, %s4563_s19  }
  0x13   :  { %s4564_s22 = smov [#allocation10]   ;;  %s4565_s24 = smov [#allocation5]  }
  0x14   :  { %s74_s23 = sshll.u32 %s4564_s22, 4  ;;  %s28_s25 = sshll.u32 %s4565_s24, 4  ;;  %s75_s23 = int_to_ptr.vmem [resolvable:$true] %s74_s23  ;;  %s29_s25 = int_to_ptr.vmem [resolvable:$true] %s28_s25 }
  0x15   :  { %s4467_s29 = scalar_lea.hbm %s5588_s9, 32 }
  0x16   :  { %p4468_p8 = scmp.ne.s32.totalorder %s5588_s9, %s4467_s29  ;;  %p4471_p9 = scmp.lt.u32.totalorder %s4467_s29, %s5588_s9 }
  0x18   :  { %p4473_p10 = pnand %p4471_p9, %p4468_p8 }
  0x1a   :  { %4476 = shalt.err (!%p4473_p10)
}
  0x1b   :  { %s4477_s4 = scalar_lea.vmem %s75_s23, 32  ;;  %p4482_p12 = scmp.lt.s32.totalorder %s75_s23, %s75_s23 }
  0x1c   :  { %p4478_p11 = scmp.ne.s32.totalorder %s75_s23, %s4477_s4  ;;  %p4483_p13 = scmp.lt.s32.totalorder %s4477_s4, %s4477_s4 }
  0x1e   :  { %p4484_p0 = por %p4483_p13, %p4482_p12 }
  0x20   :  { %p4485_p1 = pnand %p4484_p0, %p4478_p11 }
  0x22   :  { %4488 = shalt.err (!%p4485_p1)
}
  0x23   :  { %80 = dma.hbm_to_vmem [thread:$0]  %s5588_s9, 32, %s75_s23, [#allocation11], %s4562_s18, %s4562_s18, %s4563_s19  }
  0x24   :  { %s4489_s22 = scalar_lea.hbm %s5580_s1, 256 }
  0x25   :  { %p4490_p2 = scmp.ne.s32.totalorder %s5580_s1, %s4489_s22  ;;  %p4493_p3 = scmp.lt.u32.totalorder %s4489_s22, %s5580_s1 }
  0x27   :  { %p4495_p4 = pnand %p4493_p3, %p4490_p2 }
  0x29   :  { %4498 = shalt.err (!%p4495_p4)
}
  0x2a   :  { %s4499_s30 = scalar_lea.vmem %s29_s25, 256  ;;  %p4504_p6 = scmp.lt.s32.totalorder %s29_s25, %s29_s25 }
  0x2b   :  { %p4500_p5 = scmp.ne.s32.totalorder %s29_s25, %s4499_s30  ;;  %p4505_p7 = scmp.lt.s32.totalorder %s4499_s30, %s4499_s30 }
  0x2d   :  { %p4506_p8 = por %p4505_p7, %p4504_p6 }
  0x2f   :  { %p4507_p9 = pnand %p4506_p8, %p4500_p5 }
  0x31   :  { %4510 = shalt.err (!%p4507_p9)
}
  0x32   :  { %s4566_s9 = smov 64   ;;  %s4567_s23 = smov 4  }
  0x33   :  { %34 = dma.hbm_to_vmem [thread:$0]  %s5580_s1, 256, %s29_s25, [#allocation6], %s4566_s9, %s4566_s9, %s4567_s23  }
  0x34   :  { %s4568_s16 = smov [#allocation9]   ;;  %s4569_s26 = smov [#allocation12]  }
  0x35   :  { %s62_s4 = sshll.u32 %s4568_s16, 4  ;;  %s88_s17 = sshll.u32 %s4569_s26, 4  ;;  %s63_s4 = int_to_ptr.vmem [resolvable:$true] %s62_s4  ;;  %s89_s17 = int_to_ptr.vmem [resolvable:$true] %s88_s17 }
  0x36   :  { %s4511_s22 = scalar_lea.hbm %s5587_s8, 32 }
  0x37   :  { %p4512_p10 = scmp.ne.s32.totalorder %s5587_s8, %s4511_s22  ;;  %p4515_p11 = scmp.lt.u32.totalorder %s4511_s22, %s5587_s8 }
  0x39   :  { %p4517_p12 = pnand %p4515_p11, %p4512_p10 }
  0x3b   :  { %4520 = shalt.err (!%p4517_p12)
}
  0x3c   :  { %s4521_s1 = scalar_lea.vmem %s63_s4, 32  ;;  %p4526_p0 = scmp.lt.s32.totalorder %s63_s4, %s63_s4 }
  0x3d   :  { %p4522_p13 = scmp.ne.s32.totalorder %s63_s4, %s4521_s1  ;;  %p4527_p1 = scmp.lt.s32.totalorder %s4521_s1, %s4521_s1 }
  0x3f   :  { %p4528_p2 = por %p4527_p1, %p4526_p0 }
  0x41   :  { %p4529_p3 = pnand %p4528_p2, %p4522_p13 }
  0x43   :  { %4532 = shalt.err (!%p4529_p3)
}
  0x44   :  { %68 = dma.hbm_to_vmem [thread:$0]  %s5587_s8, 32, %s63_s4, [#allocation8], %s4562_s18, %s4562_s18, %s4563_s19  }
  0x45   :  { %s4533_s16 = scalar_lea.hbm %s5590_s11, 256 }
  0x46   :  { %p4534_p4 = scmp.ne.s32.totalorder %s5590_s11, %s4533_s16  ;;  %p4537_p5 = scmp.lt.u32.totalorder %s4533_s16, %s5590_s11 }
  0x48   :  { %p4539_p6 = pnand %p4537_p5, %p4534_p4 }
  0x4a   :  { %4542 = shalt.err (!%p4539_p6)
}
  0x4b   :  { %s4543_s24 = scalar_lea.vmem %s89_s17, 256  ;;  %p4548_p8 = scmp.lt.s32.totalorder %s89_s17, %s89_s17 }
  0x4c   :  { %p4544_p7 = scmp.ne.s32.totalorder %s89_s17, %s4543_s24  ;;  %p4549_p9 = scmp.lt.s32.totalorder %s4543_s24, %s4543_s24 }
  0x4e   :  { %p4550_p10 = por %p4549_p9, %p4548_p8 }
  0x50   :  { %p4551_p11 = pnand %p4550_p10, %p4544_p7 }
  0x52   :  { %4554 = shalt.err (!%p4551_p11)
}
  0x53   :  { %94 = dma.hbm_to_vmem [thread:$0]  %s5590_s11, 256, %s89_s17, [#allocation11], %s4566_s9, %s4566_s9, %s4567_s23  }
  0x54   :  { %4555 = dma.done.wait [#allocation6], 256  }
  0x55   :  { %4556 = vsyncadd [#allocation6], 4294967040 }
  0x56   :  { %4557 = dma.done.wait [#allocation8], 64  }
  0x57   :  { %4558 = vsyncadd [#allocation8], 4294967232 }
  0x58   :  { %4559 = dma.done.wait [#allocation11], 288  }
  0x59   :  { %4560 = vsyncadd [#allocation11], 4294967008  ;;  %v4287_v0 = vld [vmem:[#allocation5 + $0x8] sm:$0xff]   ;;  %v113_v1 = vld [vmem:[%s5579_s0] sm:$0xff]  ;;  %vm140_vm0 = vcmask 130048   ;;  %v4570_v11 = vmov 0.0  }
  0x5a   :  { %v114_v2 = vld [vmem:[%s5579_s0 + $0x8] sm:$0xff]  ;;  %3911 = vmatprep.subr.bf16.mxu1 %v4287_v0  ;;  %v4288_v4 = vld [vmem:[#allocation5] sm:$0xff]   ;;  %v116_v6 = vld [vmem:[%s5579_s0 + $0x18] sm:$0xff]  ;;  %vm4571_vm1 = vmmov 0   ;;  %v4572_v21 = vmov 0   ;;  %vm218_vm2 = vcmask 785408  }
  0x5b   :  { %v121_v3 = vpack.c.bf16 %v114_v2, %v113_v1  ;;  %v115_v5 = vld [vmem:[%s5579_s0 + $0x10] sm:$0xff]  ;;  %3912 = vmatpush3.bf16.msra.mxu1 %v4287_v0  ;;  %3901 = vmatprep.subr.bf16.mxu0 %v4288_v4  ;;  %v117_v9 = vld [vmem:[%s5579_s0 + $0x20] sm:$0xff]  ;;  %v118_v10 = vld [vmem:[%s5579_s0 + $0x28] sm:$0xff]  ;;  %s4574_s17 = smov 32   ;;  %vm353_vm3 = vcmask 261120  }
  0x5c   :  { %v122_v7 = vpack.c.bf16 %v116_v6, %v115_v5  ;;  %v4736_v8 = vld [vmem:[%s5581_s2 + $0x10] sm:$0xff]   ;;  %3929 = vmatprep.subr.bf16.mxu1 %v4570_v11  ;;  %3902 = vmatpush3.bf16.msra.mxu0 %v4288_v4  ;;  %v123_v12 = vpack.c.bf16 %v118_v10, %v117_v9  ;;  %v120_v14 = vld [vmem:[%s5579_s0 + $0x38] sm:$0xff]  ;;  %v4763_v16 = vld [vmem:[%s5581_s2] sm:$0xff]  }
  0x5d   :  { %3913 = vmatprep.mubr.msk.bf16.mxu1 %vm140_vm0, %v121_v3  ;;  %v119_v13 = vld [vmem:[%s5579_s0 + $0x30] sm:$0xff]  ;;  %3903 = vmatprep.mubr.msk.bf16.mxu0 %vm140_vm0, %v121_v3  ;;  %v4756_v15 = vld [vmem:[%s5581_s2 + $0x18] sm:$0xff]   ;;  %v3669_v17 = vld [vmem:[#allocation7 + $0x1] ss:$0 sm:$0xff] }
  0x5e   :  { %3914 = vmatmul.mubr.msk.bf16.vlgmr.msra.gmra.mrb[0].mxu1 %vm140_vm0, %v122_v7  ;;  %3921 = vmatprep.subr.bf16.mxu0 %v4570_v11  ;;  %v4772_v18 = vld [vmem:[%s5581_s2 + $0x8] sm:$0xff]   ;;  %v124_v19 = vpack.c.bf16 %v120_v14, %v119_v13  ;;  %v3668_v20 = vld [vmem:[#allocation7] ss:$0 sm:$0xff]  ;;  %v3658_v22 = vld [vmem:[%s5582_s3 + $0x1] ss:$0 sm:$0xff] }
  0x5f   :  { %3930 = vmatpush3.bf16.msra.mxu1 %v4736_v8  ;;  %3917 = vmatprep.mubr.msk.bf16.mxu1 %vm140_vm0, %v123_v12  ;;  %v3651_v24 = vld [vmem:[%s5582_s3] ss:$0 sm:$0xff]  ;;  %s4573_s3 = smov 96  }
  0x60   :  { %3904 = vmatmul.mubr.msk.bf16.vlgmr.msra.gmra.mrb[0].mxu0 %vm140_vm0, %v122_v7  ;;  %3931 = vmatprep.subr.bf16.mxu1 %v4570_v11 }
  0x61   :  { %3907 = vmatprep.mubr.msk.bf16.mxu0 %vm140_vm0, %v123_v12  ;;  %3922 = vmatpush3.bf16.msra.mxu0 %v4763_v16 }
  0x62   :  { %486 = vrot.lane.b32.xlu0 %v3669_v17, %s4566_s9  ;;  %3923 = vmatprep.subr.bf16.mxu0 %v4570_v11 }
  0x63   :  { %3932 = vmatpush3.bf16.msra.mxu1 %v4756_v15 }
  0x64   :  { %3945 = vmatprep.subr.bf16.mxu1 %v4570_v11 }
  0x65   :  { %3924 = vmatpush3.bf16.msra.mxu0 %v4772_v18 }
  0x66   :  { %3918 = vmatmul.mubr.msk.bf16.gmra.mrb[4].mxu1 %vm140_vm0, %v124_v19  ;;  %402 = vrot.lane.b32.xlu0 %v3668_v20, %s4566_s9 }
  0x67   :  { %3933 = vmatprep.mubr.msk.bf16.mxu1 %vm4571_vm1, %v4570_v11  ;;  %3937 = vmatprep.subr.bf16.mxu0 %v4570_v11 }
  0x68   :  { %3908 = vmatmul.mubr.msk.bf16.gmra.mrb[4].mxu0 %vm140_vm0, %v124_v19 }
  0x69   :  { %3925 = vmatprep.mubr.msk.bf16.mxu0 %vm4571_vm1, %v4570_v11 }
  0x6e   :  { %3934 = vmatmul.mubr.bf16.vlgmr.msra.gmra.mrb[8].mxu1 %v4572_v21 }
  0x6f   :  { %3946 = vmatpush3.bf16.msra.mxu1 %v4736_v8  ;;  %3949 = vmatprep.mubr.msk.bf16.mxu1 %vm4571_vm1, %v4570_v11 }
  0x70   :  { %3926 = vmatmul.mubr.bf16.vlgmr.msra.gmra.mrb[8].mxu0 %v4572_v21  ;;  %3947 = vmatprep.subr.bf16.mxu1 %v4570_v11 }
  0x71   :  { %3938 = vmatpush3.bf16.msra.mxu0 %v4763_v16  ;;  %3941 = vmatprep.mubr.msk.bf16.mxu0 %vm4571_vm1, %v4570_v11 }
  0x72   :  { %3939 = vmatprep.subr.bf16.mxu0 %v4570_v11 }
  0x73   :  { %3948 = vmatpush3.bf16.msra.mxu1 %v4756_v15 }
  0x74   :  { %3961 = vmatprep.subr.bf16.mxu1 %v4570_v11 }
  0x75   :  { %3940 = vmatpush3.bf16.msra.mxu0 %v4772_v18 }
  0x76   :  { %3953 = vmatprep.subr.bf16.mxu0 %v4570_v11 }
  0xd4   :  { %v4816_v43 = vpop.permute.xlu0 %486 }
  0xd8   :  { %v4826_v58 = vpop.permute.xlu0 %402 }
 0x131   :  { %v3915_v23 = vpop.f32.mrb[0].mxu1 }
 0x132   :  { %v287_v25 = vadd.f32 %v3915_v23, %v3658_v22  ;;  %v278_v26 = vpop.f32.mrb[1].mxu1 }
 0x133   :  { %v279_v27 = vadd.f32 %v3658_v22, %v278_v26  ;;  %v3916_v28 = vpop.f32.mrb[2].mxu1  ;;  %v3905_v29 = vpop.f32.mrb[0].mxu0 }
 0x134   :  { %312 = vst.msk [vmem:[#allocation2 + $0x50] sm:$0xff] %vm218_vm2, %v287_v25  ;;  %v290_v30 = vadd.f32 %v3916_v28, %v3658_v22  ;;  %v281_v31 = vpop.f32.mrb[3].mxu1  ;;  %v196_v32 = vadd.f32 %v3905_v29, %v3651_v24  ;;  %v187_v33 = vpop.f32.mrb[1].mxu0 }
 0x135   :  { %310 = vst.msk [vmem:[#allocation2 + $0x40] sm:$0xff] %vm218_vm2, %v279_v27  ;;  %v282_v34 = vadd.f32 %v3658_v22, %v281_v31  ;;  %v188_v35 = vadd.f32 %v3651_v24, %v187_v33  ;;  %v3906_v36 = vpop.f32.mrb[2].mxu0 }
 0x136   :  { %313 = vst.msk [vmem:[#allocation2 + $0x58] sm:$0xff] %vm218_vm2, %v290_v30  ;;  %221 = vst.msk [vmem:[#allocation2 + $0x10] sm:$0xff] %vm218_vm2, %v196_v32  ;;  %v199_v37 = vadd.f32 %v3906_v36, %v3651_v24  ;;  %v190_v38 = vpop.f32.mrb[3].mxu0 }
 0x137   :  { %311 = vst.msk [vmem:[#allocation2 + $0x48] sm:$0xff] %vm218_vm2, %v282_v34  ;;  %219 = vst.msk [vmem:[#allocation2] sm:$0xff] %vm218_vm2, %v188_v35  ;;  %v191_v39 = vadd.f32 %v3651_v24, %v190_v38 }
 0x138   :  { %222 = vst.msk [vmem:[#allocation2 + $0x18] sm:$0xff] %vm218_vm2, %v199_v37 }
 0x139   :  { %v3919_v40 = vpop.f32.mrb[4].mxu1  ;;  %220 = vst.msk [vmem:[#allocation2 + $0x8] sm:$0xff] %vm218_vm2, %v191_v39 }
 0x13a   :  { %v303_v41 = vadd.f32 %v3919_v40, %v3658_v22  ;;  %v294_v42 = vpop.f32.mrb[5].mxu1 }
 0x13b   :  { %v295_v44 = vadd.f32 %v3658_v22, %v294_v42  ;;  %v3920_v45 = vpop.f32.mrb[6].mxu1  ;;  %v3909_v46 = vpop.f32.mrb[4].mxu0 }
 0x13c   :  { %316 = vst.msk [vmem:[#allocation2 + $0x70] sm:$0xff] %vm218_vm2, %v303_v41  ;;  %v306_v47 = vadd.f32 %v3920_v45, %v3658_v22  ;;  %v297_v48 = vpop.f32.mrb[7].mxu1  ;;  %v212_v49 = vadd.f32 %v3909_v46, %v3651_v24  ;;  %v203_v50 = vpop.f32.mrb[5].mxu0 }
 0x13d   :  { %314 = vst.msk [vmem:[#allocation2 + $0x60] sm:$0xff] %vm218_vm2, %v295_v44  ;;  %v298_v51 = vadd.f32 %v3658_v22, %v297_v48  ;;  %v204_v52 = vadd.f32 %v3651_v24, %v203_v50  ;;  %v3910_v53 = vpop.f32.mrb[6].mxu0 }
 0x13e   :  { %317 = vst.msk [vmem:[#allocation2 + $0x78] sm:$0xff] %vm218_vm2, %v306_v47  ;;  %225 = vst.msk [vmem:[#allocation2 + $0x30] sm:$0xff] %vm218_vm2, %v212_v49  ;;  %v215_v54 = vadd.f32 %v3910_v53, %v3651_v24  ;;  %v206_v55 = vpop.f32.mrb[7].mxu0  ;;  %v340_v6 = vld [vmem:[#allocation2] sm:$0xff] }
 0x13f   :  { %315 = vst.msk [vmem:[#allocation2 + $0x68] sm:$0xff] %vm218_vm2, %v298_v51  ;;  %223 = vst.msk [vmem:[#allocation2 + $0x20] sm:$0xff] %vm218_vm2, %v204_v52  ;;  %v207_v56 = vadd.f32 %v3651_v24, %v206_v55 }
 0x140   :  { %226 = vst.msk [vmem:[#allocation2 + $0x38] sm:$0xff] %vm218_vm2, %v215_v54 }
 0x141   :  { %v475_v57 = vpop.f32.mrb[8].mxu1  ;;  %224 = vst.msk [vmem:[#allocation2 + $0x28] sm:$0xff] %vm218_vm2, %v207_v56 }
 0x142   :  { %v3935_v59 = vpop.f32.mrb[9].mxu1  ;;  %v489_v60 = vadd.f32 %v4816_v43, %v475_v57 }
 0x143   :  { %v478_v61 = vpop.f32.mrb[10].mxu1  ;;  %v391_v62 = vpop.f32.mrb[8].mxu0 }
 0x144   :  { %491 = vrot.lane.b32.xlu1 %v489_v60, %s4566_s9  ;;  %v3936_v63 = vpop.f32.mrb[11].mxu1  ;;  %v405_v0 = vadd.f32 %v4826_v58, %v391_v62  ;;  %v3927_v1 = vpop.f32.mrb[9].mxu0  ;;  %v397_v9 = vadd.f32 %v391_v62, %v340_v6  ;;  %v522_v60 = vld [vmem:[#allocation2 + $0x8] sm:$0xff] }
 0x145   :  { %v394_v2 = vpop.f32.mrb[10].mxu0  ;;  %v428_v4 = vld [vmem:[#allocation2 + $0x78] sm:$0xff] }
 0x146   :  { %v3928_v3 = vpop.f32.mrb[11].mxu0  ;;  %v481_v5 = vadd.f32 %v475_v57, %v428_v4  ;;  %v398_v10 = vmul.f32 0.5, %v397_v9  ;;  %v598_v57 = vld [vmem:[#allocation2 + $0x70] sm:$0xff] }
 0x148   :  { %407 = vrot.lane.b32.xlu1 %v405_v0, %s4566_s9  ;;  %v482_v7 = vmul.f32 0.5, %v481_v5 }
 0x14a   :  { %4309 = vtanh.f32 %v482_v7 }
 0x14b   :  { %4311 = vtanh.f32 %v398_v10 }
 0x154   :  { %v4310_v12 = vpop.eup %4309 }
 0x155   :  { %v484_v13 = vadd.f32 1.0, %v4310_v12  ;;  %v4312_v14 = vpop.eup %4311 }
 0x156   :  { %v400_v19 = vadd.f32 1.0, %v4312_v14 }
 0x157   :  { %v485_v17 = vmul.f32 0.5, %v484_v13 }
 0x158   :  { %v401_v23 = vmul.f32 0.5, %v400_v19 }
 0x1b6   :  { %v492_v20 = vpop.permute.xlu1 %491 }
 0x1b7   :  { %v494_v22 = vmul.f32 %v492_v20, %v485_v17 }
 0x1b9   :  { %496 = vrot.lane.b32.xlu0 %v494_v22, %s4566_s9 }
 0x1ba   :  { %v408_v24 = vpop.permute.xlu1 %407 }
 0x1bb   :  { %v410_v25 = vmul.f32 %v408_v24, %v401_v23 }
 0x1bd   :  { %412 = vrot.lane.b32.xlu1 %v410_v25, %s4566_s9 }
 0x22b   :  { %v497_v26 = vpop.permute.xlu0 %496 }
 0x22c   :  { %v499_v27 = vadd.f32 %v497_v26, %v428_v4 }
 0x22e   :  { %4313 = vtanh.f32 %v499_v27 }
 0x22f   :  { %v413_v28 = vpop.permute.xlu1 %412 }
 0x230   :  { %v415_v29 = vadd.f32 %v413_v28, %v340_v6 }
 0x232   :  { %4315 = vtanh.f32 %v415_v29 }
 0x238   :  { %v4314_v30 = vpop.eup %4313 }
 0x239   :  { %v501_v31 = vsub.f32 0.0, %v4314_v30 }
 0x23b   :  { %503 = vrot.lane.b32.xlu0 %v501_v31, %s4573_s3 }
 0x23c   :  { %v4316_v32 = vpop.eup %4315 }
 0x23d   :  { %v417_v33 = vsub.f32 0.0, %v4316_v32 }
 0x23f   :  { %419 = vrot.lane.b32.xlu1 %v417_v33, %s4573_s3 }
 0x2ad   :  { %v504_v34 = vpop.permute.xlu0 %503 }
 0x2ae   :  { %v506_v35 = vmul.f32 %v504_v34, %v485_v17 }
 0x2b0   :  { %508 = vrot.lane.b32.xlu0 %v506_v35, %s4574_s17 }
 0x2b1   :  { %v420_v36 = vpop.permute.xlu1 %419 }
 0x2b2   :  { %v422_v37 = vmul.f32 %v420_v36, %v401_v23 }
 0x2b4   :  { %424 = vrot.lane.b32.xlu1 %v422_v37, %s4574_s17 }
 0x322   :  { %v509_v38 = vpop.permute.xlu0 %508 }
 0x323   :  { %v4838_v39 = vadd.f32 %v4314_v30, %v509_v38 }
 0x325   :  { %v599_v40 = vpack.c.bf16 %v4838_v39, %v4838_v39 }
 0x326   :  { %v425_v41 = vpop.permute.xlu1 %424 }
 0x327   :  { %v4842_v42 = vadd.f32 %v4316_v32, %v425_v41  ;;  %601 = vrot.lane.b32.xlu0 %v599_v40, %s4566_s9 }
 0x329   :  { %v523_v44 = vpack.c.bf16 %v4842_v42, %v4842_v42 }
 0x32b   :  { %525 = vrot.lane.b32.xlu1 %v523_v44, %s4566_s9 }
 0x399   :  { %v602_v45 = vpop.permute.xlu0 %601 }
 0x39a   :  { %3950 = vmatmul.mubr.msk.bf16.vlgmr.msra.gmra.mrb[12].mxu1 %vm353_vm3, %v602_v45 }
 0x39b   :  { %3962 = vmatpush3.bf16.msra.mxu1 %v4736_v8  ;;  %3965 = vmatprep.mubr.msk.bf16.mxu1 %vm4571_vm1, %v4570_v11 }
 0x39c   :  { %3963 = vmatprep.subr.bf16.mxu1 %v4570_v11 }
 0x39d   :  { %v526_v46 = vpop.permute.xlu1 %525 }
 0x39e   :  { %3942 = vmatmul.mubr.msk.bf16.vlgmr.msra.gmra.mrb[12].mxu0 %vm353_vm3, %v526_v46 }
 0x39f   :  { %3954 = vmatpush3.bf16.msra.mxu0 %v4763_v16  ;;  %3964 = vmatpush3.bf16.msra.mxu1 %v4756_v15 }
 0x3a0   :  { %3955 = vmatprep.subr.bf16.mxu0 %v4570_v11  ;;  %3957 = vmatprep.mubr.msk.bf16.mxu0 %vm4571_vm1, %v4570_v11 }
 0x3a1   :  { %3977 = vmatprep.subr.bf16.mxu1 %v4570_v11 }
 0x3a3   :  { %3956 = vmatpush3.bf16.msra.mxu0 %v4772_v18 }
 0x3a4   :  { %3969 = vmatprep.subr.bf16.mxu0 %v4570_v11 }
 0x46d   :  { %v640_v47 = vpop.f32.mrb[12].mxu1 }
 0x46e   :  { %v3951_v48 = vpop.f32.mrb[13].mxu1  ;;  %v651_v49 = vadd.f32 %v640_v47, %v4816_v43  ;;  %v646_v59 = vadd.f32 %v640_v47, %v598_v57 }
 0x46f   :  { %v643_v50 = vpop.f32.mrb[14].mxu1 }
 0x470   :  { %653 = vrot.lane.b32.xlu0 %v651_v49, %s4566_s9  ;;  %v3952_v51 = vpop.f32.mrb[15].mxu1  ;;  %v647_v61 = vmul.f32 0.5, %v646_v59  ;;  %v760_v49 = vld [vmem:[#allocation2 + $0x68] sm:$0xff] }
 0x471   :  { %v564_v52 = vpop.f32.mrb[12].mxu0  ;;  %v684_v51 = vld [vmem:[#allocation2 + $0x10] sm:$0xff] }
 0x472   :  { %v3943_v53 = vpop.f32.mrb[13].mxu0  ;;  %v575_v54 = vadd.f32 %v564_v52, %v4826_v58  ;;  %v570_v62 = vadd.f32 %v564_v52, %v522_v60  ;;  %4317 = vtanh.f32 %v647_v61 }
 0x473   :  { %v567_v55 = vpop.f32.mrb[14].mxu0 }
 0x474   :  { %577 = vrot.lane.b32.xlu1 %v575_v54, %s4566_s9  ;;  %v3944_v56 = vpop.f32.mrb[15].mxu0  ;;  %v571_v63 = vmul.f32 0.5, %v570_v62 }
 0x476   :  { %4319 = vtanh.f32 %v571_v63 }
 0x47c   :  { %v4318_v0 = vpop.eup %4317 }
 0x47d   :  { %v649_v1 = vadd.f32 1.0, %v4318_v0 }
 0x47f   :  { %v650_v3 = vmul.f32 0.5, %v649_v1 }
 0x480   :  { %v4320_v2 = vpop.eup %4319 }
 0x481   :  { %v573_v4 = vadd.f32 1.0, %v4320_v2 }
 0x483   :  { %v574_v7 = vmul.f32 0.5, %v573_v4 }
 0x4e2   :  { %v654_v5 = vpop.permute.xlu0 %653 }
 0x4e3   :  { %v656_v6 = vmul.f32 %v654_v5, %v650_v3 }
 0x4e5   :  { %658 = vrot.lane.b32.xlu0 %v656_v6, %s4566_s9 }
 0x4e6   :  { %v578_v9 = vpop.permute.xlu1 %577 }
 0x4e7   :  { %v580_v10 = vmul.f32 %v578_v9, %v574_v7 }
 0x4e9   :  { %582 = vrot.lane.b32.xlu1 %v580_v10, %s4566_s9 }
 0x557   :  { %v659_v12 = vpop.permute.xlu0 %658 }
 0x558   :  { %v661_v13 = vadd.f32 %v659_v12, %v598_v57 }
 0x55a   :  { %4321 = vtanh.f32 %v661_v13 }
 0x55b   :  { %v583_v14 = vpop.permute.xlu1 %582 }
 0x55c   :  { %v585_v17 = vadd.f32 %v583_v14, %v522_v60 }
 0x55e   :  { %4323 = vtanh.f32 %v585_v17 }
 0x564   :  { %v4322_v19 = vpop.eup %4321 }
 0x565   :  { %v663_v20 = vsub.f32 %v4838_v39, %v4322_v19 }
 0x567   :  { %665 = vrot.lane.b32.xlu0 %v663_v20, %s4573_s3 }
 0x568   :  { %v4324_v22 = vpop.eup %4323 }
 0x569   :  { %v587_v23 = vsub.f32 %v4842_v42, %v4324_v22 }
 0x56b   :  { %589 = vrot.lane.b32.xlu1 %v587_v23, %s4573_s3 }
 0x5d9   :  { %v666_v24 = vpop.permute.xlu0 %665 }
 0x5da   :  { %v668_v25 = vmul.f32 %v666_v24, %v650_v3 }
 0x5dc   :  { %670 = vrot.lane.b32.xlu0 %v668_v25, %s4574_s17 }
 0x5dd   :  { %v590_v26 = vpop.permute.xlu1 %589 }
 0x5de   :  { %v592_v27 = vmul.f32 %v590_v26, %v574_v7 }
 0x5e0   :  { %594 = vrot.lane.b32.xlu1 %v592_v27, %s4574_s17 }
 0x64e   :  { %v671_v28 = vpop.permute.xlu0 %670 }
 0x64f   :  { %v4874_v29 = vadd.f32 %v4322_v19, %v671_v28 }
 0x651   :  { %v761_v30 = vpack.c.bf16 %v4874_v29, %v4874_v29 }
 0x652   :  { %v595_v31 = vpop.permute.xlu1 %594 }
 0x653   :  { %v4878_v32 = vadd.f32 %v4324_v22, %v595_v31  ;;  %763 = vrot.lane.b32.xlu0 %v761_v30, %s4566_s9 }
 0x655   :  { %v685_v33 = vpack.c.bf16 %v4878_v32, %v4878_v32 }
 0x657   :  { %687 = vrot.lane.b32.xlu1 %v685_v33, %s4566_s9 }
 0x6c5   :  { %v764_v34 = vpop.permute.xlu0 %763 }
 0x6c6   :  { %3966 = vmatmul.mubr.msk.bf16.vlgmr.msra.gmra.mrb[16].mxu1 %vm353_vm3, %v764_v34 }
 0x6c7   :  { %3978 = vmatpush3.bf16.msra.mxu1 %v4736_v8  ;;  %3981 = vmatprep.mubr.msk.bf16.mxu1 %vm4571_vm1, %v4570_v11 }
 0x6c8   :  { %3979 = vmatprep.subr.bf16.mxu1 %v4570_v11 }
 0x6c9   :  { %v688_v35 = vpop.permute.xlu1 %687 }
 0x6ca   :  { %3958 = vmatmul.mubr.msk.bf16.vlgmr.msra.gmra.mrb[16].mxu0 %vm353_vm3, %v688_v35 }
 0x6cb   :  { %3970 = vmatpush3.bf16.msra.mxu0 %v4763_v16  ;;  %3980 = vmatpush3.bf16.msra.mxu1 %v4756_v15 }
 0x6cc   :  { %3971 = vmatprep.subr.bf16.mxu0 %v4570_v11  ;;  %3973 = vmatprep.mubr.msk.bf16.mxu0 %vm4571_vm1, %v4570_v11 }
 0x6cd   :  { %3993 = vmatprep.subr.bf16.mxu1 %v4570_v11 }
 0x6cf   :  { %3972 = vmatpush3.bf16.msra.mxu0 %v4772_v18 }
 0x6d0   :  { %3985 = vmatprep.subr.bf16.mxu0 %v4570_v11 }
 0x799   :  { %v802_v36 = vpop.f32.mrb[16].mxu1 }
 0x79a   :  { %v3967_v37 = vpop.f32.mrb[17].mxu1  ;;  %v813_v38 = vadd.f32 %v802_v36, %v4816_v43  ;;  %v808_v50 = vadd.f32 %v802_v36, %v760_v49 }
 0x79b   :  { %v805_v40 = vpop.f32.mrb[18].mxu1 }
 0x79c   :  { %815 = vrot.lane.b32.xlu0 %v813_v38, %s4566_s9  ;;  %v3968_v41 = vpop.f32.mrb[19].mxu1  ;;  %v809_v52 = vmul.f32 0.5, %v808_v50 }
 0x79d   :  { %v726_v44 = vpop.f32.mrb[16].mxu0  ;;  %v922_v41 = vld [vmem:[#allocation2 + $0x60] sm:$0xff] }
 0x79e   :  { %v3959_v45 = vpop.f32.mrb[17].mxu0  ;;  %v737_v46 = vadd.f32 %v726_v44, %v4826_v58  ;;  %v732_v53 = vadd.f32 %v726_v44, %v684_v51  ;;  %4325 = vtanh.f32 %v809_v52 }
 0x79f   :  { %v729_v47 = vpop.f32.mrb[18].mxu0  ;;  %v846_v45 = vld [vmem:[#allocation2 + $0x18] sm:$0xff] }
 0x7a0   :  { %739 = vrot.lane.b32.xlu1 %v737_v46, %s4566_s9  ;;  %v3960_v48 = vpop.f32.mrb[19].mxu0  ;;  %v733_v54 = vmul.f32 0.5, %v732_v53 }
 0x7a2   :  { %4327 = vtanh.f32 %v733_v54 }
 0x7a8   :  { %v4326_v55 = vpop.eup %4325 }
 0x7a9   :  { %v811_v56 = vadd.f32 1.0, %v4326_v55 }
 0x7ab   :  { %v812_v59 = vmul.f32 0.5, %v811_v56 }
 0x7ac   :  { %v4328_v57 = vpop.eup %4327 }
 0x7ad   :  { %v735_v60 = vadd.f32 1.0, %v4328_v57 }
 0x7af   :  { %v736_v63 = vmul.f32 0.5, %v735_v60 }
 0x80e   :  { %v816_v61 = vpop.permute.xlu0 %815 }
 0x80f   :  { %v818_v62 = vmul.f32 %v816_v61, %v812_v59 }
 0x811   :  { %820 = vrot.lane.b32.xlu0 %v818_v62, %s4566_s9 }
 0x812   :  { %v740_v0 = vpop.permute.xlu1 %739 }
 0x813   :  { %v742_v1 = vmul.f32 %v740_v0, %v736_v63 }
 0x815   :  { %744 = vrot.lane.b32.xlu1 %v742_v1, %s4566_s9 }
 0x883   :  { %v821_v2 = vpop.permute.xlu0 %820 }
 0x884   :  { %v823_v3 = vadd.f32 %v821_v2, %v760_v49 }
 0x886   :  { %4329 = vtanh.f32 %v823_v3 }
 0x887   :  { %v745_v4 = vpop.permute.xlu1 %744 }
 0x888   :  { %v747_v5 = vadd.f32 %v745_v4, %v684_v51 }
 0x88a   :  { %4331 = vtanh.f32 %v747_v5 }
 0x890   :  { %v4330_v6 = vpop.eup %4329 }
 0x891   :  { %v825_v7 = vsub.f32 %v4874_v29, %v4330_v6 }
 0x893   :  { %827 = vrot.lane.b32.xlu0 %v825_v7, %s4573_s3 }
 0x894   :  { %v4332_v9 = vpop.eup %4331 }
 0x895   :  { %v749_v10 = vsub.f32 %v4878_v32, %v4332_v9 }
 0x897   :  { %751 = vrot.lane.b32.xlu1 %v749_v10, %s4573_s3 }
 0x905   :  { %v828_v12 = vpop.permute.xlu0 %827 }
 0x906   :  { %v830_v13 = vmul.f32 %v828_v12, %v812_v59 }
 0x908   :  { %832 = vrot.lane.b32.xlu0 %v830_v13, %s4574_s17 }
 0x909   :  { %v752_v14 = vpop.permute.xlu1 %751 }
 0x90a   :  { %v754_v17 = vmul.f32 %v752_v14, %v736_v63 }
 0x90c   :  { %756 = vrot.lane.b32.xlu1 %v754_v17, %s4574_s17 }
 0x97a   :  { %v833_v19 = vpop.permute.xlu0 %832 }
 0x97b   :  { %v4910_v20 = vadd.f32 %v4330_v6, %v833_v19 }
 0x97d   :  { %v923_v22 = vpack.c.bf16 %v4910_v20, %v4910_v20 }
 0x97e   :  { %v757_v23 = vpop.permute.xlu1 %756 }
 0x97f   :  { %v4914_v24 = vadd.f32 %v4332_v9, %v757_v23  ;;  %925 = vrot.lane.b32.xlu0 %v923_v22, %s4566_s9 }
 0x981   :  { %v847_v25 = vpack.c.bf16 %v4914_v24, %v4914_v24 }
 0x983   :  { %849 = vrot.lane.b32.xlu1 %v847_v25, %s4566_s9 }
 0x9f1   :  { %v926_v26 = vpop.permute.xlu0 %925 }
 0x9f2   :  { %3982 = vmatmul.mubr.msk.bf16.vlgmr.msra.gmra.mrb[20].mxu1 %vm353_vm3, %v926_v26 }
 0x9f3   :  { %3994 = vmatpush3.bf16.msra.mxu1 %v4736_v8  ;;  %3997 = vmatprep.mubr.msk.bf16.mxu1 %vm4571_vm1, %v4570_v11 }
 0x9f4   :  { %3995 = vmatprep.subr.bf16.mxu1 %v4570_v11 }
 0x9f5   :  { %v850_v27 = vpop.permute.xlu1 %849 }
 0x9f6   :  { %3974 = vmatmul.mubr.msk.bf16.vlgmr.msra.gmra.mrb[20].mxu0 %vm353_vm3, %v850_v27 }
 0x9f7   :  { %3986 = vmatpush3.bf16.msra.mxu0 %v4763_v16  ;;  %3996 = vmatpush3.bf16.msra.mxu1 %v4756_v15 }
 0x9f8   :  { %3987 = vmatprep.subr.bf16.mxu0 %v4570_v11  ;;  %3989 = vmatprep.mubr.msk.bf16.mxu0 %vm4571_vm1, %v4570_v11 }
 0x9f9   :  { %4009 = vmatprep.subr.bf16.mxu1 %v4570_v11 }
 0x9fb   :  { %3988 = vmatpush3.bf16.msra.mxu0 %v4772_v18 }
 0x9fc   :  { %4001 = vmatprep.subr.bf16.mxu0 %v4570_v11 }
 0xac5   :  { %v964_v28 = vpop.f32.mrb[20].mxu1 }
 0xac6   :  { %v3983_v30 = vpop.f32.mrb[21].mxu1  ;;  %v975_v31 = vadd.f32 %v964_v28, %v4816_v43  ;;  %v970_v44 = vadd.f32 %v964_v28, %v922_v41 }
 0xac7   :  { %v967_v33 = vpop.f32.mrb[22].mxu1 }
 0xac8   :  { %977 = vrot.lane.b32.xlu0 %v975_v31, %s4566_s9  ;;  %v3984_v34 = vpop.f32.mrb[23].mxu1  ;;  %v971_v46 = vmul.f32 0.5, %v970_v44 }
 0xac9   :  { %v888_v35 = vpop.f32.mrb[20].mxu0 }
 0xaca   :  { %v3975_v36 = vpop.f32.mrb[21].mxu0  ;;  %v899_v37 = vadd.f32 %v888_v35, %v4826_v58  ;;  %v894_v47 = vadd.f32 %v888_v35, %v846_v45  ;;  %4333 = vtanh.f32 %v971_v46 }
 0xacb   :  { %v891_v38 = vpop.f32.mrb[22].mxu0  ;;  %v1084_v36 = vld [vmem:[#allocation2 + $0x58] sm:$0xff] }
 0xacc   :  { %901 = vrot.lane.b32.xlu1 %v899_v37, %s4566_s9  ;;  %v3976_v40 = vpop.f32.mrb[23].mxu0  ;;  %v895_v48 = vmul.f32 0.5, %v894_v47  ;;  %v1008_v38 = vld [vmem:[#allocation2 + $0x20] sm:$0xff] }
 0xace   :  { %4335 = vtanh.f32 %v895_v48 }
 0xad4   :  { %v4334_v49 = vpop.eup %4333 }
 0xad5   :  { %v973_v50 = vadd.f32 1.0, %v4334_v49 }
 0xad7   :  { %v974_v52 = vmul.f32 0.5, %v973_v50 }
 0xad8   :  { %v4336_v51 = vpop.eup %4335 }
 0xad9   :  { %v897_v53 = vadd.f32 1.0, %v4336_v51 }
 0xadb   :  { %v898_v56 = vmul.f32 0.5, %v897_v53 }
 0xb3a   :  { %v978_v54 = vpop.permute.xlu0 %977 }
 0xb3b   :  { %v980_v55 = vmul.f32 %v978_v54, %v974_v52 }
 0xb3d   :  { %982 = vrot.lane.b32.xlu0 %v980_v55, %s4566_s9 }
 0xb3e   :  { %v902_v57 = vpop.permute.xlu1 %901 }
 0xb3f   :  { %v904_v59 = vmul.f32 %v902_v57, %v898_v56 }
 0xb41   :  { %906 = vrot.lane.b32.xlu1 %v904_v59, %s4566_s9 }
 0xbaf   :  { %v983_v60 = vpop.permute.xlu0 %982 }
 0xbb0   :  { %v985_v61 = vadd.f32 %v983_v60, %v922_v41 }
 0xbb2   :  { %4337 = vtanh.f32 %v985_v61 }
 0xbb3   :  { %v907_v62 = vpop.permute.xlu1 %906 }
 0xbb4   :  { %v909_v63 = vadd.f32 %v907_v62, %v846_v45 }
 0xbb6   :  { %4339 = vtanh.f32 %v909_v63 }
 0xbbc   :  { %v4338_v0 = vpop.eup %4337 }
 0xbbd   :  { %v987_v1 = vsub.f32 %v4910_v20, %v4338_v0 }
 0xbbf   :  { %989 = vrot.lane.b32.xlu0 %v987_v1, %s4573_s3 }
 0xbc0   :  { %v4340_v2 = vpop.eup %4339 }
 0xbc1   :  { %v911_v3 = vsub.f32 %v4914_v24, %v4340_v2 }
 0xbc3   :  { %913 = vrot.lane.b32.xlu1 %v911_v3, %s4573_s3 }
 0xc31   :  { %v990_v4 = vpop.permute.xlu0 %989 }
 0xc32   :  { %v992_v5 = vmul.f32 %v990_v4, %v974_v52 }
 0xc34   :  { %994 = vrot.lane.b32.xlu0 %v992_v5, %s4574_s17 }
 0xc35   :  { %v914_v6 = vpop.permute.xlu1 %913 }
 0xc36   :  { %v916_v7 = vmul.f32 %v914_v6, %v898_v56 }
 0xc38   :  { %918 = vrot.lane.b32.xlu1 %v916_v7, %s4574_s17 }
 0xca6   :  { %v995_v9 = vpop.permute.xlu0 %994 }
 0xca7   :  { %v4946_v10 = vadd.f32 %v4338_v0, %v995_v9 }
 0xca9   :  { %v1085_v12 = vpack.c.bf16 %v4946_v10, %v4946_v10 }
 0xcaa   :  { %v919_v13 = vpop.permute.xlu1 %918 }
 0xcab   :  { %v4950_v14 = vadd.f32 %v4340_v2, %v919_v13  ;;  %1087 = vrot.lane.b32.xlu0 %v1085_v12, %s4566_s9 }
 0xcad   :  { %v1009_v17 = vpack.c.bf16 %v4950_v14, %v4950_v14 }
 0xcaf   :  { %1011 = vrot.lane.b32.xlu1 %v1009_v17, %s4566_s9 }
 0xd1d   :  { %v1088_v19 = vpop.permute.xlu0 %1087 }
 0xd1e   :  { %3998 = vmatmul.mubr.msk.bf16.vlgmr.msra.gmra.mrb[24].mxu1 %vm353_vm3, %v1088_v19 }
 0xd1f   :  { %4010 = vmatpush3.bf16.msra.mxu1 %v4736_v8  ;;  %4013 = vmatprep.mubr.msk.bf16.mxu1 %vm4571_vm1, %v4570_v11 }
 0xd20   :  { %4011 = vmatprep.subr.bf16.mxu1 %v4570_v11 }
 0xd21   :  { %v1012_v22 = vpop.permute.xlu1 %1011 }
 0xd22   :  { %3990 = vmatmul.mubr.msk.bf16.vlgmr.msra.gmra.mrb[24].mxu0 %vm353_vm3, %v1012_v22 }
 0xd23   :  { %4002 = vmatpush3.bf16.msra.mxu0 %v4763_v16  ;;  %4012 = vmatpush3.bf16.msra.mxu1 %v4756_v15 }
 0xd24   :  { %4003 = vmatprep.subr.bf16.mxu0 %v4570_v11  ;;  %4005 = vmatprep.mubr.msk.bf16.mxu0 %vm4571_vm1, %v4570_v11 }
 0xd25   :  { %4025 = vmatprep.subr.bf16.mxu1 %v4570_v11 }
 0xd27   :  { %4004 = vmatpush3.bf16.msra.mxu0 %v4772_v18 }
 0xd28   :  { %4017 = vmatprep.subr.bf16.mxu0 %v4570_v11 }
 0xdf1   :  { %v1126_v23 = vpop.f32.mrb[24].mxu1 }
 0xdf2   :  { %v3999_v25 = vpop.f32.mrb[25].mxu1  ;;  %v1137_v26 = vadd.f32 %v1126_v23, %v4816_v43  ;;  %v1132_v37 = vadd.f32 %v1126_v23, %v1084_v36 }
 0xdf3   :  { %v1129_v27 = vpop.f32.mrb[26].mxu1 }
 0xdf4   :  { %1139 = vrot.lane.b32.xlu0 %v1137_v26, %s4566_s9  ;;  %v4000_v28 = vpop.f32.mrb[27].mxu1  ;;  %v1133_v40 = vmul.f32 0.5, %v1132_v37 }
 0xdf5   :  { %v1050_v30 = vpop.f32.mrb[24].mxu0 }
 0xdf6   :  { %v3991_v31 = vpop.f32.mrb[25].mxu0  ;;  %v1061_v33 = vadd.f32 %v1050_v30, %v4826_v58  ;;  %v1056_v41 = vadd.f32 %v1050_v30, %v1008_v38  ;;  %4341 = vtanh.f32 %v1133_v40  ;;  %v1246_v30 = vld [vmem:[#allocation2 + $0x50] sm:$0xff] }
 0xdf7   :  { %v1053_v34 = vpop.f32.mrb[26].mxu0  ;;  %v1170_v31 = vld [vmem:[#allocation2 + $0x28] sm:$0xff] }
 0xdf8   :  { %1063 = vrot.lane.b32.xlu1 %v1061_v33, %s4566_s9  ;;  %v3992_v35 = vpop.f32.mrb[27].mxu0  ;;  %v1057_v44 = vmul.f32 0.5, %v1056_v41 }
 0xdfa   :  { %4343 = vtanh.f32 %v1057_v44 }
 0xe00   :  { %v4342_v45 = vpop.eup %4341 }
 0xe01   :  { %v1135_v46 = vadd.f32 1.0, %v4342_v45 }
 0xe03   :  { %v1136_v48 = vmul.f32 0.5, %v1135_v46 }
 0xe04   :  { %v4344_v47 = vpop.eup %4343 }
 0xe05   :  { %v1059_v49 = vadd.f32 1.0, %v4344_v47 }
 0xe07   :  { %v1060_v52 = vmul.f32 0.5, %v1059_v49 }
 0xe66   :  { %v1140_v50 = vpop.permute.xlu0 %1139 }
 0xe67   :  { %v1142_v51 = vmul.f32 %v1140_v50, %v1136_v48 }
 0xe69   :  { %1144 = vrot.lane.b32.xlu0 %v1142_v51, %s4566_s9 }
 0xe6a   :  { %v1064_v53 = vpop.permute.xlu1 %1063 }
 0xe6b   :  { %v1066_v54 = vmul.f32 %v1064_v53, %v1060_v52 }
 0xe6d   :  { %1068 = vrot.lane.b32.xlu1 %v1066_v54, %s4566_s9 }
 0xedb   :  { %v1145_v55 = vpop.permute.xlu0 %1144 }
 0xedc   :  { %v1147_v56 = vadd.f32 %v1145_v55, %v1084_v36 }
 0xede   :  { %4345 = vtanh.f32 %v1147_v56 }
 0xedf   :  { %v1069_v57 = vpop.permute.xlu1 %1068 }
 0xee0   :  { %v1071_v59 = vadd.f32 %v1069_v57, %v1008_v38 }
 0xee2   :  { %4347 = vtanh.f32 %v1071_v59 }
 0xee8   :  { %v4346_v60 = vpop.eup %4345 }
 0xee9   :  { %v1149_v61 = vsub.f32 %v4946_v10, %v4346_v60 }
 0xeeb   :  { %1151 = vrot.lane.b32.xlu0 %v1149_v61, %s4573_s3 }
 0xeec   :  { %v4348_v62 = vpop.eup %4347 }
 0xeed   :  { %v1073_v63 = vsub.f32 %v4950_v14, %v4348_v62 }
 0xeef   :  { %1075 = vrot.lane.b32.xlu1 %v1073_v63, %s4573_s3 }
 0xf5d   :  { %v1152_v0 = vpop.permute.xlu0 %1151 }
 0xf5e   :  { %v1154_v1 = vmul.f32 %v1152_v0, %v1136_v48 }
 0xf60   :  { %1156 = vrot.lane.b32.xlu0 %v1154_v1, %s4574_s17 }
 0xf61   :  { %v1076_v2 = vpop.permute.xlu1 %1075 }
 0xf62   :  { %v1078_v3 = vmul.f32 %v1076_v2, %v1060_v52 }
 0xf64   :  { %1080 = vrot.lane.b32.xlu1 %v1078_v3, %s4574_s17 }
 0xfd2   :  { %v1157_v4 = vpop.permute.xlu0 %1156 }
 0xfd3   :  { %v4982_v5 = vadd.f32 %v4346_v60, %v1157_v4 }
 0xfd5   :  { %v1247_v6 = vpack.c.bf16 %v4982_v5, %v4982_v5 }
 0xfd6   :  { %v1081_v7 = vpop.permute.xlu1 %1080 }
 0xfd7   :  { %v4986_v9 = vadd.f32 %v4348_v62, %v1081_v7  ;;  %1249 = vrot.lane.b32.xlu0 %v1247_v6, %s4566_s9  ;;  %v4437_v6 = vld [vmem:[%s5581_s2 + $0x10] sm:$0xff]  }
 0xfd9   :  { %v1171_v12 = vpack.c.bf16 %v4986_v9, %v4986_v9 }
 0xfdb   :  { %1173 = vrot.lane.b32.xlu1 %v1171_v12, %s4566_s9  ;;  %v4438_v12 = vld [vmem:[%s5581_s2] sm:$0xff]  }
0x1049   :  { %v1250_v13 = vpop.permute.xlu0 %1249 }
0x104a   :  { %4014 = vmatmul.mubr.msk.bf16.vlgmr.msra.gmra.mrb[28].mxu1 %vm353_vm3, %v1250_v13  ;;  %v4439_v13 = vld [vmem:[%s5581_s2 + $0x18] sm:$0xff]  }
0x104b   :  { %4026 = vmatpush3.bf16.msra.mxu1 %v4736_v8  ;;  %4029 = vmatprep.mubr.msk.bf16.mxu1 %vm4571_vm1, %v4570_v11 }
0x104c   :  { %4027 = vmatprep.subr.bf16.mxu1 %v4570_v11 }
0x104d   :  { %v1174_v17 = vpop.permute.xlu1 %1173 }
0x104e   :  { %4006 = vmatmul.mubr.msk.bf16.vlgmr.msra.gmra.mrb[28].mxu0 %vm353_vm3, %v1174_v17  ;;  %v4440_v17 = vld [vmem:[%s5581_s2 + $0x8] sm:$0xff]  }
0x104f   :  { %4018 = vmatpush3.bf16.msra.mxu0 %v4763_v16  ;;  %4028 = vmatpush3.bf16.msra.mxu1 %v4756_v15 }
0x1050   :  { %4019 = vmatprep.subr.bf16.mxu0 %v4570_v11  ;;  %4021 = vmatprep.mubr.msk.bf16.mxu0 %vm4571_vm1, %v4570_v11 }
0x1051   :  { %4041 = vmatprep.subr.bf16.mxu1 %v4570_v11 }
0x1053   :  { %4020 = vmatpush3.bf16.msra.mxu0 %v4772_v18 }
0x1054   :  { %4033 = vmatprep.subr.bf16.mxu0 %v4570_v11 }
0x111d   :  { %v1288_v8 = vpop.f32.mrb[28].mxu1 }
0x111e   :  { %v4015_v19 = vpop.f32.mrb[29].mxu1  ;;  %v1299_v22 = vadd.f32 %v1288_v8, %v4816_v43  ;;  %v1294_v18 = vadd.f32 %v1288_v8, %v1246_v30 }
0x111f   :  { %v1291_v23 = vpop.f32.mrb[30].mxu1 }
0x1120   :  { %1301 = vrot.lane.b32.xlu0 %v1299_v22, %s4566_s9  ;;  %v4016_v16 = vpop.f32.mrb[31].mxu1  ;;  %v1295_v33 = vmul.f32 0.5, %v1294_v18 }
0x1121   :  { %v1212_v15 = vpop.f32.mrb[28].mxu0 }
0x1122   :  { %v4007_v25 = vpop.f32.mrb[29].mxu0  ;;  %v1223_v26 = vadd.f32 %v1212_v15, %v4826_v58  ;;  %v1218_v34 = vadd.f32 %v1212_v15, %v1170_v31  ;;  %4349 = vtanh.f32 %v1295_v33 }
0x1123   :  { %v1215_v27 = vpop.f32.mrb[30].mxu0 }
0x1124   :  { %1225 = vrot.lane.b32.xlu1 %v1223_v26, %s4566_s9  ;;  %v4008_v28 = vpop.f32.mrb[31].mxu0  ;;  %v1219_v35 = vmul.f32 0.5, %v1218_v34 }
0x1126   :  { %4351 = vtanh.f32 %v1219_v35 }
0x112c   :  { %v4350_v36 = vpop.eup %4349 }
0x112d   :  { %v1297_v37 = vadd.f32 1.0, %v4350_v36 }
0x112f   :  { %v1298_v40 = vmul.f32 0.5, %v1297_v37 }
0x1130   :  { %v4352_v38 = vpop.eup %4351 }
0x1131   :  { %v1221_v41 = vadd.f32 1.0, %v4352_v38 }
0x1133   :  { %v1222_v46 = vmul.f32 0.5, %v1221_v41 }
0x1192   :  { %v1302_v44 = vpop.permute.xlu0 %1301 }
0x1193   :  { %v1304_v45 = vmul.f32 %v1302_v44, %v1298_v40 }
0x1195   :  { %1306 = vrot.lane.b32.xlu0 %v1304_v45, %s4566_s9 }
0x1196   :  { %v1226_v47 = vpop.permute.xlu1 %1225 }
0x1197   :  { %v1228_v48 = vmul.f32 %v1226_v47, %v1222_v46 }
0x1199   :  { %1230 = vrot.lane.b32.xlu1 %v1228_v48, %s4566_s9 }
0x1207   :  { %v1307_v49 = vpop.permute.xlu0 %1306 }
0x1208   :  { %v1309_v50 = vadd.f32 %v1307_v49, %v1246_v30  ;;  %v1408_v30 = vld [vmem:[#allocation2 + $0x48] sm:$0xff] }
0x120a   :  { %4353 = vtanh.f32 %v1309_v50 }
0x120b   :  { %v1231_v51 = vpop.permute.xlu1 %1230 }
0x120c   :  { %v1233_v52 = vadd.f32 %v1231_v51, %v1170_v31  ;;  %v1332_v31 = vld [vmem:[#allocation2 + $0x30] sm:$0xff] }
0x120e   :  { %4355 = vtanh.f32 %v1233_v52 }
0x1214   :  { %v4354_v53 = vpop.eup %4353 }
0x1215   :  { %v1311_v54 = vsub.f32 %v4982_v5, %v4354_v53 }
0x1217   :  { %1313 = vrot.lane.b32.xlu0 %v1311_v54, %s4573_s3 }
0x1218   :  { %v4356_v55 = vpop.eup %4355 }
0x1219   :  { %v1235_v56 = vsub.f32 %v4986_v9, %v4356_v55 }
0x121b   :  { %1237 = vrot.lane.b32.xlu1 %v1235_v56, %s4573_s3 }
0x1289   :  { %v1314_v57 = vpop.permute.xlu0 %1313 }
0x128a   :  { %v1316_v59 = vmul.f32 %v1314_v57, %v1298_v40 }
0x128c   :  { %1318 = vrot.lane.b32.xlu0 %v1316_v59, %s4574_s17 }
0x128d   :  { %v1238_v60 = vpop.permute.xlu1 %1237 }
0x128e   :  { %v1240_v61 = vmul.f32 %v1238_v60, %v1222_v46 }
0x1290   :  { %1242 = vrot.lane.b32.xlu1 %v1240_v61, %s4574_s17 }
0x12fe   :  { %v1319_v62 = vpop.permute.xlu0 %1318 }
0x12ff   :  { %v5018_v63 = vadd.f32 %v4354_v53, %v1319_v62 }
0x1301   :  { %v1409_v0 = vpack.c.bf16 %v5018_v63, %v5018_v63 }
0x1302   :  { %v1243_v1 = vpop.permute.xlu1 %1242 }
0x1303   :  { %v5022_v2 = vadd.f32 %v4356_v55, %v1243_v1  ;;  %1411 = vrot.lane.b32.xlu0 %v1409_v0, %s4566_s9 }
0x1305   :  { %v1333_v3 = vpack.c.bf16 %v5022_v2, %v5022_v2 }
0x1307   :  { %1335 = vrot.lane.b32.xlu1 %v1333_v3, %s4566_s9 }
0x1375   :  { %v1412_v4 = vpop.permute.xlu0 %1411 }
0x1376   :  { %4030 = vmatmul.mubr.msk.bf16.vlgmr.msra.gmra.mrb[32].mxu1 %vm353_vm3, %v1412_v4 }
0x1377   :  { %4042 = vmatpush3.bf16.msra.mxu1 %v4437_v6  ;;  %4045 = vmatprep.mubr.msk.bf16.mxu1 %vm4571_vm1, %v4570_v11 }
0x1378   :  { %4043 = vmatprep.subr.bf16.mxu1 %v4570_v11 }
0x1379   :  { %v1336_v7 = vpop.permute.xlu1 %1335 }
0x137a   :  { %4022 = vmatmul.mubr.msk.bf16.vlgmr.msra.gmra.mrb[32].mxu0 %vm353_vm3, %v1336_v7 }
0x137b   :  { %4034 = vmatpush3.bf16.msra.mxu0 %v4438_v12  ;;  %4044 = vmatpush3.bf16.msra.mxu1 %v4439_v13 }
0x137c   :  { %4035 = vmatprep.subr.bf16.mxu0 %v4570_v11  ;;  %4037 = vmatprep.mubr.msk.bf16.mxu0 %vm4571_vm1, %v4570_v11 }
0x137f   :  { %4036 = vmatpush3.bf16.msra.mxu0 %v4440_v17 }
0x1449   :  { %v1450_v8 = vpop.f32.mrb[32].mxu1 }
0x144a   :  { %v4031_v19 = vpop.f32.mrb[33].mxu1  ;;  %v1461_v22 = vadd.f32 %v1450_v8, %v4816_v43  ;;  %v1456_v18 = vadd.f32 %v1450_v8, %v1408_v30 }
0x144b   :  { %v1453_v23 = vpop.f32.mrb[34].mxu1 }
0x144c   :  { %1463 = vrot.lane.b32.xlu0 %v1461_v22, %s4566_s9  ;;  %v4032_v16 = vpop.f32.mrb[35].mxu1  ;;  %v1457_v33 = vmul.f32 0.5, %v1456_v18 }
0x144d   :  { %v1374_v15 = vpop.f32.mrb[32].mxu0 }
0x144e   :  { %v4023_v25 = vpop.f32.mrb[33].mxu0  ;;  %v1385_v26 = vadd.f32 %v1374_v15, %v4826_v58  ;;  %v1380_v34 = vadd.f32 %v1374_v15, %v1332_v31  ;;  %4357 = vtanh.f32 %v1457_v33 }
0x144f   :  { %v1377_v27 = vpop.f32.mrb[34].mxu0 }
0x1450   :  { %1387 = vrot.lane.b32.xlu1 %v1385_v26, %s4566_s9  ;;  %v4024_v28 = vpop.f32.mrb[35].mxu0  ;;  %v1381_v35 = vmul.f32 0.5, %v1380_v34  ;;  %v1570_v27 = vld [vmem:[#allocation2 + $0x40] sm:$0xff] }
0x1452   :  { %4359 = vtanh.f32 %v1381_v35 }
0x1458   :  { %v4358_v36 = vpop.eup %4357 }
0x1459   :  { %v1459_v37 = vadd.f32 1.0, %v4358_v36 }
0x145b   :  { %v1460_v40 = vmul.f32 0.5, %v1459_v37 }
0x145c   :  { %v4360_v38 = vpop.eup %4359 }
0x145d   :  { %v1383_v41 = vadd.f32 1.0, %v4360_v38 }
0x145f   :  { %v1384_v46 = vmul.f32 0.5, %v1383_v41 }
0x14be   :  { %v1464_v44 = vpop.permute.xlu0 %1463 }
0x14bf   :  { %v1466_v45 = vmul.f32 %v1464_v44, %v1460_v40 }
0x14c1   :  { %1468 = vrot.lane.b32.xlu0 %v1466_v45, %s4566_s9 }
0x14c2   :  { %v1388_v47 = vpop.permute.xlu1 %1387 }
0x14c3   :  { %v1390_v48 = vmul.f32 %v1388_v47, %v1384_v46 }
0x14c5   :  { %1392 = vrot.lane.b32.xlu1 %v1390_v48, %s4566_s9 }
0x1533   :  { %v1469_v49 = vpop.permute.xlu0 %1468 }
0x1534   :  { %v1471_v50 = vadd.f32 %v1469_v49, %v1408_v30  ;;  %v1494_v30 = vld [vmem:[#allocation2 + $0x38] sm:$0xff] }
0x1536   :  { %4361 = vtanh.f32 %v1471_v50 }
0x1537   :  { %v1393_v51 = vpop.permute.xlu1 %1392 }
0x1538   :  { %v1395_v52 = vadd.f32 %v1393_v51, %v1332_v31 }
0x153a   :  { %4363 = vtanh.f32 %v1395_v52 }
0x1540   :  { %v4362_v53 = vpop.eup %4361 }
0x1541   :  { %v1473_v54 = vsub.f32 %v5018_v63, %v4362_v53 }
0x1543   :  { %1475 = vrot.lane.b32.xlu0 %v1473_v54, %s4573_s3 }
0x1544   :  { %v4364_v55 = vpop.eup %4363 }
0x1545   :  { %v1397_v56 = vsub.f32 %v5022_v2, %v4364_v55 }
0x1547   :  { %1399 = vrot.lane.b32.xlu1 %v1397_v56, %s4573_s3 }
0x15b5   :  { %v1476_v57 = vpop.permute.xlu0 %1475 }
0x15b6   :  { %v1478_v59 = vmul.f32 %v1476_v57, %v1460_v40 }
0x15b8   :  { %1480 = vrot.lane.b32.xlu0 %v1478_v59, %s4574_s17  ;;  %v4296_v59 = vld [vmem:[%s5584_s5] sm:$0xff]  }
0x15b9   :  { %v1400_v60 = vpop.permute.xlu1 %1399  ;;  %4061 = vmatprep.subr.bf16.mxu0 %v4296_v59 }
0x15ba   :  { %v1402_v61 = vmul.f32 %v1400_v60, %v1384_v46 }
0x15bc   :  { %1404 = vrot.lane.b32.xlu1 %v1402_v61, %s4574_s17  ;;  %v4298_v61 = vld [vmem:[%s5584_s5 + $0x8] sm:$0xff]  }
0x162a   :  { %v1481_v62 = vpop.permute.xlu0 %1480 }
0x162b   :  { %v1483_v0 = vadd.f32 %v4362_v53, %v1481_v62 }
0x162d   :  { %v1571_v1 = vpack.c.bf16 %v1483_v0, %v1483_v0 }
0x162e   :  { %v1405_v3 = vpop.permute.xlu1 %1404 }
0x162f   :  { %v5060_v4 = vadd.f32 %v4364_v55, %v1405_v3  ;;  %1573 = vrot.lane.b32.xlu0 %v1571_v1, %s4566_s9  ;;  %v3726_v3 = vld [vmem:[#allocation10] ss:$0 sm:$0xff] }
0x1631   :  { %v1495_v6 = vpack.c.bf16 %v5060_v4, %v5060_v4 }
0x1633   :  { %1497 = vrot.lane.b32.xlu1 %v1495_v6, %s4566_s9 }
0x16a1   :  { %v1574_v7 = vpop.permute.xlu0 %1573 }
0x16a2   :  { %4046 = vmatmul.mubr.msk.bf16.vlgmr.msra.gmra.mrb[36].mxu1 %vm353_vm3, %v1574_v7 }
0x16a5   :  { %v1498_v12 = vpop.permute.xlu1 %1497 }
0x16a6   :  { %4038 = vmatmul.mubr.msk.bf16.vlgmr.msra.gmra.mrb[36].mxu0 %vm353_vm3, %v1498_v12 }
0x16a7   :  { %4062 = vmatpush3.bf16.msra.mxu0 %v4296_v59 }
0x16a8   :  { %4063 = vmatprep.subr.bf16.mxu0 %v4298_v61 }
0x16ab   :  { %4064 = vmatpush3.bf16.msra.mxu0 %v4298_v61 }
0x16ac   :  { %4097 = vmatprep.subr.bf16.mxu0 %v4570_v11 }
0x1775   :  { %v1612_v13 = vpop.f32.mrb[36].mxu1 }
0x1776   :  { %v4047_v17 = vpop.f32.mrb[37].mxu1  ;;  %v1623_v8 = vadd.f32 %v1612_v13, %v4816_v43  ;;  %v1618_v28 = vadd.f32 %v1612_v13, %v1570_v27 }
0x1777   :  { %v1615_v19 = vpop.f32.mrb[38].mxu1 }
0x1778   :  { %1625 = vrot.lane.b32.xlu0 %v1623_v8, %s4566_s9  ;;  %v4048_v22 = vpop.f32.mrb[39].mxu1  ;;  %v1619_v18 = vmul.f32 0.5, %v1618_v28 }
0x1779   :  { %v1536_v23 = vpop.f32.mrb[36].mxu0 }
0x177a   :  { %v4039_v16 = vpop.f32.mrb[37].mxu0  ;;  %v1547_v15 = vadd.f32 %v1536_v23, %v4826_v58  ;;  %v1542_v31 = vadd.f32 %v1536_v23, %v1494_v30  ;;  %4365 = vtanh.f32 %v1619_v18  ;;  %v4297_v23 = vld [vmem:[%s5585_s6 + $0x18] sm:$0xff]  }
0x177b   :  { %v1539_v25 = vpop.f32.mrb[38].mxu0 }
0x177c   :  { %1549 = vrot.lane.b32.xlu1 %v1547_v15, %s4566_s9  ;;  %v4040_v26 = vpop.f32.mrb[39].mxu0  ;;  %v1543_v33 = vmul.f32 0.5, %v1542_v31 }
0x177e   :  { %4367 = vtanh.f32 %v1543_v33 }
0x1784   :  { %v4366_v43 = vpop.eup %4365 }
0x1785   :  { %v1621_v34 = vadd.f32 1.0, %v4366_v43 }
0x1787   :  { %v1622_v36 = vmul.f32 0.5, %v1621_v34 }
0x1788   :  { %v4368_v35 = vpop.eup %4367 }
0x1789   :  { %v1545_v37 = vadd.f32 1.0, %v4368_v35 }
0x178b   :  { %v1546_v58 = vmul.f32 0.5, %v1545_v37 }
0x17ea   :  { %v1626_v38 = vpop.permute.xlu0 %1625 }
0x17eb   :  { %v1628_v40 = vmul.f32 %v1626_v38, %v1622_v36 }
0x17ed   :  { %1630 = vrot.lane.b32.xlu0 %v1628_v40, %s4566_s9 }
0x17ee   :  { %v1550_v41 = vpop.permute.xlu1 %1549 }
0x17ef   :  { %v1552_v44 = vmul.f32 %v1550_v41, %v1546_v58  ;;  %v5160_v41 = vld [vmem:[%s5586_s7] sm:$0xff]  }
0x17f1   :  { %1554 = vrot.lane.b32.xlu1 %v1552_v44, %s4566_s9 }
0x185f   :  { %v1631_v45 = vpop.permute.xlu0 %1630 }
0x1860   :  { %v1633_v46 = vadd.f32 %v1631_v45, %v1570_v27  ;;  %v4299_v27 = vld [vmem:[%s5584_s5 + $0x10] sm:$0xff]  }
0x1862   :  { %4369 = vtanh.f32 %v1633_v46 }
0x1863   :  { %v1555_v47 = vpop.permute.xlu1 %1554 }
0x1864   :  { %v1557_v48 = vadd.f32 %v1555_v47, %v1494_v30  ;;  %v5169_v47 = vld [vmem:[%s5586_s7 + $0x8] sm:$0xff]  }
0x1866   :  { %4371 = vtanh.f32 %v1557_v48 }
0x186c   :  { %v4370_v49 = vpop.eup %4369 }
0x186d   :  { %v1635_v50 = vsub.f32 %v1483_v0, %v4370_v49 }
0x186f   :  { %1637 = vrot.lane.b32.xlu0 %v1635_v50, %s4573_s3 }
0x1870   :  { %v4372_v51 = vpop.eup %4371 }
0x1871   :  { %v1559_v52 = vsub.f32 %v5060_v4, %v4372_v51 }
0x1873   :  { %1561 = vrot.lane.b32.xlu1 %v1559_v52, %s4573_s3  ;;  %v5193_v52 = vld [vmem:[%s5586_s7 + $0x18] sm:$0xff]  }
0x18e1   :  { %v1638_v53 = vpop.permute.xlu0 %1637 }
0x18e2   :  { %v1640_v54 = vmul.f32 %v1638_v53, %v1622_v36 }
0x18e4   :  { %1642 = vrot.lane.b32.xlu0 %v1640_v54, %s4574_s17 }
0x18e5   :  { %v1562_v55 = vpop.permute.xlu1 %1561 }
0x18e6   :  { %v1564_v56 = vmul.f32 %v1562_v55, %v1546_v58  ;;  %v4300_v58 = vld [vmem:[%s5584_s5 + $0x18] sm:$0xff]  }
0x18e8   :  { %1490 = vrot.lane.b32.xlu0 %v1483_v0, %s4566_s9  ;;  %1566 = vrot.lane.b32.xlu1 %v1564_v56, %s4574_s17 }
0x18ec   :  { %1166 = vrot.lane.b32.xlu0 %v4982_v5, %s4566_s9  ;;  %v4293_v5 = vld [vmem:[%s5585_s6] sm:$0xff]  }
0x18ed   :  { %4049 = vmatprep.subr.bf16.mxu1 %v4293_v5 }
0x18ee   :  { %4050 = vmatpush3.bf16.msra.mxu1 %v4293_v5 }
0x18f0   :  { %842 = vrot.lane.b32.xlu0 %v4910_v20, %s4566_s9 }
0x18f4   :  { %518 = vrot.lane.b32.xlu0 %v4838_v39, %s4566_s9  ;;  %v4294_v39 = vld [vmem:[%s5585_s6 + $0x8] sm:$0xff]  }
0x18f5   :  { %4051 = vmatprep.subr.bf16.mxu1 %v4294_v39 }
0x18f6   :  { %4052 = vmatpush3.bf16.msra.mxu1 %v4294_v39 }
0x18f8   :  { %513 = vrot.lane.b32.xlu0 %v4842_v42, %s4566_s9 }
0x18fc   :  { %837 = vrot.lane.b32.xlu0 %v4914_v24, %s4566_s9 }
0x1900   :  { %1161 = vrot.lane.b32.xlu0 %v4986_v9, %s4566_s9  ;;  %v4295_v9 = vld [vmem:[%s5585_s6 + $0x10] sm:$0xff]  }
0x1901   :  { %4073 = vmatprep.subr.bf16.mxu1 %v4295_v9 }
0x1904   :  { %1485 = vrot.lane.b32.xlu0 %v5060_v4, %s4566_s9  ;;  %v3727_v4 = vld [vmem:[#allocation10 + $0x1] ss:$0 sm:$0xff] }
0x1908   :  { %2241 = vrot.lane.b32.xlu0 %v3727_v4, %s4566_s9 }
0x1956   :  { %v1643_v42 = vpop.permute.xlu0 %1642 }
0x1957   :  { %v1645_v20 = vadd.f32 %v4370_v49, %v1643_v42 }
0x1959   :  { %1652 = vrot.lane.b32.xlu1 %v1645_v20, %s4566_s9 }
0x195a   :  { %v1491_v24 = vpop.permute.xlu0 %1490 }
0x195b   :  { %1493 = vst.msk [vmem:[#allocation4 + $0x8] sm:$0xff] %vm353_vm3, %v1491_v24  ;;  %v3700_v24 = vld [vmem:[#allocation9] ss:$0 sm:$0xff] }
0x195d   :  { %1328 = vrot.lane.b32.xlu1 %v5018_v63, %s4566_s9 }
0x195e   :  { %v1167_v57 = vpop.permute.xlu0 %1166 }
0x195f   :  { %1169 = vst.msk [vmem:[#allocation4 + $0x18] sm:$0xff] %vm353_vm3, %v1167_v57 }
0x1961   :  { %1004 = vrot.lane.b32.xlu1 %v4946_v10, %s4566_s9 }
0x1962   :  { %v843_v60 = vpop.permute.xlu0 %842  ;;  %v1669_v12 = vld [vmem:[#allocation4 + $0x8] sm:$0xff] }
0x1963   :  { %845 = vst.msk [vmem:[#allocation4 + $0x28] sm:$0xff] %vm353_vm3, %v843_v60 }
0x1965   :  { %680 = vrot.lane.b32.xlu1 %v4874_v29, %s4566_s9  ;;  %v1567_v29 = vpop.permute.xlu1 %1566 }
0x1966   :  { %v519_v63 = vpop.permute.xlu0 %518  ;;  %v1569_v1 = vadd.f32 %v4372_v51, %v1567_v29  ;;  %v1671_v19 = vld [vmem:[#allocation4 + $0x18] sm:$0xff]  ;;  %v5184_v51 = vld [vmem:[%s5586_s7 + $0x10] sm:$0xff]  }
0x1967   :  { %521 = vst.msk [vmem:[#allocation4 + $0x38] sm:$0xff] %vm353_vm3, %v519_v63 }
0x1969   :  { %675 = vrot.lane.b32.xlu1 %v4878_v32, %s4566_s9 }
0x196a   :  { %v514_v10 = vpop.permute.xlu0 %513  ;;  %v1673_v25 = vld [vmem:[#allocation4 + $0x28] sm:$0xff] }
0x196b   :  { %516 = vst.msk [vmem:[#allocation3] sm:$0xff] %vm353_vm3, %v514_v10 }
0x196d   :  { %999 = vrot.lane.b32.xlu1 %v4950_v14, %s4566_s9 }
0x196e   :  { %v838_v62 = vpop.permute.xlu0 %837  ;;  %v1675_v18 = vld [vmem:[#allocation4 + $0x38] sm:$0xff] }
0x196f   :  { %840 = vst.msk [vmem:[#allocation3 + $0x10] sm:$0xff] %vm353_vm3, %v838_v62 }
0x1971   :  { %1323 = vrot.lane.b32.xlu1 %v5022_v2, %s4566_s9 }
0x1972   :  { %v1162_v0 = vpop.permute.xlu0 %1161  ;;  %v1656_v43 = vld [vmem:[#allocation3] sm:$0xff] }
0x1973   :  { %1164 = vst.msk [vmem:[#allocation3 + $0x20] sm:$0xff] %vm353_vm3, %v1162_v0 }
0x1975   :  { %1647 = vrot.lane.b32.xlu1 %v1569_v1, %s4566_s9 }
0x1976   :  { %v1486_v32 = vpop.permute.xlu0 %1485  ;;  %v1658_v37 = vld [vmem:[#allocation3 + $0x10] sm:$0xff] }
0x1977   :  { %1488 = vst.msk [vmem:[#allocation3 + $0x30] sm:$0xff] %vm353_vm3, %v1486_v32 }
0x1979   :  { %2157 = vrot.lane.b32.xlu1 %v3726_v3, %s4566_s9 }
0x197a   :  { %v1660_v44 = vld [vmem:[#allocation3 + $0x20] sm:$0xff] }
0x197e   :  { %v1662_v48 = vld [vmem:[#allocation3 + $0x30] sm:$0xff] }
0x19cb   :  { %v1653_v14 = vpop.permute.xlu1 %1652 }
0x19cc   :  { %1655 = vst.msk [vmem:[#allocation4] sm:$0xff] %vm353_vm3, %v1653_v14 }
0x19cf   :  { %v1329_v6 = vpop.permute.xlu1 %1328 }
0x19d0   :  { %1331 = vst.msk [vmem:[#allocation4 + $0x10] sm:$0xff] %vm353_vm3, %v1329_v6 }
0x19d3   :  { %v1005_v2 = vpop.permute.xlu1 %1004  ;;  %v1668_v7 = vld [vmem:[#allocation4] sm:$0xff] }
0x19d4   :  { %1007 = vst.msk [vmem:[#allocation4 + $0x20] sm:$0xff] %vm353_vm3, %v1005_v2  ;;  %v1676_v13 = vpack.c.bf16 %v1669_v12, %v1668_v7 }
0x19d6   :  { %4053 = vmatprep.mubr.msk.bf16.mxu1 %vm353_vm3, %v1676_v13 }
0x19d7   :  { %v681_v17 = vpop.permute.xlu1 %680  ;;  %v1670_v8 = vld [vmem:[#allocation4 + $0x10] sm:$0xff] }
0x19d8   :  { %683 = vst.msk [vmem:[#allocation4 + $0x30] sm:$0xff] %vm353_vm3, %v681_v17  ;;  %v1677_v22 = vpack.c.bf16 %v1671_v19, %v1670_v8 }
0x19da   :  { %4054 = vmatmul.mubr.msk.bf16.vlgmr.msra.gmra.mrb[40].mxu1 %vm353_vm3, %v1677_v22 }
0x19db   :  { %4074 = vmatpush3.bf16.msra.mxu1 %v4295_v9  ;;  %v676_v16 = vpop.permute.xlu1 %675  ;;  %v1672_v15 = vld [vmem:[#allocation4 + $0x20] sm:$0xff] }
0x19dc   :  { %678 = vst.msk [vmem:[#allocation3 + $0x8] sm:$0xff] %vm353_vm3, %v676_v16  ;;  %v1678_v26 = vpack.c.bf16 %v1673_v25, %v1672_v15  ;;  %4075 = vmatprep.subr.bf16.mxu1 %v4297_v23 }
0x19de   :  { %4057 = vmatprep.mubr.msk.bf16.mxu1 %vm353_vm3, %v1678_v26 }
0x19df   :  { %v1000_v28 = vpop.permute.xlu1 %999  ;;  %v1674_v30 = vld [vmem:[#allocation4 + $0x30] sm:$0xff]  ;;  %4076 = vmatpush3.bf16.msra.mxu1 %v4297_v23 }
0x19e0   :  { %1002 = vst.msk [vmem:[#allocation3 + $0x18] sm:$0xff] %vm353_vm3, %v1000_v28  ;;  %v1679_v31 = vpack.c.bf16 %v1675_v18, %v1674_v30  ;;  %4085 = vmatprep.subr.bf16.mxu1 %v4299_v27 }
0x19e2   :  { %4058 = vmatmul.mubr.msk.bf16.gmra.mrb[44].mxu1 %vm353_vm3, %v1679_v31 }
0x19e3   :  { %4077 = vmatprep.mubr.msk.bf16.mxu1 %vm353_vm3, %v1676_v13  ;;  %v1324_v33 = vpop.permute.xlu1 %1323  ;;  %v1657_v34 = vld [vmem:[#allocation3 + $0x8] sm:$0xff] }
0x19e4   :  { %1326 = vst.msk [vmem:[#allocation3 + $0x28] sm:$0xff] %vm353_vm3, %v1324_v33  ;;  %v1664_v35 = vpack.c.bf16 %v1657_v34, %v1656_v43 }
0x19e6   :  { %4065 = vmatprep.mubr.msk.bf16.mxu0 %vm353_vm3, %v1664_v35 }
0x19e7   :  { %v1648_v36 = vpop.permute.xlu1 %1647  ;;  %v1659_v38 = vld [vmem:[#allocation3 + $0x18] sm:$0xff] }
0x19e8   :  { %1650 = vst.msk [vmem:[#allocation3 + $0x38] sm:$0xff] %vm353_vm3, %v1648_v36  ;;  %v1665_v40 = vpack.c.bf16 %v1659_v38, %v1658_v37 }
0x19ea   :  { %4066 = vmatmul.mubr.msk.bf16.vlgmr.msra.gmra.mrb[40].mxu0 %vm353_vm3, %v1665_v40  ;;  %4078 = vmatmul.mubr.msk.bf16.vlgmr.msra.gmra.mrb[48].mxu1 %vm353_vm3, %v1677_v22  ;;  %v3721_v22 = vld [vmem:[#allocation9 + $0x1] ss:$0 sm:$0xff] }
0x19eb   :  { %4081 = vmatprep.mubr.msk.bf16.mxu1 %vm353_vm3, %v1678_v26  ;;  %4086 = vmatpush3.bf16.msra.mxu1 %v4299_v27  ;;  %v1661_v45 = vld [vmem:[#allocation3 + $0x28] sm:$0xff]  ;;  %v5220_v23 = vpop.permute.xlu1 %2157 }
0x19ec   :  { %v1666_v46 = vpack.c.bf16 %v1661_v45, %v1660_v44  ;;  %4087 = vmatprep.subr.bf16.mxu1 %v4300_v58  ;;  %4098 = vmatpush3.bf16.msra.mxu0 %v5160_v41 }
0x19ed   :  { %4099 = vmatprep.subr.bf16.mxu0 %v4570_v11 }
0x19ee   :  { %4069 = vmatprep.mubr.msk.bf16.mxu0 %vm353_vm3, %v1666_v46 }
0x19ef   :  { %v1663_v49 = vld [vmem:[#allocation3 + $0x38] sm:$0xff]  ;;  %4088 = vmatpush3.bf16.msra.mxu1 %v4300_v58 }
0x19f0   :  { %v1667_v50 = vpack.c.bf16 %v1663_v49, %v1662_v48  ;;  %4100 = vmatpush3.bf16.msra.mxu0 %v5169_v47  ;;  %4105 = vmatprep.subr.bf16.mxu1 %v4570_v11  ;;  %v5234_v48 = vpop.permute.xlu0 %2241 }
0x19f1   :  { %4113 = vmatprep.subr.bf16.mxu0 %v4570_v11 }
0x19f2   :  { %4070 = vmatmul.mubr.msk.bf16.gmra.mrb[44].mxu0 %vm353_vm3, %v1667_v50  ;;  %4082 = vmatmul.mubr.msk.bf16.gmra.mrb[52].mxu1 %vm353_vm3, %v1679_v31 }
0x19f3   :  { %4089 = vmatprep.mubr.msk.bf16.mxu1 %vm353_vm3, %v1664_v35  ;;  %4101 = vmatprep.mubr.msk.bf16.mxu0 %vm4571_vm1, %v4570_v11 }
0x19fa   :  { %4090 = vmatmul.mubr.msk.bf16.vlgmr.msra.gmra.mrb[48].mxu1 %vm353_vm3, %v1665_v40  ;;  %4102 = vmatmul.mubr.bf16.vlgmr.msra.gmra.mrb[48].mxu0 %v4572_v21 }
0x19fb   :  { %4093 = vmatprep.mubr.msk.bf16.mxu1 %vm353_vm3, %v1666_v46  ;;  %4106 = vmatpush3.bf16.msra.mxu1 %v5184_v51 }
0x19fc   :  { %4107 = vmatprep.subr.bf16.mxu1 %v4570_v11  ;;  %4114 = vmatpush3.bf16.msra.mxu0 %v5160_v41 }
0x19fd   :  { %4115 = vmatprep.subr.bf16.mxu0 %v4570_v11  ;;  %4117 = vmatprep.mubr.msk.bf16.mxu0 %vm4571_vm1, %v4570_v11 }
0x19ff   :  { %4108 = vmatpush3.bf16.msra.mxu1 %v5193_v52 }
0x1a00   :  { %4116 = vmatpush3.bf16.msra.mxu0 %v5169_v47  ;;  %4121 = vmatprep.subr.bf16.mxu1 %v4570_v11 }
0x1a01   :  { %4129 = vmatprep.subr.bf16.mxu0 %v4570_v11 }
0x1a02   :  { %4094 = vmatmul.mubr.msk.bf16.gmra.mrb[52].mxu1 %vm353_vm3, %v1667_v50 }
0x1a03   :  { %4109 = vmatprep.mubr.msk.bf16.mxu1 %vm4571_vm1, %v4570_v11 }
0x1a0a   :  { %4110 = vmatmul.mubr.bf16.vlgmr.msra.gmra.mrb[56].mxu1 %v4572_v21 }
0x1a0b   :  { %4122 = vmatpush3.bf16.msra.mxu1 %v5184_v51  ;;  %4125 = vmatprep.mubr.msk.bf16.mxu1 %vm4571_vm1, %v4570_v11 }
0x1a0c   :  { %4123 = vmatprep.subr.bf16.mxu1 %v4570_v11 }
0x1a0f   :  { %4124 = vmatpush3.bf16.msra.mxu1 %v5193_v52 }
0x1a10   :  { %4137 = vmatprep.subr.bf16.mxu1 %v4570_v11 }
0x1aad   :  { %v4055_v53 = vpop.f32.mrb[40].mxu1 }
0x1aae   :  { %v1746_v54 = vpop.f32.mrb[41].mxu1 }
0x1aaf   :  { %v4056_v55 = vpop.f32.mrb[42].mxu1 }
0x1ab0   :  { %v1749_v56 = vpop.f32.mrb[43].mxu1 }
0x1ab5   :  { %v4059_v5 = vpop.f32.mrb[44].mxu1 }
0x1ab6   :  { %v1762_v39 = vpop.f32.mrb[45].mxu1 }
0x1ab7   :  { %v4060_v42 = vpop.f32.mrb[46].mxu1 }
0x1ab8   :  { %v1765_v20 = vpop.f32.mrb[47].mxu1 }
0x1abd   :  { %v4067_v21 = vpop.f32.mrb[40].mxu0 }
0x1abe   :  { %v1844_v9 = vadd.f32 %v4067_v21, %v4055_v53  ;;  %v1835_v57 = vpop.f32.mrb[41].mxu0 }
0x1abf   :  { %v1836_v59 = vadd.f32 %v1835_v57, %v1746_v54  ;;  %v4068_v60 = vpop.f32.mrb[42].mxu0 }
0x1ac0   :  { %v1875_v61 = vadd.f32 %v3700_v24, %v1844_v9  ;;  %v1847_v63 = vadd.f32 %v4068_v60, %v4056_v55  ;;  %v1838_v10 = vpop.f32.mrb[43].mxu0 }
0x1ac1   :  { %v1873_v62 = vadd.f32 %v3700_v24, %v1836_v59  ;;  %v1839_v29 = vadd.f32 %v1838_v10, %v1749_v56 }
0x1ac2   :  { %1883 = vst.msk [vmem:[#allocation2 + $0x10] sm:$0xff] %vm218_vm2, %v1875_v61  ;;  %v1876_v0 = vadd.f32 %v3700_v24, %v1847_v63 }
0x1ac3   :  { %1881 = vst.msk [vmem:[#allocation2] sm:$0xff] %vm218_vm2, %v1873_v62  ;;  %v1874_v1 = vadd.f32 %v3700_v24, %v1839_v29 }
0x1ac4   :  { %1884 = vst.msk [vmem:[#allocation2 + $0x18] sm:$0xff] %vm218_vm2, %v1876_v0 }
0x1ac5   :  { %1882 = vst.msk [vmem:[#allocation2 + $0x8] sm:$0xff] %vm218_vm2, %v1874_v1  ;;  %v4071_v32 = vpop.f32.mrb[44].mxu0 }
0x1ac6   :  { %v1860_v3 = vadd.f32 %v4071_v32, %v4059_v5  ;;  %v1851_v4 = vpop.f32.mrb[45].mxu0 }
0x1ac7   :  { %v1852_v14 = vadd.f32 %v1851_v4, %v1762_v39  ;;  %v4072_v6 = vpop.f32.mrb[46].mxu0 }
0x1ac8   :  { %v1879_v2 = vadd.f32 %v3700_v24, %v1860_v3  ;;  %v1863_v7 = vadd.f32 %v4072_v6, %v4060_v42  ;;  %v1854_v12 = vpop.f32.mrb[47].mxu0 }
0x1ac9   :  { %v1877_v13 = vadd.f32 %v3700_v24, %v1852_v14  ;;  %v1855_v17 = vadd.f32 %v1854_v12, %v1765_v20 }
0x1aca   :  { %1887 = vst.msk [vmem:[#allocation2 + $0x30] sm:$0xff] %vm218_vm2, %v1879_v2  ;;  %v1880_v8 = vadd.f32 %v3700_v24, %v1863_v7  ;;  %v2099_v56 = vld [vmem:[#allocation2] sm:$0xff] }
0x1acb   :  { %1885 = vst.msk [vmem:[#allocation2 + $0x20] sm:$0xff] %vm218_vm2, %v1877_v13  ;;  %v1878_v19 = vadd.f32 %v3700_v24, %v1855_v17 }
0x1acc   :  { %1888 = vst.msk [vmem:[#allocation2 + $0x38] sm:$0xff] %vm218_vm2, %v1880_v8 }
0x1acd   :  { %1886 = vst.msk [vmem:[#allocation2 + $0x28] sm:$0xff] %vm218_vm2, %v1878_v19  ;;  %v4091_v16 = vpop.f32.mrb[48].mxu1  ;;  %v2146_v15 = vpop.f32.mrb[48].mxu0 }
0x1ace   :  { %v2063_v25 = vadd.f32 %v4091_v16, %v3721_v22  ;;  %v2160_v26 = vadd.f32 %v5220_v23, %v2146_v15  ;;  %v2022_v27 = vpop.f32.mrb[49].mxu1  ;;  %v4103_v28 = vpop.f32.mrb[49].mxu0  ;;  %v2152_v5 = vadd.f32 %v2146_v15, %v2099_v56 }
0x1acf   :  { %v2061_v30 = vadd.f32 %v3721_v22, %v2022_v27  ;;  %v4092_v18 = vpop.f32.mrb[50].mxu1  ;;  %v2149_v31 = vpop.f32.mrb[50].mxu0 }
0x1ad0   :  { %2071 = vst.msk [vmem:[#allocation2 + $0x50] sm:$0xff] %vm218_vm2, %v2063_v25  ;;  %v2064_v33 = vadd.f32 %v4092_v18, %v3721_v22  ;;  %v2025_v43 = vpop.f32.mrb[51].mxu1  ;;  %2162 = vrot.lane.b32.xlu1 %v2160_v26, %s4566_s9  ;;  %v4104_v34 = vpop.f32.mrb[51].mxu0  ;;  %v2153_v39 = vmul.f32 0.5, %v2152_v5 }
0x1ad1   :  { %2069 = vst.msk [vmem:[#allocation2 + $0x40] sm:$0xff] %vm218_vm2, %v2061_v30  ;;  %v2062_v35 = vadd.f32 %v3721_v22, %v2025_v43 }
0x1ad2   :  { %2072 = vst.msk [vmem:[#allocation2 + $0x58] sm:$0xff] %vm218_vm2, %v2064_v33  ;;  %4373 = vtanh.f32 %v2153_v39 }
0x1ad3   :  { %2070 = vst.msk [vmem:[#allocation2 + $0x48] sm:$0xff] %vm218_vm2, %v2062_v35 }
0x1ad5   :  { %v4095_v36 = vpop.f32.mrb[52].mxu1 }
0x1ad6   :  { %v2067_v37 = vadd.f32 %v4095_v36, %v3721_v22  ;;  %v2038_v38 = vpop.f32.mrb[53].mxu1 }
0x1ad7   :  { %v2065_v40 = vadd.f32 %v3721_v22, %v2038_v38  ;;  %v4096_v58 = vpop.f32.mrb[54].mxu1  ;;  %v2277_v38 = vld [vmem:[#allocation2 + $0x8] sm:$0xff] }
0x1ad8   :  { %2075 = vst.msk [vmem:[#allocation2 + $0x70] sm:$0xff] %vm218_vm2, %v2067_v37  ;;  %v2068_v44 = vadd.f32 %v4096_v58, %v3721_v22  ;;  %v2041_v45 = vpop.f32.mrb[55].mxu1 }
0x1ad9   :  { %2073 = vst.msk [vmem:[#allocation2 + $0x60] sm:$0xff] %vm218_vm2, %v2065_v40  ;;  %v2066_v46 = vadd.f32 %v3721_v22, %v2041_v45 }
0x1ada   :  { %2076 = vst.msk [vmem:[#allocation2 + $0x78] sm:$0xff] %vm218_vm2, %v2068_v44 }
0x1adb   :  { %2074 = vst.msk [vmem:[#allocation2 + $0x68] sm:$0xff] %vm218_vm2, %v2066_v46 }
0x1adc   :  { %v4374_v21 = vpop.eup %4373 }
0x1add   :  { %v2230_v49 = vpop.f32.mrb[56].mxu1  ;;  %v2155_v9 = vadd.f32 1.0, %v4374_v21 }
0x1ade   :  { %v2244_v50 = vadd.f32 %v5234_v48, %v2230_v49  ;;  %v4111_v53 = vpop.f32.mrb[57].mxu1 }
0x1adf   :  { %v2233_v54 = vpop.f32.mrb[58].mxu1  ;;  %v2156_v57 = vmul.f32 0.5, %v2155_v9  ;;  %v2353_v44 = vld [vmem:[#allocation2 + $0x70] sm:$0xff] }
0x1ae0   :  { %2246 = vrot.lane.b32.xlu0 %v2244_v50, %s4566_s9  ;;  %v4112_v55 = vpop.f32.mrb[59].mxu1 }
0x1ae1   :  { %v2183_v42 = vld [vmem:[#allocation2 + $0x78] sm:$0xff] }
0x1ae2   :  { %v2236_v20 = vadd.f32 %v2230_v49, %v2183_v42 }
0x1ae4   :  { %v2237_v24 = vmul.f32 0.5, %v2236_v20 }
0x1ae6   :  { %4375 = vtanh.f32 %v2237_v24 }
0x1af0   :  { %v4376_v61 = vpop.eup %4375 }
0x1af1   :  { %v2239_v63 = vadd.f32 1.0, %v4376_v61 }
0x1af3   :  { %v2240_v10 = vmul.f32 0.5, %v2239_v63 }
0x1b42   :  { %v2163_v59 = vpop.permute.xlu1 %2162 }
0x1b43   :  { %v2165_v60 = vmul.f32 %v2163_v59, %v2156_v57 }
0x1b45   :  { %2167 = vrot.lane.b32.xlu1 %v2165_v60, %s4566_s9 }
0x1b52   :  { %v2247_v62 = vpop.permute.xlu0 %2246 }
0x1b53   :  { %v2249_v29 = vmul.f32 %v2247_v62, %v2240_v10 }
0x1b55   :  { %2251 = vrot.lane.b32.xlu0 %v2249_v29, %s4566_s9 }
0x1bb7   :  { %v2168_v0 = vpop.permute.xlu1 %2167 }
0x1bb8   :  { %v2170_v1 = vadd.f32 %v2168_v0, %v2099_v56 }
0x1bba   :  { %4377 = vtanh.f32 %v2170_v1 }
0x1bc4   :  { %v4378_v32 = vpop.eup %4377 }
0x1bc5   :  { %v2172_v3 = vsub.f32 0.0, %v4378_v32 }
0x1bc7   :  { %v2252_v4 = vpop.permute.xlu0 %2251  ;;  %2174 = vrot.lane.b32.xlu1 %v2172_v3, %s4573_s3 }
0x1bc8   :  { %v2254_v14 = vadd.f32 %v2252_v4, %v2183_v42 }
0x1bca   :  { %4379 = vtanh.f32 %v2254_v14 }
0x1bd4   :  { %v4380_v6 = vpop.eup %4379 }
0x1bd5   :  { %v2256_v2 = vsub.f32 0.0, %v4380_v6 }
0x1bd7   :  { %2258 = vrot.lane.b32.xlu0 %v2256_v2, %s4573_s3 }
0x1c39   :  { %v2175_v7 = vpop.permute.xlu1 %2174 }
0x1c3a   :  { %v2177_v12 = vmul.f32 %v2175_v7, %v2156_v57 }
0x1c3c   :  { %2179 = vrot.lane.b32.xlu1 %v2177_v12, %s4574_s17 }
0x1c49   :  { %v2259_v13 = vpop.permute.xlu0 %2258 }
0x1c4a   :  { %v2261_v17 = vmul.f32 %v2259_v13, %v2240_v10 }
0x1c4c   :  { %2263 = vrot.lane.b32.xlu0 %v2261_v17, %s4574_s17 }
0x1cae   :  { %v2180_v8 = vpop.permute.xlu1 %2179 }
0x1caf   :  { %v5244_v19 = vadd.f32 %v4378_v32, %v2180_v8 }
0x1cb1   :  { %v2278_v22 = vpack.c.bf16 %v5244_v19, %v5244_v19 }
0x1cb3   :  { %2280 = vrot.lane.b32.xlu1 %v2278_v22, %s4566_s9 }
0x1cbe   :  { %v2264_v16 = vpop.permute.xlu0 %2263 }
0x1cbf   :  { %v5249_v15 = vadd.f32 %v4380_v6, %v2264_v16 }
0x1cc1   :  { %v2354_v25 = vpack.c.bf16 %v5249_v15, %v5249_v15 }
0x1cc3   :  { %2356 = vrot.lane.b32.xlu0 %v2354_v25, %s4566_s9 }
0x1d25   :  { %v2281_v26 = vpop.permute.xlu1 %2280 }
0x1d26   :  { %4118 = vmatmul.mubr.msk.bf16.vlgmr.msra.gmra.mrb[52].mxu0 %vm353_vm3, %v2281_v26 }
0x1d27   :  { %4130 = vmatpush3.bf16.msra.mxu0 %v5160_v41  ;;  %4133 = vmatprep.mubr.msk.bf16.mxu0 %vm4571_vm1, %v4570_v11 }
0x1d28   :  { %4131 = vmatprep.subr.bf16.mxu0 %v4570_v11 }
0x1d2b   :  { %4132 = vmatpush3.bf16.msra.mxu0 %v5169_v47 }
0x1d2c   :  { %4145 = vmatprep.subr.bf16.mxu0 %v4570_v11 }
0x1d35   :  { %v2357_v27 = vpop.permute.xlu0 %2356 }
0x1d36   :  { %4126 = vmatmul.mubr.msk.bf16.vlgmr.msra.gmra.mrb[60].mxu1 %vm353_vm3, %v2357_v27 }
0x1d37   :  { %4138 = vmatpush3.bf16.msra.mxu1 %v5184_v51  ;;  %4141 = vmatprep.mubr.msk.bf16.mxu1 %vm4571_vm1, %v4570_v11 }
0x1d38   :  { %4139 = vmatprep.subr.bf16.mxu1 %v4570_v11 }
0x1d3b   :  { %4140 = vmatpush3.bf16.msra.mxu1 %v5193_v52 }
0x1d3c   :  { %4153 = vmatprep.subr.bf16.mxu1 %v4570_v11 }
0x1df9   :  { %v2319_v28 = vpop.f32.mrb[52].mxu0 }
0x1dfa   :  { %v2330_v30 = vadd.f32 %v2319_v28, %v5220_v23  ;;  %v4119_v18 = vpop.f32.mrb[53].mxu0  ;;  %v2325_v40 = vadd.f32 %v2319_v28, %v2277_v38 }
0x1dfb   :  { %v2322_v31 = vpop.f32.mrb[54].mxu0 }
0x1dfc   :  { %2332 = vrot.lane.b32.xlu1 %v2330_v30, %s4566_s9  ;;  %v4120_v33 = vpop.f32.mrb[55].mxu0  ;;  %v2326_v58 = vmul.f32 0.5, %v2325_v40  ;;  %v2439_v30 = vld [vmem:[#allocation2 + $0x10] sm:$0xff] }
0x1dfd   :  { %v2515_v33 = vld [vmem:[#allocation2 + $0x68] sm:$0xff] }
0x1dfe   :  { %4381 = vtanh.f32 %v2326_v58 }
0x1e08   :  { %v4382_v46 = vpop.eup %4381 }
0x1e09   :  { %v2395_v43 = vpop.f32.mrb[60].mxu1  ;;  %v2328_v50 = vadd.f32 1.0, %v4382_v46 }
0x1e0a   :  { %v2406_v34 = vadd.f32 %v2395_v43, %v5234_v48  ;;  %v4127_v35 = vpop.f32.mrb[61].mxu1  ;;  %v2401_v45 = vadd.f32 %v2395_v43, %v2353_v44 }
0x1e0b   :  { %v2398_v36 = vpop.f32.mrb[62].mxu1  ;;  %v2329_v53 = vmul.f32 0.5, %v2328_v50 }
0x1e0c   :  { %2408 = vrot.lane.b32.xlu0 %v2406_v34, %s4566_s9  ;;  %v4128_v37 = vpop.f32.mrb[63].mxu1  ;;  %v2402_v49 = vmul.f32 0.5, %v2401_v45 }
0x1e0e   :  { %4383 = vtanh.f32 %v2402_v49 }
0x1e18   :  { %v4384_v56 = vpop.eup %4383 }
0x1e19   :  { %v2404_v5 = vadd.f32 1.0, %v4384_v56 }
0x1e1b   :  { %v2405_v39 = vmul.f32 0.5, %v2404_v5 }
0x1e6e   :  { %v2333_v54 = vpop.permute.xlu1 %2332 }
0x1e6f   :  { %v2335_v55 = vmul.f32 %v2333_v54, %v2329_v53 }
0x1e71   :  { %2337 = vrot.lane.b32.xlu1 %v2335_v55, %s4566_s9 }
0x1e7e   :  { %v2409_v42 = vpop.permute.xlu0 %2408 }
0x1e7f   :  { %v2411_v20 = vmul.f32 %v2409_v42, %v2405_v39 }
0x1e81   :  { %2413 = vrot.lane.b32.xlu0 %v2411_v20, %s4566_s9 }
0x1ee3   :  { %v2338_v21 = vpop.permute.xlu1 %2337 }
0x1ee4   :  { %v2340_v24 = vadd.f32 %v2338_v21, %v2277_v38 }
0x1ee6   :  { %4385 = vtanh.f32 %v2340_v24 }
0x1ef0   :  { %v4386_v9 = vpop.eup %4385 }
0x1ef1   :  { %v2342_v57 = vsub.f32 %v5244_v19, %v4386_v9 }
0x1ef3   :  { %v2414_v59 = vpop.permute.xlu0 %2413  ;;  %2344 = vrot.lane.b32.xlu1 %v2342_v57, %s4573_s3 }
0x1ef4   :  { %v2416_v60 = vadd.f32 %v2414_v59, %v2353_v44 }
0x1ef6   :  { %4387 = vtanh.f32 %v2416_v60 }
0x1f00   :  { %v4388_v61 = vpop.eup %4387 }
0x1f01   :  { %v2418_v63 = vsub.f32 %v5249_v15, %v4388_v61 }
0x1f03   :  { %2420 = vrot.lane.b32.xlu0 %v2418_v63, %s4573_s3 }
0x1f65   :  { %v2345_v10 = vpop.permute.xlu1 %2344 }
0x1f66   :  { %v2347_v62 = vmul.f32 %v2345_v10, %v2329_v53 }
0x1f68   :  { %2349 = vrot.lane.b32.xlu1 %v2347_v62, %s4574_s17 }
0x1f75   :  { %v2421_v29 = vpop.permute.xlu0 %2420 }
0x1f76   :  { %v2423_v0 = vmul.f32 %v2421_v29, %v2405_v39 }
0x1f78   :  { %2425 = vrot.lane.b32.xlu0 %v2423_v0, %s4574_s17 }
0x1fda   :  { %v2350_v1 = vpop.permute.xlu1 %2349 }
0x1fdb   :  { %v5280_v32 = vadd.f32 %v4386_v9, %v2350_v1 }
0x1fdd   :  { %v2440_v3 = vpack.c.bf16 %v5280_v32, %v5280_v32 }
0x1fdf   :  { %2442 = vrot.lane.b32.xlu1 %v2440_v3, %s4566_s9 }
0x1fea   :  { %v2426_v4 = vpop.permute.xlu0 %2425 }
0x1feb   :  { %v5285_v14 = vadd.f32 %v4388_v61, %v2426_v4 }
0x1fed   :  { %v2516_v6 = vpack.c.bf16 %v5285_v14, %v5285_v14 }
0x1fef   :  { %2518 = vrot.lane.b32.xlu0 %v2516_v6, %s4566_s9 }
0x2051   :  { %v2443_v2 = vpop.permute.xlu1 %2442 }
0x2052   :  { %4134 = vmatmul.mubr.msk.bf16.vlgmr.msra.gmra.mrb[56].mxu0 %vm353_vm3, %v2443_v2 }
0x2053   :  { %4146 = vmatpush3.bf16.msra.mxu0 %v5160_v41  ;;  %4149 = vmatprep.mubr.msk.bf16.mxu0 %vm4571_vm1, %v4570_v11 }
0x2054   :  { %4147 = vmatprep.subr.bf16.mxu0 %v4570_v11 }
0x2057   :  { %4148 = vmatpush3.bf16.msra.mxu0 %v5169_v47 }
0x2058   :  { %4161 = vmatprep.subr.bf16.mxu0 %v4570_v11 }
0x2061   :  { %v2519_v7 = vpop.permute.xlu0 %2518 }
0x2062   :  { %4142 = vmatmul.mubr.msk.bf16.vlgmr.msra.gmra.mrb[64].mxu1 %vm353_vm3, %v2519_v7 }
0x2063   :  { %4154 = vmatpush3.bf16.msra.mxu1 %v5184_v51  ;;  %4157 = vmatprep.mubr.msk.bf16.mxu1 %vm4571_vm1, %v4570_v11 }
0x2064   :  { %4155 = vmatprep.subr.bf16.mxu1 %v4570_v11 }
0x2067   :  { %4156 = vmatpush3.bf16.msra.mxu1 %v5193_v52 }
0x2068   :  { %4169 = vmatprep.subr.bf16.mxu1 %v4570_v11 }
0x2125   :  { %v2481_v12 = vpop.f32.mrb[56].mxu0 }
0x2126   :  { %v2492_v13 = vadd.f32 %v2481_v12, %v5220_v23  ;;  %v4135_v17 = vpop.f32.mrb[57].mxu0  ;;  %v2487_v18 = vadd.f32 %v2481_v12, %v2439_v30 }
0x2127   :  { %v2484_v8 = vpop.f32.mrb[58].mxu0 }
0x2128   :  { %2494 = vrot.lane.b32.xlu1 %v2492_v13, %s4566_s9  ;;  %v4136_v22 = vpop.f32.mrb[59].mxu0  ;;  %v2488_v31 = vmul.f32 0.5, %v2487_v18  ;;  %v2601_v8 = vld [vmem:[#allocation2 + $0x18] sm:$0xff] }
0x212a   :  { %4389 = vtanh.f32 %v2488_v31 }
0x2134   :  { %v4390_v34 = vpop.eup %4389 }
0x2135   :  { %v2557_v16 = vpop.f32.mrb[64].mxu1  ;;  %v2490_v36 = vadd.f32 1.0, %v4390_v34 }
0x2136   :  { %v2568_v25 = vadd.f32 %v2557_v16, %v5234_v48  ;;  %v4143_v26 = vpop.f32.mrb[65].mxu1  ;;  %v2563_v43 = vadd.f32 %v2557_v16, %v2515_v33 }
0x2137   :  { %v2560_v27 = vpop.f32.mrb[66].mxu1  ;;  %v2491_v37 = vmul.f32 0.5, %v2490_v36 }
0x2138   :  { %2570 = vrot.lane.b32.xlu0 %v2568_v25, %s4566_s9  ;;  %v4144_v28 = vpop.f32.mrb[67].mxu1  ;;  %v2564_v35 = vmul.f32 0.5, %v2563_v43  ;;  %v2677_v25 = vld [vmem:[#allocation2 + $0x60] sm:$0xff] }
0x213a   :  { %4391 = vtanh.f32 %v2564_v35 }
0x2144   :  { %v4392_v58 = vpop.eup %4391 }
0x2145   :  { %v2566_v44 = vadd.f32 1.0, %v4392_v58 }
0x2147   :  { %v2567_v45 = vmul.f32 0.5, %v2566_v44 }
0x219a   :  { %v2495_v38 = vpop.permute.xlu1 %2494 }
0x219b   :  { %v2497_v40 = vmul.f32 %v2495_v38, %v2491_v37 }
0x219d   :  { %2499 = vrot.lane.b32.xlu1 %v2497_v40, %s4566_s9 }
0x21aa   :  { %v2571_v46 = vpop.permute.xlu0 %2570 }
0x21ab   :  { %v2573_v49 = vmul.f32 %v2571_v46, %v2567_v45 }
0x21ad   :  { %2575 = vrot.lane.b32.xlu0 %v2573_v49, %s4566_s9 }
0x220f   :  { %v2500_v50 = vpop.permute.xlu1 %2499 }
0x2210   :  { %v2502_v53 = vadd.f32 %v2500_v50, %v2439_v30 }
0x2212   :  { %4393 = vtanh.f32 %v2502_v53 }
0x221c   :  { %v4394_v54 = vpop.eup %4393 }
0x221d   :  { %v2504_v55 = vsub.f32 %v5280_v32, %v4394_v54 }
0x221f   :  { %v2576_v56 = vpop.permute.xlu0 %2575  ;;  %2506 = vrot.lane.b32.xlu1 %v2504_v55, %s4573_s3 }
0x2220   :  { %v2578_v5 = vadd.f32 %v2576_v56, %v2515_v33 }
0x2222   :  { %4395 = vtanh.f32 %v2578_v5 }
0x222c   :  { %v4396_v39 = vpop.eup %4395 }
0x222d   :  { %v2580_v42 = vsub.f32 %v5285_v14, %v4396_v39 }
0x222f   :  { %2582 = vrot.lane.b32.xlu0 %v2580_v42, %s4573_s3 }
0x2291   :  { %v2507_v20 = vpop.permute.xlu1 %2506 }
0x2292   :  { %v2509_v21 = vmul.f32 %v2507_v20, %v2491_v37 }
0x2294   :  { %2511 = vrot.lane.b32.xlu1 %v2509_v21, %s4574_s17 }
0x22a1   :  { %v2583_v24 = vpop.permute.xlu0 %2582 }
0x22a2   :  { %v2585_v9 = vmul.f32 %v2583_v24, %v2567_v45 }
0x22a4   :  { %2587 = vrot.lane.b32.xlu0 %v2585_v9, %s4574_s17 }
0x2306   :  { %v2512_v57 = vpop.permute.xlu1 %2511 }
0x2307   :  { %v5316_v59 = vadd.f32 %v4394_v54, %v2512_v57 }
0x2309   :  { %v2602_v60 = vpack.c.bf16 %v5316_v59, %v5316_v59 }
0x230b   :  { %2604 = vrot.lane.b32.xlu1 %v2602_v60, %s4566_s9 }
0x2316   :  { %v2588_v61 = vpop.permute.xlu0 %2587 }
0x2317   :  { %v5321_v63 = vadd.f32 %v4396_v39, %v2588_v61 }
0x2319   :  { %v2678_v10 = vpack.c.bf16 %v5321_v63, %v5321_v63 }
0x231b   :  { %2680 = vrot.lane.b32.xlu0 %v2678_v10, %s4566_s9 }
0x237d   :  { %v2605_v62 = vpop.permute.xlu1 %2604 }
0x237e   :  { %4150 = vmatmul.mubr.msk.bf16.vlgmr.msra.gmra.mrb[60].mxu0 %vm353_vm3, %v2605_v62 }
0x237f   :  { %4162 = vmatpush3.bf16.msra.mxu0 %v5160_v41  ;;  %4165 = vmatprep.mubr.msk.bf16.mxu0 %vm4571_vm1, %v4570_v11 }
0x2380   :  { %4163 = vmatprep.subr.bf16.mxu0 %v4570_v11 }
0x2383   :  { %4164 = vmatpush3.bf16.msra.mxu0 %v5169_v47 }
0x2384   :  { %4177 = vmatprep.subr.bf16.mxu0 %v4570_v11 }
0x238d   :  { %v2681_v29 = vpop.permute.xlu0 %2680 }
0x238e   :  { %4158 = vmatmul.mubr.msk.bf16.vlgmr.msra.gmra.mrb[68].mxu1 %vm353_vm3, %v2681_v29 }
0x238f   :  { %4170 = vmatpush3.bf16.msra.mxu1 %v5184_v51  ;;  %4173 = vmatprep.mubr.msk.bf16.mxu1 %vm4571_vm1, %v4570_v11 }
0x2390   :  { %4171 = vmatprep.subr.bf16.mxu1 %v4570_v11 }
0x2393   :  { %4172 = vmatpush3.bf16.msra.mxu1 %v5193_v52 }
0x2394   :  { %4185 = vmatprep.subr.bf16.mxu1 %v4570_v11 }
0x2451   :  { %v2643_v0 = vpop.f32.mrb[60].mxu0 }
0x2452   :  { %v2654_v1 = vadd.f32 %v2643_v0, %v5220_v23  ;;  %v4151_v3 = vpop.f32.mrb[61].mxu0  ;;  %v2649_v22 = vadd.f32 %v2643_v0, %v2601_v8 }
0x2453   :  { %v2646_v4 = vpop.f32.mrb[62].mxu0 }
0x2454   :  { %2656 = vrot.lane.b32.xlu1 %v2654_v1, %s4566_s9  ;;  %v4152_v6 = vpop.f32.mrb[63].mxu0  ;;  %v2650_v16 = vmul.f32 0.5, %v2649_v22 }
0x2456   :  { %4397 = vtanh.f32 %v2650_v16 }
0x2460   :  { %v4398_v27 = vpop.eup %4397 }
0x2461   :  { %v2719_v2 = vpop.f32.mrb[68].mxu1  ;;  %v2652_v30 = vadd.f32 1.0, %v4398_v27 }
0x2462   :  { %v2730_v7 = vadd.f32 %v2719_v2, %v5234_v48  ;;  %v4159_v12 = vpop.f32.mrb[69].mxu1  ;;  %v2725_v26 = vadd.f32 %v2719_v2, %v2677_v25  ;;  %v2763_v2 = vld [vmem:[#allocation2 + $0x20] sm:$0xff] }
0x2463   :  { %v2722_v13 = vpop.f32.mrb[70].mxu1  ;;  %v2653_v18 = vmul.f32 0.5, %v2652_v30 }
0x2464   :  { %2732 = vrot.lane.b32.xlu0 %v2730_v7, %s4566_s9  ;;  %v4160_v17 = vpop.f32.mrb[71].mxu1  ;;  %v2726_v28 = vmul.f32 0.5, %v2725_v26  ;;  %v2839_v13 = vld [vmem:[#allocation2 + $0x58] sm:$0xff] }
0x2466   :  { %4399 = vtanh.f32 %v2726_v28 }
0x2470   :  { %v4400_v43 = vpop.eup %4399 }
0x2471   :  { %v2728_v34 = vadd.f32 1.0, %v4400_v43 }
0x2473   :  { %v2729_v35 = vmul.f32 0.5, %v2728_v34 }
0x24c6   :  { %v2657_v31 = vpop.permute.xlu1 %2656 }
0x24c7   :  { %v2659_v33 = vmul.f32 %v2657_v31, %v2653_v18 }
0x24c9   :  { %2661 = vrot.lane.b32.xlu1 %v2659_v33, %s4566_s9 }
0x24d6   :  { %v2733_v36 = vpop.permute.xlu0 %2732 }
0x24d7   :  { %v2735_v37 = vmul.f32 %v2733_v36, %v2729_v35 }
0x24d9   :  { %2737 = vrot.lane.b32.xlu0 %v2735_v37, %s4566_s9 }
0x253b   :  { %v2662_v38 = vpop.permute.xlu1 %2661 }
0x253c   :  { %v2664_v40 = vadd.f32 %v2662_v38, %v2601_v8 }
0x253e   :  { %4401 = vtanh.f32 %v2664_v40 }
0x2548   :  { %v4402_v58 = vpop.eup %4401 }
0x2549   :  { %v2666_v44 = vsub.f32 %v5316_v59, %v4402_v58 }
0x254b   :  { %v2738_v45 = vpop.permute.xlu0 %2737  ;;  %2668 = vrot.lane.b32.xlu1 %v2666_v44, %s4573_s3 }
0x254c   :  { %v2740_v46 = vadd.f32 %v2738_v45, %v2677_v25 }
0x254e   :  { %4403 = vtanh.f32 %v2740_v46 }
0x2558   :  { %v4404_v49 = vpop.eup %4403 }
0x2559   :  { %v2742_v50 = vsub.f32 %v5321_v63, %v4404_v49 }
0x255b   :  { %2744 = vrot.lane.b32.xlu0 %v2742_v50, %s4573_s3 }
0x25bd   :  { %v2669_v53 = vpop.permute.xlu1 %2668 }
0x25be   :  { %v2671_v54 = vmul.f32 %v2669_v53, %v2653_v18 }
0x25c0   :  { %2673 = vrot.lane.b32.xlu1 %v2671_v54, %s4574_s17 }
0x25cd   :  { %v2745_v55 = vpop.permute.xlu0 %2744 }
0x25ce   :  { %v2747_v56 = vmul.f32 %v2745_v55, %v2729_v35 }
0x25d0   :  { %2749 = vrot.lane.b32.xlu0 %v2747_v56, %s4574_s17 }
0x2632   :  { %v2674_v5 = vpop.permute.xlu1 %2673 }
0x2633   :  { %v5352_v39 = vadd.f32 %v4402_v58, %v2674_v5 }
0x2635   :  { %v2764_v42 = vpack.c.bf16 %v5352_v39, %v5352_v39 }
0x2637   :  { %2766 = vrot.lane.b32.xlu1 %v2764_v42, %s4566_s9 }
0x2642   :  { %v2750_v20 = vpop.permute.xlu0 %2749 }
0x2643   :  { %v5357_v21 = vadd.f32 %v4404_v49, %v2750_v20 }
0x2645   :  { %v2840_v24 = vpack.c.bf16 %v5357_v21, %v5357_v21 }
0x2647   :  { %2842 = vrot.lane.b32.xlu0 %v2840_v24, %s4566_s9 }
0x26a9   :  { %v2767_v9 = vpop.permute.xlu1 %2766 }
0x26aa   :  { %4166 = vmatmul.mubr.msk.bf16.vlgmr.msra.gmra.mrb[64].mxu0 %vm353_vm3, %v2767_v9 }
0x26ab   :  { %4178 = vmatpush3.bf16.msra.mxu0 %v5160_v41  ;;  %4181 = vmatprep.mubr.msk.bf16.mxu0 %vm4571_vm1, %v4570_v11 }
0x26ac   :  { %4179 = vmatprep.subr.bf16.mxu0 %v4570_v11 }
0x26af   :  { %4180 = vmatpush3.bf16.msra.mxu0 %v5169_v47 }
0x26b0   :  { %4193 = vmatprep.subr.bf16.mxu0 %v4570_v11 }
0x26b9   :  { %v2843_v57 = vpop.permute.xlu0 %2842 }
0x26ba   :  { %4174 = vmatmul.mubr.msk.bf16.vlgmr.msra.gmra.mrb[72].mxu1 %vm353_vm3, %v2843_v57 }
0x26bb   :  { %4186 = vmatpush3.bf16.msra.mxu1 %v5184_v51  ;;  %4189 = vmatprep.mubr.msk.bf16.mxu1 %vm4571_vm1, %v4570_v11 }
0x26bc   :  { %4187 = vmatprep.subr.bf16.mxu1 %v4570_v11 }
0x26bf   :  { %4188 = vmatpush3.bf16.msra.mxu1 %v5193_v52 }
0x26c0   :  { %4201 = vmatprep.subr.bf16.mxu1 %v4570_v11 }
0x277d   :  { %v2805_v60 = vpop.f32.mrb[64].mxu0 }
0x277e   :  { %v2816_v61 = vadd.f32 %v2805_v60, %v5220_v23  ;;  %v4167_v10 = vpop.f32.mrb[65].mxu0  ;;  %v2811_v7 = vadd.f32 %v2805_v60, %v2763_v2 }
0x277f   :  { %v2808_v62 = vpop.f32.mrb[66].mxu0 }
0x2780   :  { %2818 = vrot.lane.b32.xlu1 %v2816_v61, %s4566_s9  ;;  %v4168_v29 = vpop.f32.mrb[67].mxu0  ;;  %v2812_v12 = vmul.f32 0.5, %v2811_v7 }
0x2781   :  { %v2925_v29 = vld [vmem:[#allocation2 + $0x28] sm:$0xff] }
0x2782   :  { %4405 = vtanh.f32 %v2812_v12 }
0x278c   :  { %v4406_v8 = vpop.eup %4405 }
0x278d   :  { %v2881_v0 = vpop.f32.mrb[72].mxu1  ;;  %v2814_v16 = vadd.f32 1.0, %v4406_v8 }
0x278e   :  { %v2892_v1 = vadd.f32 %v2881_v0, %v5234_v48  ;;  %v4175_v3 = vpop.f32.mrb[73].mxu1  ;;  %v2887_v17 = vadd.f32 %v2881_v0, %v2839_v13 }
0x278f   :  { %v2884_v4 = vpop.f32.mrb[74].mxu1  ;;  %v2815_v25 = vmul.f32 0.5, %v2814_v16 }
0x2790   :  { %2894 = vrot.lane.b32.xlu0 %v2892_v1, %s4566_s9  ;;  %v4176_v6 = vpop.f32.mrb[75].mxu1  ;;  %v2888_v22 = vmul.f32 0.5, %v2887_v17  ;;  %v3001_v1 = vld [vmem:[#allocation2 + $0x50] sm:$0xff] }
0x2792   :  { %4407 = vtanh.f32 %v2888_v22 }
0x279c   :  { %v4408_v28 = vpop.eup %4407 }
0x279d   :  { %v2890_v30 = vadd.f32 1.0, %v4408_v28 }
0x279f   :  { %v2891_v18 = vmul.f32 0.5, %v2890_v30 }
0x27f2   :  { %v2819_v26 = vpop.permute.xlu1 %2818 }
0x27f3   :  { %v2821_v27 = vmul.f32 %v2819_v26, %v2815_v25 }
0x27f5   :  { %2823 = vrot.lane.b32.xlu1 %v2821_v27, %s4566_s9 }
0x2802   :  { %v2895_v31 = vpop.permute.xlu0 %2894 }
0x2803   :  { %v2897_v33 = vmul.f32 %v2895_v31, %v2891_v18 }
0x2805   :  { %2899 = vrot.lane.b32.xlu0 %v2897_v33, %s4566_s9 }
0x2867   :  { %v2824_v43 = vpop.permute.xlu1 %2823 }
0x2868   :  { %v2826_v34 = vadd.f32 %v2824_v43, %v2763_v2 }
0x286a   :  { %4409 = vtanh.f32 %v2826_v34 }
0x2874   :  { %v4410_v35 = vpop.eup %4409 }
0x2875   :  { %v2828_v36 = vsub.f32 %v5352_v39, %v4410_v35 }
0x2877   :  { %v2900_v37 = vpop.permute.xlu0 %2899  ;;  %2830 = vrot.lane.b32.xlu1 %v2828_v36, %s4573_s3 }
0x2878   :  { %v2902_v38 = vadd.f32 %v2900_v37, %v2839_v13 }
0x287a   :  { %4411 = vtanh.f32 %v2902_v38 }
0x2884   :  { %v4412_v40 = vpop.eup %4411 }
0x2885   :  { %v2904_v58 = vsub.f32 %v5357_v21, %v4412_v40 }
0x2887   :  { %2906 = vrot.lane.b32.xlu0 %v2904_v58, %s4573_s3 }
0x28e9   :  { %v2831_v44 = vpop.permute.xlu1 %2830 }
0x28ea   :  { %v2833_v45 = vmul.f32 %v2831_v44, %v2815_v25 }
0x28ec   :  { %2835 = vrot.lane.b32.xlu1 %v2833_v45, %s4574_s17 }
0x28f9   :  { %v2907_v46 = vpop.permute.xlu0 %2906 }
0x28fa   :  { %v2909_v49 = vmul.f32 %v2907_v46, %v2891_v18 }
0x28fc   :  { %2911 = vrot.lane.b32.xlu0 %v2909_v49, %s4574_s17 }
0x295e   :  { %v2836_v50 = vpop.permute.xlu1 %2835 }
0x295f   :  { %v5388_v53 = vadd.f32 %v4410_v35, %v2836_v50  ;;  %v4441_v50 = vld [vmem:[%s5586_s7] sm:$0xff]  }
0x2961   :  { %v2926_v54 = vpack.c.bf16 %v5388_v53, %v5388_v53 }
0x2963   :  { %2928 = vrot.lane.b32.xlu1 %v2926_v54, %s4566_s9  ;;  %v4442_v54 = vld [vmem:[%s5586_s7 + $0x8] sm:$0xff]  }
0x296e   :  { %v2912_v55 = vpop.permute.xlu0 %2911 }
0x296f   :  { %v5393_v56 = vadd.f32 %v4412_v40, %v2912_v55 }
0x2971   :  { %v3002_v5 = vpack.c.bf16 %v5393_v56, %v5393_v56 }
0x2973   :  { %3004 = vrot.lane.b32.xlu0 %v3002_v5, %s4566_s9  ;;  %v4443_v5 = vld [vmem:[%s5586_s7 + $0x10] sm:$0xff]  }
0x29d5   :  { %v2929_v42 = vpop.permute.xlu1 %2928 }
0x29d6   :  { %4182 = vmatmul.mubr.msk.bf16.vlgmr.msra.gmra.mrb[68].mxu0 %vm353_vm3, %v2929_v42  ;;  %v4444_v42 = vld [vmem:[%s5586_s7 + $0x18] sm:$0xff]  }
0x29d7   :  { %4194 = vmatpush3.bf16.msra.mxu0 %v5160_v41  ;;  %4197 = vmatprep.mubr.msk.bf16.mxu0 %vm4571_vm1, %v4570_v11 }
0x29d8   :  { %4195 = vmatprep.subr.bf16.mxu0 %v4570_v11 }
0x29db   :  { %4196 = vmatpush3.bf16.msra.mxu0 %v5169_v47 }
0x29dc   :  { %4209 = vmatprep.subr.bf16.mxu0 %v4570_v11 }
0x29e5   :  { %v3005_v20 = vpop.permute.xlu0 %3004 }
0x29e6   :  { %4190 = vmatmul.mubr.msk.bf16.vlgmr.msra.gmra.mrb[76].mxu1 %vm353_vm3, %v3005_v20 }
0x29e7   :  { %4202 = vmatpush3.bf16.msra.mxu1 %v5184_v51  ;;  %4205 = vmatprep.mubr.msk.bf16.mxu1 %vm4571_vm1, %v4570_v11 }
0x29e8   :  { %4203 = vmatprep.subr.bf16.mxu1 %v4570_v11 }
0x29eb   :  { %4204 = vmatpush3.bf16.msra.mxu1 %v5193_v52 }
0x29ec   :  { %4217 = vmatprep.subr.bf16.mxu1 %v4570_v11 }
0x2aa9   :  { %v2967_v41 = vpop.f32.mrb[68].mxu0 }
0x2aaa   :  { %v2978_v24 = vadd.f32 %v2967_v41, %v5220_v23  ;;  %v4183_v47 = vpop.f32.mrb[69].mxu0  ;;  %v2973_v52 = vadd.f32 %v2967_v41, %v2925_v29 }
0x2aab   :  { %v2970_v9 = vpop.f32.mrb[70].mxu0 }
0x2aac   :  { %2980 = vrot.lane.b32.xlu1 %v2978_v24, %s4566_s9  ;;  %v4184_v57 = vpop.f32.mrb[71].mxu0  ;;  %v2974_v0 = vmul.f32 0.5, %v2973_v52  ;;  %v3163_v52 = vld [vmem:[#allocation2 + $0x48] sm:$0xff] }
0x2aae   :  { %4413 = vtanh.f32 %v2974_v0 }
0x2ab8   :  { %v4414_v4 = vpop.eup %4413 }
0x2ab9   :  { %v3043_v60 = vpop.f32.mrb[76].mxu1  ;;  %v2976_v2 = vadd.f32 1.0, %v4414_v4 }
0x2aba   :  { %v3054_v51 = vadd.f32 %v3043_v60, %v5234_v48  ;;  %v4191_v61 = vpop.f32.mrb[77].mxu1  ;;  %v3049_v3 = vadd.f32 %v3043_v60, %v3001_v1 }
0x2abb   :  { %v3046_v10 = vpop.f32.mrb[78].mxu1  ;;  %v2977_v7 = vmul.f32 0.5, %v2976_v2 }
0x2abc   :  { %3056 = vrot.lane.b32.xlu0 %v3054_v51, %s4566_s9  ;;  %v4192_v62 = vpop.f32.mrb[79].mxu1  ;;  %v3050_v6 = vmul.f32 0.5, %v3049_v3  ;;  %v3087_v10 = vld [vmem:[#allocation2 + $0x30] sm:$0xff] }
0x2abe   :  { %4415 = vtanh.f32 %v3050_v6 }
0x2ac8   :  { %v4416_v17 = vpop.eup %4415 }
0x2ac9   :  { %v3052_v8 = vadd.f32 1.0, %v4416_v17 }
0x2acb   :  { %v3053_v22 = vmul.f32 0.5, %v3052_v8 }
0x2b1e   :  { %v2981_v12 = vpop.permute.xlu1 %2980 }
0x2b1f   :  { %v2983_v13 = vmul.f32 %v2981_v12, %v2977_v7 }
0x2b21   :  { %2985 = vrot.lane.b32.xlu1 %v2983_v13, %s4566_s9 }
0x2b2e   :  { %v3057_v16 = vpop.permute.xlu0 %3056 }
0x2b2f   :  { %v3059_v25 = vmul.f32 %v3057_v16, %v3053_v22 }
0x2b31   :  { %3061 = vrot.lane.b32.xlu0 %v3059_v25, %s4566_s9 }
0x2b93   :  { %v2986_v26 = vpop.permute.xlu1 %2985 }
0x2b94   :  { %v2988_v27 = vadd.f32 %v2986_v26, %v2925_v29 }
0x2b96   :  { %4417 = vtanh.f32 %v2988_v27 }
0x2ba0   :  { %v4418_v28 = vpop.eup %4417 }
0x2ba1   :  { %v2990_v30 = vsub.f32 %v5388_v53, %v4418_v28 }
0x2ba3   :  { %v3062_v18 = vpop.permute.xlu0 %3061  ;;  %2992 = vrot.lane.b32.xlu1 %v2990_v30, %s4573_s3 }
0x2ba4   :  { %v3064_v31 = vadd.f32 %v3062_v18, %v3001_v1 }
0x2ba6   :  { %4419 = vtanh.f32 %v3064_v31 }
0x2bb0   :  { %v4420_v33 = vpop.eup %4419 }
0x2bb1   :  { %v3066_v43 = vsub.f32 %v5393_v56, %v4420_v33 }
0x2bb3   :  { %3068 = vrot.lane.b32.xlu0 %v3066_v43, %s4573_s3 }
0x2c15   :  { %v2993_v34 = vpop.permute.xlu1 %2992 }
0x2c16   :  { %v2995_v35 = vmul.f32 %v2993_v34, %v2977_v7 }
0x2c18   :  { %2997 = vrot.lane.b32.xlu1 %v2995_v35, %s4574_s17 }
0x2c25   :  { %v3069_v36 = vpop.permute.xlu0 %3068 }
0x2c26   :  { %v3071_v37 = vmul.f32 %v3069_v36, %v3053_v22 }
0x2c28   :  { %3073 = vrot.lane.b32.xlu0 %v3071_v37, %s4574_s17 }
0x2c8a   :  { %v2998_v38 = vpop.permute.xlu1 %2997 }
0x2c8b   :  { %v5424_v40 = vadd.f32 %v4418_v28, %v2998_v38 }
0x2c8d   :  { %v3088_v58 = vpack.c.bf16 %v5424_v40, %v5424_v40 }
0x2c8f   :  { %3090 = vrot.lane.b32.xlu1 %v3088_v58, %s4566_s9 }
0x2c9a   :  { %v3074_v44 = vpop.permute.xlu0 %3073 }
0x2c9b   :  { %v5429_v45 = vadd.f32 %v4420_v33, %v3074_v44 }
0x2c9d   :  { %v3164_v46 = vpack.c.bf16 %v5429_v45, %v5429_v45 }
0x2c9f   :  { %3166 = vrot.lane.b32.xlu0 %v3164_v46, %s4566_s9 }
0x2d01   :  { %v3091_v49 = vpop.permute.xlu1 %3090 }
0x2d02   :  { %4198 = vmatmul.mubr.msk.bf16.vlgmr.msra.gmra.mrb[72].mxu0 %vm353_vm3, %v3091_v49 }
0x2d03   :  { %4210 = vmatpush3.bf16.msra.mxu0 %v4441_v50  ;;  %4213 = vmatprep.mubr.msk.bf16.mxu0 %vm4571_vm1, %v4570_v11 }
0x2d04   :  { %4211 = vmatprep.subr.bf16.mxu0 %v4570_v11 }
0x2d07   :  { %4212 = vmatpush3.bf16.msra.mxu0 %v4442_v54 }
0x2d11   :  { %v3167_v55 = vpop.permute.xlu0 %3166 }
0x2d12   :  { %4206 = vmatmul.mubr.msk.bf16.vlgmr.msra.gmra.mrb[80].mxu1 %vm353_vm3, %v3167_v55 }
0x2d13   :  { %4218 = vmatpush3.bf16.msra.mxu1 %v4443_v5  ;;  %4221 = vmatprep.mubr.msk.bf16.mxu1 %vm4571_vm1, %v4570_v11 }
0x2d14   :  { %4219 = vmatprep.subr.bf16.mxu1 %v4570_v11 }
0x2d17   :  { %4220 = vmatpush3.bf16.msra.mxu1 %v4444_v42 }
0x2dd5   :  { %v3129_v20 = vpop.f32.mrb[72].mxu0 }
0x2dd6   :  { %v3140_v41 = vadd.f32 %v3129_v20, %v5220_v23  ;;  %v4199_v24 = vpop.f32.mrb[73].mxu0  ;;  %v3135_v62 = vadd.f32 %v3129_v20, %v3087_v10 }
0x2dd7   :  { %v3132_v47 = vpop.f32.mrb[74].mxu0 }
0x2dd8   :  { %3142 = vrot.lane.b32.xlu1 %v3140_v41, %s4566_s9  ;;  %v4200_v9 = vpop.f32.mrb[75].mxu0  ;;  %v3136_v29 = vmul.f32 0.5, %v3135_v62 }
0x2dda   :  { %4421 = vtanh.f32 %v3136_v29 }
0x2de4   :  { %v4422_v1 = vpop.eup %4421 }
0x2de5   :  { %v3205_v57 = vpop.f32.mrb[80].mxu1  ;;  %v3138_v4 = vadd.f32 1.0, %v4422_v1 }
0x2de6   :  { %v3216_v60 = vadd.f32 %v3205_v57, %v5234_v48  ;;  %v4207_v51 = vpop.f32.mrb[81].mxu1  ;;  %v3211_v0 = vadd.f32 %v3205_v57, %v3163_v52 }
0x2de7   :  { %v3208_v61 = vpop.f32.mrb[82].mxu1  ;;  %v3139_v6 = vmul.f32 0.5, %v3138_v4 }
0x2de8   :  { %3218 = vrot.lane.b32.xlu0 %v3216_v60, %s4566_s9  ;;  %v4208_v11 = vpop.f32.mrb[83].mxu1  ;;  %v3212_v3 = vmul.f32 0.5, %v3211_v0  ;;  %v3249_v60 = vld [vmem:[#allocation2 + $0x38] sm:$0xff] }
0x2de9   :  { %v3325_v11 = vld [vmem:[#allocation2 + $0x40] sm:$0xff] }
0x2dea   :  { %4423 = vtanh.f32 %v3212_v3 }
0x2df4   :  { %v4424_v12 = vpop.eup %4423 }
0x2df5   :  { %v3214_v13 = vadd.f32 1.0, %v4424_v12 }
0x2df7   :  { %v3215_v17 = vmul.f32 0.5, %v3214_v13 }
0x2e4a   :  { %v3143_v2 = vpop.permute.xlu1 %3142 }
0x2e4b   :  { %v3145_v7 = vmul.f32 %v3143_v2, %v3139_v6 }
0x2e4d   :  { %3147 = vrot.lane.b32.xlu1 %v3145_v7, %s4566_s9 }
0x2e5a   :  { %v3219_v8 = vpop.permute.xlu0 %3218 }
0x2e5b   :  { %v3221_v22 = vmul.f32 %v3219_v8, %v3215_v17 }
0x2e5d   :  { %3223 = vrot.lane.b32.xlu0 %v3221_v22, %s4566_s9 }
0x2ebf   :  { %v3148_v16 = vpop.permute.xlu1 %3147 }
0x2ec0   :  { %v3150_v25 = vadd.f32 %v3148_v16, %v3087_v10 }
0x2ec2   :  { %4425 = vtanh.f32 %v3150_v25 }
0x2ecc   :  { %v4426_v26 = vpop.eup %4425 }
0x2ecd   :  { %v3152_v27 = vsub.f32 %v5424_v40, %v4426_v26 }
0x2ecf   :  { %v3224_v28 = vpop.permute.xlu0 %3223  ;;  %3154 = vrot.lane.b32.xlu1 %v3152_v27, %s4573_s3 }
0x2ed0   :  { %v3226_v30 = vadd.f32 %v3224_v28, %v3163_v52 }
0x2ed2   :  { %4427 = vtanh.f32 %v3226_v30 }
0x2edc   :  { %v4428_v18 = vpop.eup %4427 }
0x2edd   :  { %v3228_v31 = vsub.f32 %v5429_v45, %v4428_v18 }
0x2edf   :  { %3230 = vrot.lane.b32.xlu0 %v3228_v31, %s4573_s3 }
0x2f41   :  { %v3155_v33 = vpop.permute.xlu1 %3154 }
0x2f42   :  { %v3157_v43 = vmul.f32 %v3155_v33, %v3139_v6 }
0x2f44   :  { %3159 = vrot.lane.b32.xlu1 %v3157_v43, %s4574_s17 }
0x2f51   :  { %v3231_v34 = vpop.permute.xlu0 %3230 }
0x2f52   :  { %v3233_v35 = vmul.f32 %v3231_v34, %v3215_v17 }
0x2f54   :  { %3235 = vrot.lane.b32.xlu0 %v3233_v35, %s4574_s17 }
0x2fb6   :  { %v3160_v36 = vpop.permute.xlu1 %3159 }
0x2fb7   :  { %v5466_v37 = vadd.f32 %v4426_v26, %v3160_v36 }
0x2fb9   :  { %v3250_v38 = vpack.c.bf16 %v5466_v37, %v5466_v37 }
0x2fbb   :  { %3252 = vrot.lane.b32.xlu1 %v3250_v38, %s4566_s9 }
0x2fc6   :  { %v3236_v58 = vpop.permute.xlu0 %3235 }
0x2fc7   :  { %v3238_v44 = vadd.f32 %v4428_v18, %v3236_v58  ;;  %v4305_v18 = vld [vmem:[#allocation12] sm:$0xff]  }
0x2fc8   :  { %4225 = vmatprep.subr.bf16.mxu0 %v4305_v18 }
0x2fc9   :  { %v3326_v46 = vpack.c.bf16 %v3238_v44, %v3238_v44 }
0x2fcb   :  { %3328 = vrot.lane.b32.xlu0 %v3326_v46, %s4566_s9 }
0x302d   :  { %v3253_v49 = vpop.permute.xlu1 %3252 }
0x302e   :  { %4214 = vmatmul.mubr.msk.bf16.vlgmr.msra.gmra.mrb[76].mxu0 %vm353_vm3, %v3253_v49 }
0x302f   :  { %4226 = vmatpush3.bf16.msra.mxu0 %v4305_v18 }
0x303d   :  { %v3329_v50 = vpop.permute.xlu0 %3328 }
0x303e   :  { %4222 = vmatmul.mubr.msk.bf16.vlgmr.msra.gmra.mrb[84].mxu1 %vm353_vm3, %v3329_v50  ;;  %v4308_v50 = vld [vmem:[%s5589_s10 + $0x8] sm:$0xff]  }
0x3101   :  { %v3291_v54 = vpop.f32.mrb[76].mxu0 }
0x3102   :  { %v3302_v55 = vadd.f32 %v3291_v54, %v5220_v23  ;;  %v4215_v5 = vpop.f32.mrb[77].mxu0  ;;  %v3297_v51 = vadd.f32 %v3291_v54, %v3249_v60 }
0x3103   :  { %v3294_v42 = vpop.f32.mrb[78].mxu0 }
0x3104   :  { %3304 = vrot.lane.b32.xlu1 %v3302_v55, %s4566_s9  ;;  %v4216_v20 = vpop.f32.mrb[79].mxu0  ;;  %v3298_v61 = vmul.f32 0.5, %v3297_v51 }
0x3106   :  { %4429 = vtanh.f32 %v3298_v61 }
0x3110   :  { %v4430_v23 = vpop.eup %4429 }
0x3111   :  { %v3367_v41 = vpop.f32.mrb[84].mxu1  ;;  %v3300_v29 = vadd.f32 1.0, %v4430_v23 }
0x3112   :  { %v3378_v24 = vadd.f32 %v3367_v41, %v5234_v48  ;;  %v4223_v47 = vpop.f32.mrb[85].mxu1  ;;  %v3373_v10 = vadd.f32 %v3367_v41, %v3325_v11 }
0x3113   :  { %v3370_v9 = vpop.f32.mrb[86].mxu1  ;;  %v3301_v52 = vmul.f32 0.5, %v3300_v29 }
0x3114   :  { %3380 = vrot.lane.b32.xlu0 %v3378_v24, %s4566_s9  ;;  %v4224_v57 = vpop.f32.mrb[87].mxu1  ;;  %v3374_v62 = vmul.f32 0.5, %v3373_v10 }
0x3116   :  { %4431 = vtanh.f32 %v3374_v62 }
0x3120   :  { %v4432_v48 = vpop.eup %4431 }
0x3121   :  { %v3376_v3 = vadd.f32 1.0, %v4432_v48 }
0x3123   :  { %v3377_v4 = vmul.f32 0.5, %v3376_v3  ;;  %v3758_v3 = vld [vmem:[%s5591_s12] ss:$0 sm:$0xff] }
0x3176   :  { %v3305_v0 = vpop.permute.xlu1 %3304 }
0x3177   :  { %v3307_v1 = vmul.f32 %v3305_v0, %v3301_v52 }
0x3179   :  { %3309 = vrot.lane.b32.xlu1 %v3307_v1, %s4566_s9 }
0x3186   :  { %v3381_v6 = vpop.permute.xlu0 %3380 }
0x3187   :  { %v3383_v2 = vmul.f32 %v3381_v6, %v3377_v4 }
0x3189   :  { %3385 = vrot.lane.b32.xlu0 %v3383_v2, %s4566_s9 }
0x31eb   :  { %v3310_v7 = vpop.permute.xlu1 %3309 }
0x31ec   :  { %v3312_v12 = vadd.f32 %v3310_v7, %v3249_v60 }
0x31ee   :  { %4433 = vtanh.f32 %v3312_v12 }
0x31f8   :  { %v4434_v13 = vpop.eup %4433 }
0x31f9   :  { %v3314_v17 = vsub.f32 %v5466_v37, %v4434_v13 }
0x31fb   :  { %v3386_v8 = vpop.permute.xlu0 %3385  ;;  %3316 = vrot.lane.b32.xlu1 %v3314_v17, %s4573_s3 }
0x31fc   :  { %v3388_v22 = vadd.f32 %v3386_v8, %v3325_v11 }
0x31fe   :  { %4435 = vtanh.f32 %v3388_v22 }
0x3208   :  { %v4436_v16 = vpop.eup %4435 }
0x3209   :  { %v3390_v25 = vsub.f32 %v3238_v44, %v4436_v16 }
0x320b   :  { %3392 = vrot.lane.b32.xlu0 %v3390_v25, %s4573_s3 }
0x326d   :  { %v3317_v26 = vpop.permute.xlu1 %3316 }
0x326e   :  { %v3319_v27 = vmul.f32 %v3317_v26, %v3301_v52 }
0x3270   :  { %3321 = vrot.lane.b32.xlu1 %v3319_v27, %s4574_s17 }
0x327d   :  { %v3393_v28 = vpop.permute.xlu0 %3392 }
0x327e   :  { %v3395_v30 = vmul.f32 %v3393_v28, %v3377_v4 }
0x3280   :  { %3397 = vrot.lane.b32.xlu0 %v3395_v30, %s4574_s17 }
0x3284   :  { %3245 = vrot.lane.b32.xlu0 %v3238_v44, %s4566_s9 }
0x3288   :  { %2921 = vrot.lane.b32.xlu0 %v5393_v56, %s4566_s9  ;;  %v4306_v56 = vld [vmem:[#allocation12 + $0x8] sm:$0xff]  }
0x3289   :  { %4227 = vmatprep.subr.bf16.mxu0 %v4306_v56 }
0x328a   :  { %4228 = vmatpush3.bf16.msra.mxu0 %v4306_v56 }
0x328c   :  { %2597 = vrot.lane.b32.xlu0 %v5321_v63, %s4566_s9 }
0x3290   :  { %2273 = vrot.lane.b32.xlu0 %v5249_v15, %s4566_s9  ;;  %v4307_v15 = vld [vmem:[%s5589_s10] sm:$0xff]  }
0x3291   :  { %4237 = vmatprep.subr.bf16.mxu0 %v4307_v15 }
0x3294   :  { %2268 = vrot.lane.b32.xlu0 %v5244_v19, %s4566_s9 }
0x3298   :  { %2592 = vrot.lane.b32.xlu0 %v5316_v59, %s4566_s9 }
0x329c   :  { %2916 = vrot.lane.b32.xlu0 %v5388_v53, %s4566_s9 }
0x32a0   :  { %3240 = vrot.lane.b32.xlu0 %v5466_v37, %s4566_s9 }
0x32f2   :  { %v3398_v63 = vpop.permute.xlu0 %3397 }
0x32f3   :  { %v3400_v31 = vadd.f32 %v4436_v16, %v3398_v63 }
0x32f5   :  { %3407 = vrot.lane.b32.xlu1 %v3400_v31, %s4566_s9 }
0x32f6   :  { %v3246_v19 = vpop.permute.xlu0 %3245 }
0x32f7   :  { %3248 = vst.msk [vmem:[#allocation4 + $0x8] sm:$0xff] %vm353_vm3, %v3246_v19 }
0x32f9   :  { %3083 = vrot.lane.b32.xlu1 %v5429_v45, %s4566_s9 }
0x32fa   :  { %v2922_v59 = vpop.permute.xlu0 %2921 }
0x32fb   :  { %2924 = vst.msk [vmem:[#allocation4 + $0x18] sm:$0xff] %vm353_vm3, %v2922_v59 }
0x32fd   :  { %2759 = vrot.lane.b32.xlu1 %v5357_v21, %s4566_s9  ;;  %v3322_v21 = vpop.permute.xlu1 %3321 }
0x32fe   :  { %v2598_v53 = vpop.permute.xlu0 %2597  ;;  %v3324_v34 = vadd.f32 %v4434_v13, %v3322_v21  ;;  %v3428_v38 = vld [vmem:[#allocation4 + $0x8] sm:$0xff] }
0x32ff   :  { %2600 = vst.msk [vmem:[#allocation4 + $0x28] sm:$0xff] %vm353_vm3, %v2598_v53 }
0x3301   :  { %2435 = vrot.lane.b32.xlu1 %v5285_v14, %s4566_s9 }
0x3302   :  { %v2274_v33 = vpop.permute.xlu0 %2273  ;;  %v3430_v46 = vld [vmem:[#allocation4 + $0x18] sm:$0xff] }
0x3303   :  { %2276 = vst.msk [vmem:[#allocation4 + $0x38] sm:$0xff] %vm353_vm3, %v2274_v33 }
0x3305   :  { %2430 = vrot.lane.b32.xlu1 %v5280_v32, %s4566_s9 }
0x3306   :  { %v2269_v43 = vpop.permute.xlu0 %2268  ;;  %v3432_v5 = vld [vmem:[#allocation4 + $0x28] sm:$0xff] }
0x3307   :  { %2271 = vst.msk [vmem:[#allocation3] sm:$0xff] %vm353_vm3, %v2269_v43 }
0x3309   :  { %2754 = vrot.lane.b32.xlu1 %v5352_v39, %s4566_s9 }
0x330a   :  { %v2593_v45 = vpop.permute.xlu0 %2592  ;;  %v3434_v24 = vld [vmem:[#allocation4 + $0x38] sm:$0xff] }
0x330b   :  { %2595 = vst.msk [vmem:[#allocation3 + $0x10] sm:$0xff] %vm353_vm3, %v2593_v45 }
0x330d   :  { %3078 = vrot.lane.b32.xlu1 %v5424_v40, %s4566_s9 }
0x330e   :  { %v2917_v14 = vpop.permute.xlu0 %2916  ;;  %v3411_v57 = vld [vmem:[#allocation3] sm:$0xff] }
0x330f   :  { %2919 = vst.msk [vmem:[#allocation3 + $0x20] sm:$0xff] %vm353_vm3, %v2917_v14 }
0x3311   :  { %3402 = vrot.lane.b32.xlu1 %v3324_v34, %s4566_s9 }
0x3312   :  { %v3241_v32 = vpop.permute.xlu0 %3240  ;;  %v3413_v11 = vld [vmem:[#allocation3 + $0x10] sm:$0xff] }
0x3313   :  { %3243 = vst.msk [vmem:[#allocation3 + $0x30] sm:$0xff] %vm353_vm3, %v3241_v32 }
0x3316   :  { %v3415_v62 = vld [vmem:[#allocation3 + $0x20] sm:$0xff] }
0x331a   :  { %v3417_v0 = vld [vmem:[#allocation3 + $0x30] sm:$0xff] }
0x3367   :  { %v3408_v35 = vpop.permute.xlu1 %3407 }
0x3368   :  { %3410 = vst.msk [vmem:[#allocation4] sm:$0xff] %vm353_vm3, %v3408_v35 }
0x336b   :  { %v3084_v39 = vpop.permute.xlu1 %3083 }
0x336c   :  { %3086 = vst.msk [vmem:[#allocation4 + $0x10] sm:$0xff] %vm353_vm3, %v3084_v39 }
0x336f   :  { %v2760_v36 = vpop.permute.xlu1 %2759  ;;  %v3427_v37 = vld [vmem:[#allocation4] sm:$0xff] }
0x3370   :  { %2762 = vst.msk [vmem:[#allocation4 + $0x20] sm:$0xff] %vm353_vm3, %v2760_v36  ;;  %v3435_v40 = vpack.c.bf16 %v3428_v38, %v3427_v37 }
0x3372   :  { %4229 = vmatprep.mubr.msk.bf16.mxu0 %vm353_vm3, %v3435_v40 }
0x3373   :  { %v2436_v58 = vpop.permute.xlu1 %2435  ;;  %v3429_v44 = vld [vmem:[#allocation4 + $0x10] sm:$0xff] }
0x3374   :  { %2438 = vst.msk [vmem:[#allocation4 + $0x30] sm:$0xff] %vm353_vm3, %v2436_v58  ;;  %v3436_v49 = vpack.c.bf16 %v3430_v46, %v3429_v44 }
0x3376   :  { %4230 = vmatmul.mubr.msk.bf16.vlgmr.msra.gmra.mrb[80].mxu0 %vm353_vm3, %v3436_v49 }
0x3377   :  { %4238 = vmatpush3.bf16.msra.mxu0 %v4307_v15  ;;  %v2431_v54 = vpop.permute.xlu1 %2430  ;;  %v3431_v55 = vld [vmem:[#allocation4 + $0x20] sm:$0xff] }
0x3378   :  { %2433 = vst.msk [vmem:[#allocation3 + $0x8] sm:$0xff] %vm353_vm3, %v2431_v54  ;;  %v3437_v42 = vpack.c.bf16 %v3432_v5, %v3431_v55  ;;  %4239 = vmatprep.subr.bf16.mxu0 %v4308_v50 }
0x337a   :  { %4233 = vmatprep.mubr.msk.bf16.mxu0 %vm353_vm3, %v3437_v42 }
0x337b   :  { %v2755_v20 = vpop.permute.xlu1 %2754  ;;  %v3433_v41 = vld [vmem:[#allocation4 + $0x30] sm:$0xff]  ;;  %4240 = vmatpush3.bf16.msra.mxu0 %v4308_v50 }
0x337c   :  { %2757 = vst.msk [vmem:[#allocation3 + $0x18] sm:$0xff] %vm353_vm3, %v2755_v20  ;;  %v3438_v47 = vpack.c.bf16 %v3434_v24, %v3433_v41 }
0x337e   :  { %4234 = vmatmul.mubr.msk.bf16.gmra.mrb[84].mxu0 %vm353_vm3, %v3438_v47 }
0x337f   :  { %v3079_v9 = vpop.permute.xlu1 %3078  ;;  %v3412_v60 = vld [vmem:[#allocation3 + $0x8] sm:$0xff] }
0x3380   :  { %3081 = vst.msk [vmem:[#allocation3 + $0x28] sm:$0xff] %vm353_vm3, %v3079_v9  ;;  %v3419_v51 = vpack.c.bf16 %v3412_v60, %v3411_v57 }
0x3382   :  { %4241 = vmatprep.mubr.msk.bf16.mxu0 %vm353_vm3, %v3419_v51 }
0x3383   :  { %v3403_v61 = vpop.permute.xlu1 %3402  ;;  %v3414_v10 = vld [vmem:[#allocation3 + $0x18] sm:$0xff] }
0x3384   :  { %3405 = vst.msk [vmem:[#allocation3 + $0x38] sm:$0xff] %vm353_vm3, %v3403_v61  ;;  %v3420_v23 = vpack.c.bf16 %v3414_v10, %v3413_v11 }
0x3386   :  { %4242 = vmatmul.mubr.msk.bf16.vlgmr.msra.gmra.mrb[80].mxu0 %vm353_vm3, %v3420_v23 }
0x3387   :  { %v3416_v29 = vld [vmem:[#allocation3 + $0x28] sm:$0xff] }
0x3388   :  { %v3421_v52 = vpack.c.bf16 %v3416_v29, %v3415_v62 }
0x338a   :  { %4245 = vmatprep.mubr.msk.bf16.mxu0 %vm353_vm3, %v3421_v52 }
0x338b   :  { %v3418_v1 = vld [vmem:[#allocation3 + $0x38] sm:$0xff] }
0x338c   :  { %v3422_v48 = vpack.c.bf16 %v3418_v1, %v3417_v0 }
0x338e   :  { %4246 = vmatmul.mubr.msk.bf16.gmra.mrb[84].mxu0 %vm353_vm3, %v3422_v48 }
0x3459   :  { %v4243_v4 = vpop.f32.mrb[80].mxu0 }
0x345a   :  { %v3630_v6 = vadd.f32 %v4243_v4, %v3758_v3  ;;  %v3590_v2 = vpop.f32.mrb[81].mxu0 }
0x345b   :  { %v3628_v7 = vadd.f32 %v3758_v3, %v3590_v2  ;;  %v4244_v12 = vpop.f32.mrb[82].mxu0 }
0x345c   :  { %3638 = vst.msk [vmem:[%s5592_s13 + $0x10] sm:$0xff] %vm353_vm3, %v3630_v6  ;;  %v3631_v13 = vadd.f32 %v4244_v12, %v3758_v3  ;;  %v3593_v17 = vpop.f32.mrb[83].mxu0 }
0x345d   :  { %3636 = vst.msk [vmem:[%s5592_s13] sm:$0xff] %vm353_vm3, %v3628_v7  ;;  %v3629_v8 = vadd.f32 %v3758_v3, %v3593_v17 }
0x345e   :  { %3639 = vst.msk [vmem:[%s5592_s13 + $0x18] sm:$0xff] %vm353_vm3, %v3631_v13 }
0x345f   :  { %3637 = vst.msk [vmem:[%s5592_s13 + $0x8] sm:$0xff] %vm353_vm3, %v3629_v8 }
0x3461   :  { %v4247_v22 = vpop.f32.mrb[84].mxu0 }
0x3462   :  { %v3634_v16 = vadd.f32 %v4247_v22, %v3758_v3  ;;  %v3606_v25 = vpop.f32.mrb[85].mxu0 }
0x3463   :  { %v3632_v26 = vadd.f32 %v3758_v3, %v3606_v25  ;;  %v4248_v27 = vpop.f32.mrb[86].mxu0 }
0x3464   :  { %3642 = vst.msk [vmem:[%s5592_s13 + $0x30] sm:$0xff] %vm353_vm3, %v3634_v16  ;;  %v3635_v28 = vadd.f32 %v4248_v27, %v3758_v3  ;;  %v3609_v30 = vpop.f32.mrb[87].mxu0 }
0x3465   :  { %3640 = vst.msk [vmem:[%s5592_s13 + $0x20] sm:$0xff] %vm353_vm3, %v3632_v26  ;;  %v3633_v18 = vadd.f32 %v3758_v3, %v3609_v30 }
0x3466   :  { %3643 = vst.msk [vmem:[%s5592_s13 + $0x38] sm:$0xff] %vm353_vm3, %v3635_v28 }
0x3467   :  { %3641 = vst.msk [vmem:[%s5592_s13 + $0x28] sm:$0xff] %vm353_vm3, %v3633_v18 }
0x3468   :  { %3648 = vsyncpa [#allocation6], 1 }
0x3469   :  { %3649 = vsyncpa [#allocation8], 1 }
0x346a   :  { %3650 = vsyncpa [#allocation11], 1 }

</bundles_post_ra>
